<compile_context>
chip_gen: v5e
topology: v5e:2x2
jax: 0.10.0
libtpu: 0.0.40
codegen_flags: <defaults>
</compile_context>

<pallas_src>
import jax
import jax.numpy as jnp
import numpy as np
from jax.experimental import pallas as pl
from jax.experimental.pallas import tpu as pltpu

NUM_ANCHORS = 5
NUM_CLASSES = 13
NUM_OUT = NUM_ANCHORS * (5 + NUM_CLASSES)   # 90
NUM_OUT_PAD = 128                           # lane-dense output width
C_BACKBONE = 960                            # mobilenet_v3_large .features output channels
C_REDUCE = 256
C_HEAD = 32
SE_HIDDEN = C_HEAD // 16                    # 2
BN_EPS = 1e-5


def _yolo_head_kernel(feat_ref, w_red_ref, b_red_ref, w_c1_ref, b_c1_ref,
                      w_fc1_ref, w_fc2_ref, w_out_ref, b_out_ref, out_ref):
    H = feat_ref.shape[1]
    W = feat_ref.shape[2]
    Cin = feat_ref.shape[3]
    HW = H * W

    # ---- conv_reduce: 1x1 conv == per-pixel matmul over channels (bf16 MXU, f32 acc)
    x = feat_ref[0].reshape(HW, Cin)                                      # (HW, 960) bf16
    x1 = jnp.dot(x, w_red_ref[...],
                 preferred_element_type=jnp.float32) + b_red_ref[...]     # (HW, 256) f32

    # ---- head conv1: 3x3 pad=1 via sublane rolls + border masks (no pad scratch) ----
    y_idx = jax.lax.broadcasted_iota(jnp.int32, (H, W, C_REDUCE), 0).reshape(HW, C_REDUCE)
    x_idx = jax.lax.broadcasted_iota(jnp.int32, (H, W, C_REDUCE), 1).reshape(HW, C_REDUCE)

    taps = []
    for dy in range(3):
        for dx in range(3):
            dy_off = dy - 1
            dx_off = dx - 1
            offset = dy_off * W + dx_off                 # flat-row offset of this tap
            if offset == 0:
                shifted = x1
            else:
                shifted = pltpu.roll(x1, shift=(-offset) % HW, axis=0)
            mask = None
            if dy_off == -1:
                mask = y_idx != 0
            elif dy_off == 1:
                mask = y_idx != H - 1
            if dx_off == -1:
                m2 = x_idx != 0
                mask = m2 if mask is None else (mask & m2)
            elif dx_off == 1:
                m2 = x_idx != W - 1
                mask = m2 if mask is None else (mask & m2)
            if mask is not None:
                shifted = jnp.where(mask, shifted, 0.0)
            taps.append(shifted)

    cols = jnp.concatenate(taps, axis=1)                                  # (HW, 2304)
    # BatchNorm (inference) + conv bias are pre-folded into w_c1 / b_c1.
    acc = jnp.dot(cols, w_c1_ref[...],
                  preferred_element_type=jnp.float32) + b_c1_ref[...]     # (HW, 32)
    h = jnp.maximum(acc, 0.0)                                             # ReLU

    # ---- SEBlock(32, r=16): GAP -> Linear(32->2) -> ReLU -> Linear(2->32) -> sigmoid
    pooled = jnp.mean(h, axis=0, keepdims=True)                           # (1, 32)
    z = jnp.maximum(jnp.dot(pooled, w_fc1_ref[...],
                            preferred_element_type=jnp.float32), 0.0)     # (1, 2)
    logits = jnp.dot(z, w_fc2_ref[...], preferred_element_type=jnp.float32)
    s = pl.reciprocal(1.0 + jnp.exp(-logits), approx=True)                # sigmoid (1, 32)
    h = h * s                                                             # channel gating

    # ---- final 1x1 conv: 32 -> 90, padded to 128 lanes (unmasked full-vreg stores) ---
    out = jnp.dot(h, w_out_ref[...],
                  preferred_element_type=jnp.float32) + b_out_ref[...]    # (HW, 128)
    out_ref[0] = out.reshape(H, W, NUM_OUT_PAD).astype(out_ref.dtype)


def _prepare_params(p):
    """Fold BN + conv1 bias into the 3x3 weights, flatten taps for one im2col matmul,
    cast the conv_reduce weight to bf16 and pad the output conv to 128 lanes."""
    bn_scale = p["gamma"] / jnp.sqrt(p["running_var"] + BN_EPS)           # (32,)
    bn_shift = p["beta"] - p["running_mean"] * bn_scale
    w_c1 = (p["w_c1"] * bn_scale[None, None, :]).reshape(9 * C_REDUCE, C_HEAD)
    b_c1 = (p["b_c1"] * bn_scale + bn_shift).reshape(1, C_HEAD)
    w_out = jnp.zeros((C_HEAD, NUM_OUT_PAD), jnp.float32).at[:, :NUM_OUT].set(p["w_out"])
    b_out = jnp.zeros((1, NUM_OUT_PAD), jnp.float32).at[0, :NUM_OUT].set(p["b_out"])
    return dict(
        w_red=p["w_red"].astype(jnp.bfloat16),
        b_red=p["b_red"].reshape(1, C_REDUCE),
        w_c1=w_c1, b_c1=b_c1,
        w_fc1=p["w_fc1"], w_fc2=p["w_fc2"],
        w_out=w_out, b_out=b_out)


def yolo_face_detector(features_nhwc, params):
    """features_nhwc: (B, H, W, 960) float32 -> NCHW (B, 90, H, W) float32."""
    B, H, W, C = features_nhwc.shape
    assert C == C_BACKBONE
    kp = _prepare_params(params)
    feat = features_nhwc.astype(jnp.bfloat16)   # halve HBM traffic of the dominant input

    def full_spec(arr):
        nd = arr.ndim
        return pl.BlockSpec(arr.shape, lambda b, _n=nd: (0,) * _n)

    grid_spec = pltpu.PrefetchScalarGridSpec(
        num_scalar_prefetch=0,
        grid=(B,),
        in_specs=[
            pl.BlockSpec((1, H, W, C), lambda b: (b, 0, 0, 0)),
            full_spec(kp["w_red"]), full_spec(kp["b_red"]),
            full_spec(kp["w_c1"]), full_spec(kp["b_c1"]),
            full_spec(kp["w_fc1"]), full_spec(kp["w_fc2"]),
            full_spec(kp["w_out"]), full_spec(kp["b_out"]),
        ],
        out_specs=pl.BlockSpec((1, H, W, NUM_OUT_PAD), lambda b: (b, 0, 0, 0)),
    )

    out_nhwc = pl.pallas_call(
        _yolo_head_kernel,
        out_shape=jax.ShapeDtypeStruct((B, H, W, NUM_OUT_PAD), jnp.float32),
        grid_spec=grid_spec,
        compiler_params=pltpu.CompilerParams(dimension_semantics=("parallel",)),
    )(feat, kp["w_red"], kp["b_red"], kp["w_c1"], kp["b_c1"],
      kp["w_fc1"], kp["w_fc2"], kp["w_out"], kp["b_out"])

    # strip lane padding, match PyTorch NCHW output convention
    return jnp.transpose(out_nhwc[..., :NUM_OUT], (0, 3, 1, 2))


def init_params(key):
    ks = jax.random.split(key, 12)

    def u(k, shape, scale):
        return jax.random.uniform(k, shape, jnp.float32, -1.0, 1.0) * scale

    w_red = u(ks[0], (C_BACKBONE, C_REDUCE), 1.0 / np.sqrt(C_BACKBONE))
    b_red = u(ks[1], (C_REDUCE,), 0.1)
    # 3x3 conv weights stored as (kH*kW, Cin, Cout) for NHWC tap-matmuls.
    w_c1 = u(ks[2], (9, C_REDUCE, C_HEAD), 1.0 / np.sqrt(9 * C_REDUCE))
    b_c1 = u(ks[3], (C_HEAD,), 0.1)

    gamma = 1.0 + 0.1 * u(ks[4], (C_HEAD,), 1.0)
    beta = 0.1 * u(ks[5], (C_HEAD,), 1.0)
    running_mean = 0.1 * u(ks[6], (C_HEAD,), 1.0)
    running_var = 1.0 + 0.1 * jax.random.uniform(ks[7], (C_HEAD,), jnp.float32)

    w_fc1 = u(ks[8], (C_HEAD, SE_HIDDEN), 1.0 / np.sqrt(C_HEAD))
    w_fc2 = u(ks[9], (SE_HIDDEN, C_HEAD), 1.0 / np.sqrt(SE_HIDDEN))
    w_out = u(ks[10], (C_HEAD, NUM_OUT), 1.0 / np.sqrt(C_HEAD))
    b_out = u(ks[11], (NUM_OUT,), 0.1)

    return dict(w_red=w_red, b_red=b_red, w_c1=w_c1, b_c1=b_c1,
                gamma=gamma, beta=beta, running_mean=running_mean,
                running_var=running_var,
                w_fc1=w_fc1, w_fc2=w_fc2, w_out=w_out, b_out=b_out)


def reference(feat, p):
    """Pure-JAX reference of the same head (NHWC in, NCHW out), bf16 conv_reduce."""
    B, H, W, _ = feat.shape
    x = jnp.einsum("bhwc,co->bhwo", feat.astype(jnp.bfloat16),
                   p["w_red"].astype(jnp.bfloat16),
                   preferred_element_type=jnp.float32) + p["b_red"]
    xp = jnp.pad(x, ((0, 0), (1, 1), (1, 1), (0, 0)))
    acc = jnp.zeros((B, H, W, C_HEAD), jnp.float32)
    for dy in range(3):
        for dx in range(3):
            acc = acc + jnp.einsum("bhwc,co->bhwo",
                                   xp[:, dy:dy + H, dx:dx + W, :],
                                   p["w_c1"][dy * 3 + dx])
    acc = acc + p["b_c1"]
    bn_scale = p["gamma"] / jnp.sqrt(p["running_var"] + BN_EPS)
    bn_shift = p["beta"] - p["running_mean"] * bn_scale
    h = jnp.maximum(acc * bn_scale + bn_shift, 0.0)
    pooled = h.mean(axis=(1, 2))
    z = jnp.maximum(pooled @ p["w_fc1"], 0.0)
    s = 1.0 / (1.0 + jnp.exp(-(z @ p["w_fc2"])))
    h = h * s[:, None, None, :]
    out = jnp.einsum("bhwc,co->bhwo", h, p["w_out"]) + p["b_out"]
    return jnp.transpose(out, (0, 3, 1, 2))


if __name__ == "__main__":
    key = jax.random.PRNGKey(0)
    k_params, k_feat = jax.random.split(key)
    params = init_params(k_params)

    # TODO(synk): the pretrained torchvision MobileNetV3-Large backbone
    # (mobilenet.features) has no clean synthetic Pallas equivalent; we feed its
    # 960-channel output feature map directly instead of the raw NCHW image.
    B, H, W = 2, 8, 8
    features = jax.random.normal(k_feat, (B, H, W, C_BACKBONE), jnp.float32)

    out = jax.block_until_ready(yolo_face_detector(features, params))
    ref = jax.block_until_ready(reference(features, params))

    assert out.shape == (B, NUM_OUT, H, W)
    np.testing.assert_allclose(np.asarray(out), np.asarray(ref), rtol=1e-2, atol=1e-2)
    print("KERNEL_OK")
</pallas_src>

<mosaic_0001>
module attributes {stable_mosaic.version = 11 : i64} {
  func.func @_yolo_head_kernel(%arg0: i32, %arg1: memref<1x8x8x960xbf16, #tpu.memory_space<vmem>>, %arg2: memref<960x256xbf16, #tpu.memory_space<vmem>>, %arg3: memref<1x256xf32, #tpu.memory_space<vmem>>, %arg4: memref<2304x32xf32, #tpu.memory_space<vmem>>, %arg5: memref<1x32xf32, #tpu.memory_space<vmem>>, %arg6: memref<32x2xf32, #tpu.memory_space<vmem>>, %arg7: memref<2x32xf32, #tpu.memory_space<vmem>>, %arg8: memref<32x128xf32, #tpu.memory_space<vmem>>, %arg9: memref<1x128xf32, #tpu.memory_space<vmem>>, %arg10: memref<1x8x8x128xf32, #tpu.memory_space<vmem>>) attributes {dimension_semantics = [#tpu.dimension_semantics<parallel>], iteration_bounds = array<i64: 2>, scalar_prefetch = 0 : i64, scratch_operands = 0 : i64, tpu.core_type = #tpu.core_type<tc>, window_params = [{transform_indices = @transform_0, window_bounds = array<i64: 1, 8, 8, 960>}, {pipeline_mode = #tpu.pipeline_mode<synchronous>, transform_indices = @transform_1, window_bounds = array<i64: 960, 256>}, {pipeline_mode = #tpu.pipeline_mode<synchronous>, transform_indices = @transform_2, window_bounds = array<i64: 1, 256>}, {pipeline_mode = #tpu.pipeline_mode<synchronous>, transform_indices = @transform_3, window_bounds = array<i64: 2304, 32>}, {pipeline_mode = #tpu.pipeline_mode<synchronous>, transform_indices = @transform_4, window_bounds = array<i64: 1, 32>}, {pipeline_mode = #tpu.pipeline_mode<synchronous>, transform_indices = @transform_5, window_bounds = array<i64: 32, 2>}, {pipeline_mode = #tpu.pipeline_mode<synchronous>, transform_indices = @transform_6, window_bounds = array<i64: 2, 32>}, {pipeline_mode = #tpu.pipeline_mode<synchronous>, transform_indices = @transform_7, window_bounds = array<i64: 32, 128>}, {pipeline_mode = #tpu.pipeline_mode<synchronous>, transform_indices = @transform_8, window_bounds = array<i64: 1, 128>}, {transform_indices = @transform_9, window_bounds = array<i64: 1, 8, 8, 128>}]} {
    %c0 = arith.constant 0 : index
    %c0_0 = arith.constant 0 : index
    %c0_1 = arith.constant 0 : index
    %c0_2 = arith.constant 0 : index
    %0 = vector.load %arg1[%c0, %c0_0, %c0_1, %c0_2] : memref<1x8x8x960xbf16, #tpu.memory_space<vmem>>, vector<1x8x8x960xbf16>
    %1 = vector.shape_cast %0 : vector<1x8x8x960xbf16> to vector<8x8x960xbf16>
    %2 = vector.shape_cast %1 : vector<8x8x960xbf16> to vector<64x960xbf16>
    %c0_3 = arith.constant 0 : index
    %c0_4 = arith.constant 0 : index
    %3 = vector.load %arg2[%c0_3, %c0_4] : memref<960x256xbf16, #tpu.memory_space<vmem>>, vector<960x256xbf16>
    %cst = arith.constant dense<0.000000e+00> : vector<64x256xf32>
    %4 = tpu.matmul %2, %3, %cst {dimension_numbers = #tpu.dot_dimension_numbers<[1], [0], [0], [1], [0, 0, 1, 1], [], []>} : vector<64x960xbf16>, vector<960x256xbf16>, vector<64x256xf32> -> vector<64x256xf32>
    %c0_5 = arith.constant 0 : index
    %c0_6 = arith.constant 0 : index
    %5 = vector.load %arg3[%c0_5, %c0_6] : memref<1x256xf32, #tpu.memory_space<vmem>>, vector<1x256xf32>
    %6 = vector.broadcast %5 : vector<1x256xf32> to vector<64x256xf32>
    %7 = arith.addf %4, %6 : vector<64x256xf32>
    %8 = tpu.iota {dimensions = array<i32: 0>} : vector<8x8x256xi32>
    %9 = vector.shape_cast %8 : vector<8x8x256xi32> to vector<64x256xi32>
    %10 = tpu.iota {dimensions = array<i32: 1>} : vector<8x8x256xi32>
    %11 = vector.shape_cast %10 : vector<8x8x256xi32> to vector<64x256xi32>
    %c9_i32 = arith.constant 9 : i32
    %12 = tpu.dynamic_rotate %7 by %c9_i32 dim 0 : vector<64x256xf32>, i32 -> vector<64x256xf32>
    %c0_i32 = arith.constant 0 : i32
    %13 = vector.broadcast %c0_i32 : i32 to vector<64x256xi32>
    %14 = arith.cmpi ne, %9, %13 : vector<64x256xi32>
    %c0_i32_7 = arith.constant 0 : i32
    %15 = vector.broadcast %c0_i32_7 : i32 to vector<64x256xi32>
    %16 = arith.cmpi ne, %11, %15 : vector<64x256xi32>
    %17 = arith.andi %14, %16 : vector<64x256xi1>
    %cst_8 = arith.constant 0.000000e+00 : f32
    %18 = vector.broadcast %cst_8 : f32 to vector<64x256xf32>
    %19 = arith.select %17, %12, %18 : vector<64x256xi1>, vector<64x256xf32>
    %c8_i32 = arith.constant 8 : i32
    %20 = tpu.dynamic_rotate %7 by %c8_i32 dim 0 : vector<64x256xf32>, i32 -> vector<64x256xf32>
    %c0_i32_9 = arith.constant 0 : i32
    %21 = vector.broadcast %c0_i32_9 : i32 to vector<64x256xi32>
    %22 = arith.cmpi ne, %9, %21 : vector<64x256xi32>
    %cst_10 = arith.constant 0.000000e+00 : f32
    %23 = vector.broadcast %cst_10 : f32 to vector<64x256xf32>
    %24 = arith.select %22, %20, %23 : vector<64x256xi1>, vector<64x256xf32>
    %c7_i32 = arith.constant 7 : i32
    %25 = tpu.dynamic_rotate %7 by %c7_i32 dim 0 : vector<64x256xf32>, i32 -> vector<64x256xf32>
    %c0_i32_11 = arith.constant 0 : i32
    %26 = vector.broadcast %c0_i32_11 : i32 to vector<64x256xi32>
    %27 = arith.cmpi ne, %9, %26 : vector<64x256xi32>
    %c7_i32_12 = arith.constant 7 : i32
    %28 = vector.broadcast %c7_i32_12 : i32 to vector<64x256xi32>
    %29 = arith.cmpi ne, %11, %28 : vector<64x256xi32>
    %30 = arith.andi %27, %29 : vector<64x256xi1>
    %cst_13 = arith.constant 0.000000e+00 : f32
    %31 = vector.broadcast %cst_13 : f32 to vector<64x256xf32>
    %32 = arith.select %30, %25, %31 : vector<64x256xi1>, vector<64x256xf32>
    %c1_i32 = arith.constant 1 : i32
    %33 = tpu.dynamic_rotate %7 by %c1_i32 dim 0 : vector<64x256xf32>, i32 -> vector<64x256xf32>
    %c0_i32_14 = arith.constant 0 : i32
    %34 = vector.broadcast %c0_i32_14 : i32 to vector<64x256xi32>
    %35 = arith.cmpi ne, %11, %34 : vector<64x256xi32>
    %cst_15 = arith.constant 0.000000e+00 : f32
    %36 = vector.broadcast %cst_15 : f32 to vector<64x256xf32>
    %37 = arith.select %35, %33, %36 : vector<64x256xi1>, vector<64x256xf32>
    %c63_i32 = arith.constant 63 : i32
    %38 = tpu.dynamic_rotate %7 by %c63_i32 dim 0 : vector<64x256xf32>, i32 -> vector<64x256xf32>
    %c7_i32_16 = arith.constant 7 : i32
    %39 = vector.broadcast %c7_i32_16 : i32 to vector<64x256xi32>
    %40 = arith.cmpi ne, %11, %39 : vector<64x256xi32>
    %cst_17 = arith.constant 0.000000e+00 : f32
    %41 = vector.broadcast %cst_17 : f32 to vector<64x256xf32>
    %42 = arith.select %40, %38, %41 : vector<64x256xi1>, vector<64x256xf32>
    %c57_i32 = arith.constant 57 : i32
    %43 = tpu.dynamic_rotate %7 by %c57_i32 dim 0 : vector<64x256xf32>, i32 -> vector<64x256xf32>
    %c7_i32_18 = arith.constant 7 : i32
    %44 = vector.broadcast %c7_i32_18 : i32 to vector<64x256xi32>
    %45 = arith.cmpi ne, %9, %44 : vector<64x256xi32>
    %c0_i32_19 = arith.constant 0 : i32
    %46 = vector.broadcast %c0_i32_19 : i32 to vector<64x256xi32>
    %47 = arith.cmpi ne, %11, %46 : vector<64x256xi32>
    %48 = arith.andi %45, %47 : vector<64x256xi1>
    %cst_20 = arith.constant 0.000000e+00 : f32
    %49 = vector.broadcast %cst_20 : f32 to vector<64x256xf32>
    %50 = arith.select %48, %43, %49 : vector<64x256xi1>, vector<64x256xf32>
    %c56_i32 = arith.constant 56 : i32
    %51 = tpu.dynamic_rotate %7 by %c56_i32 dim 0 : vector<64x256xf32>, i32 -> vector<64x256xf32>
    %c7_i32_21 = arith.constant 7 : i32
    %52 = vector.broadcast %c7_i32_21 : i32 to vector<64x256xi32>
    %53 = arith.cmpi ne, %9, %52 : vector<64x256xi32>
    %cst_22 = arith.constant 0.000000e+00 : f32
    %54 = vector.broadcast %cst_22 : f32 to vector<64x256xf32>
    %55 = arith.select %53, %51, %54 : vector<64x256xi1>, vector<64x256xf32>
    %c55_i32 = arith.constant 55 : i32
    %56 = tpu.dynamic_rotate %7 by %c55_i32 dim 0 : vector<64x256xf32>, i32 -> vector<64x256xf32>
    %c7_i32_23 = arith.constant 7 : i32
    %57 = vector.broadcast %c7_i32_23 : i32 to vector<64x256xi32>
    %58 = arith.cmpi ne, %9, %57 : vector<64x256xi32>
    %c7_i32_24 = arith.constant 7 : i32
    %59 = vector.broadcast %c7_i32_24 : i32 to vector<64x256xi32>
    %60 = arith.cmpi ne, %11, %59 : vector<64x256xi32>
    %61 = arith.andi %58, %60 : vector<64x256xi1>
    %cst_25 = arith.constant 0.000000e+00 : f32
    %62 = vector.broadcast %cst_25 : f32 to vector<64x256xf32>
    %63 = arith.select %61, %56, %62 : vector<64x256xi1>, vector<64x256xf32>
    %64 = tpu.concatenate %19, %24, %32, %37, %7, %42, %50, %55, %63 in 1 : vector<64x256xf32>, vector<64x256xf32>, vector<64x256xf32>, vector<64x256xf32>, vector<64x256xf32>, vector<64x256xf32>, vector<64x256xf32>, vector<64x256xf32>, vector<64x256xf32> -> vector<64x2304xf32>
    %c0_26 = arith.constant 0 : index
    %c0_27 = arith.constant 0 : index
    %65 = vector.load %arg4[%c0_26, %c0_27] : memref<2304x32xf32, #tpu.memory_space<vmem>>, vector<2304x32xf32>
    %cst_28 = arith.constant dense<0.000000e+00> : vector<64x32xf32>
    %66 = tpu.matmul %64, %65, %cst_28 {dimension_numbers = #tpu.dot_dimension_numbers<[1], [0], [0], [1], [0, 0, 1, 1], [], []>} : vector<64x2304xf32>, vector<2304x32xf32>, vector<64x32xf32> -> vector<64x32xf32>
    %c0_29 = arith.constant 0 : index
    %c0_30 = arith.constant 0 : index
    %67 = vector.load %arg5[%c0_29, %c0_30] : memref<1x32xf32, #tpu.memory_space<vmem>>, vector<1x32xf32>
    %68 = vector.broadcast %67 : vector<1x32xf32> to vector<64x32xf32>
    %69 = arith.addf %66, %68 : vector<64x32xf32>
    %cst_31 = arith.constant 0.000000e+00 : f32
    %70 = vector.broadcast %cst_31 : f32 to vector<64x32xf32>
    %71 = arith.maximumf %69, %70 : vector<64x32xf32>
    %cst_32 = arith.constant dense<0.000000e+00> : vector<32xf32>
    %72 = vector.multi_reduction <add>, %71, %cst_32 [0] : vector<64x32xf32> to vector<32xf32>
    %73 = vector.shape_cast %72 : vector<32xf32> to vector<1x32xf32>
    %cst_33 = arith.constant 6.400000e+01 : f32
    %74 = vector.broadcast %cst_33 : f32 to vector<1x32xf32>
    %75 = arith.divf %73, %74 : vector<1x32xf32>
    %c0_34 = arith.constant 0 : index
    %c0_35 = arith.constant 0 : index
    %76 = vector.load %arg6[%c0_34, %c0_35] : memref<32x2xf32, #tpu.memory_space<vmem>>, vector<32x2xf32>
    %cst_36 = arith.constant dense<0.000000e+00> : vector<1x2xf32>
    %77 = tpu.matmul %75, %76, %cst_36 {dimension_numbers = #tpu.dot_dimension_numbers<[1], [0], [0], [1], [0, 0, 1, 1], [], []>} : vector<1x32xf32>, vector<32x2xf32>, vector<1x2xf32> -> vector<1x2xf32>
    %cst_37 = arith.constant 0.000000e+00 : f32
    %78 = vector.broadcast %cst_37 : f32 to vector<1x2xf32>
    %79 = arith.maximumf %77, %78 : vector<1x2xf32>
    %c0_38 = arith.constant 0 : index
    %c0_39 = arith.constant 0 : index
    %80 = vector.load %arg7[%c0_38, %c0_39] : memref<2x32xf32, #tpu.memory_space<vmem>>, vector<2x32xf32>
    %cst_40 = arith.constant dense<0.000000e+00> : vector<1x32xf32>
    %81 = tpu.matmul %79, %80, %cst_40 {dimension_numbers = #tpu.dot_dimension_numbers<[1], [0], [0], [1], [0, 0, 1, 1], [], []>} : vector<1x2xf32>, vector<2x32xf32>, vector<1x32xf32> -> vector<1x32xf32>
    %cst_41 = arith.constant 0.000000e+00 : f32
    %82 = vector.broadcast %cst_41 : f32 to vector<1x32xf32>
    %83 = arith.subf %82, %81 : vector<1x32xf32>
    %84 = math.exp %83 : vector<1x32xf32>
    %cst_42 = arith.constant 1.000000e+00 : f32
    %85 = vector.broadcast %cst_42 : f32 to vector<1x32xf32>
    %86 = arith.addf %85, %84 : vector<1x32xf32>
    %87 = tpu.reciprocal %86 {approx = true} : vector<1x32xf32> -> vector<1x32xf32>
    %88 = vector.broadcast %87 : vector<1x32xf32> to vector<64x32xf32>
    %89 = arith.mulf %71, %88 : vector<64x32xf32>
    %c0_43 = arith.constant 0 : index
    %c0_44 = arith.constant 0 : index
    %90 = vector.load %arg8[%c0_43, %c0_44] : memref<32x128xf32, #tpu.memory_space<vmem>>, vector<32x128xf32>
    %cst_45 = arith.constant dense<0.000000e+00> : vector<64x128xf32>
    %91 = tpu.matmul %89, %90, %cst_45 {dimension_numbers = #tpu.dot_dimension_numbers<[1], [0], [0], [1], [0, 0, 1, 1], [], []>} : vector<64x32xf32>, vector<32x128xf32>, vector<64x128xf32> -> vector<64x128xf32>
    %c0_46 = arith.constant 0 : index
    %c0_47 = arith.constant 0 : index
    %92 = vector.load %arg9[%c0_46, %c0_47] : memref<1x128xf32, #tpu.memory_space<vmem>>, vector<1x128xf32>
    %93 = vector.broadcast %92 : vector<1x128xf32> to vector<64x128xf32>
    %94 = arith.addf %91, %93 : vector<64x128xf32>
    %95 = vector.shape_cast %94 : vector<64x128xf32> to vector<8x8x128xf32>
    %c0_48 = arith.constant 0 : index
    %c0_49 = arith.constant 0 : index
    %c0_50 = arith.constant 0 : index
    %c0_51 = arith.constant 0 : index
    %96 = vector.load %arg10[%c0_48, %c0_49, %c0_50, %c0_51] : memref<1x8x8x128xf32, #tpu.memory_space<vmem>>, vector<1x8x8x128xf32>
    %97 = vector.shape_cast %96 : vector<1x8x8x128xf32> to vector<8x8x128xf32>
    %98 = vector.shape_cast %95 : vector<8x8x128xf32> to vector<1x8x8x128xf32>
    tpu.vector_store %arg10[%c0_48, %c0_49, %c0_50, %c0_51], %98 {strides = array<i32>} : memref<1x8x8x128xf32, #tpu.memory_space<vmem>>, vector<1x8x8x128xf32>,
    return
  }
  func.func @transform_0(%arg0: i32) -> (i32, i32, i32, i32) {
    %c0_i32 = arith.constant 0 : i32
    %c0_i32_0 = arith.constant 0 : i32
    %c0_i32_1 = arith.constant 0 : i32
    %c0_i32_2 = arith.constant 0 : i32
    return %arg0, %c0_i32, %c0_i32_0, %c0_i32_1 : i32, i32, i32, i32
  }
  func.func @transform_1(%arg0: i32) -> (i32, i32) {
    %c0_i32 = arith.constant 0 : i32
    %c0_i32_0 = arith.constant 0 : i32
    %c0_i32_1 = arith.constant 0 : i32
    return %c0_i32, %c0_i32_0 : i32, i32
  }
  func.func @transform_2(%arg0: i32) -> (i32, i32) {
    %c0_i32 = arith.constant 0 : i32
    %c0_i32_0 = arith.constant 0 : i32
    %c0_i32_1 = arith.constant 0 : i32
    return %c0_i32, %c0_i32_0 : i32, i32
  }
  func.func @transform_3(%arg0: i32) -> (i32, i32) {
    %c0_i32 = arith.constant 0 : i32
    %c0_i32_0 = arith.constant 0 : i32
    %c0_i32_1 = arith.constant 0 : i32
    return %c0_i32, %c0_i32_0 : i32, i32
  }
  func.func @transform_4(%arg0: i32) -> (i32, i32) {
    %c0_i32 = arith.constant 0 : i32
    %c0_i32_0 = arith.constant 0 : i32
    %c0_i32_1 = arith.constant 0 : i32
    return %c0_i32, %c0_i32_0 : i32, i32
  }
  func.func @transform_5(%arg0: i32) -> (i32, i32) {
    %c0_i32 = arith.constant 0 : i32
    %c0_i32_0 = arith.constant 0 : i32
    %c0_i32_1 = arith.constant 0 : i32
    return %c0_i32, %c0_i32_0 : i32, i32
  }
  func.func @transform_6(%arg0: i32) -> (i32, i32) {
    %c0_i32 = arith.constant 0 : i32
    %c0_i32_0 = arith.constant 0 : i32
    %c0_i32_1 = arith.constant 0 : i32
    return %c0_i32, %c0_i32_0 : i32, i32
  }
  func.func @transform_7(%arg0: i32) -> (i32, i32) {
    %c0_i32 = arith.constant 0 : i32
    %c0_i32_0 = arith.constant 0 : i32
    %c0_i32_1 = arith.constant 0 : i32
    return %c0_i32, %c0_i32_0 : i32, i32
  }
  func.func @transform_8(%arg0: i32) -> (i32, i32) {
    %c0_i32 = arith.constant 0 : i32
    %c0_i32_0 = arith.constant 0 : i32
    %c0_i32_1 = arith.constant 0 : i32
    return %c0_i32, %c0_i32_0 : i32, i32
  }
  func.func @transform_9(%arg0: i32) -> (i32, i32, i32, i32) {
    %c0_i32 = arith.constant 0 : i32
    %c0_i32_0 = arith.constant 0 : i32
    %c0_i32_1 = arith.constant 0 : i32
    %c0_i32_2 = arith.constant 0 : i32
    return %arg0, %c0_i32, %c0_i32_0, %c0_i32_1 : i32, i32, i32, i32
  }
}

</mosaic_0001>

<bundles_post_ra>
// kernel: tpu_custom_call.1
= control target key start
LH: loop header
LB: loop body
LE: loop exit
PB: predicated region body
PF: predicated region fallthrough
CT: control target
= control target key end

     0   :  { %14 = vsyncpa [#allocation3], 0  ;;  %s7126_s0 = inlined_call_operand.vmem [shape: bf16[2,8,8,960], index: 0, kind: input, shape index: {}]   ;;  %s7127_s1 = inlined_call_operand.vmem [shape: bf16[960,256], index: 1, kind: input, shape index: {}]   ;;  %s7128_s2 = inlined_call_operand.vmem [shape: f32[1,256], index: 2, kind: input, shape index: {}]   ;;  %s7129_s3 = inlined_call_operand.vmem [shape: f32[2304,32], index: 3, kind: input, shape index: {}]   ;;  %s7130_s4 = inlined_call_operand.vmem [shape: f32[1,32], index: 4, kind: input, shape index: {}]   ;;  %s7131_s5 = inlined_call_operand.vmem [shape: f32[32,2], index: 5, kind: input, shape index: {}]   ;;  %s7132_s6 = inlined_call_operand.vmem [shape: f32[2,32], index: 6, kind: input, shape index: {}]   ;;  %s7133_s7 = inlined_call_operand.vmem [shape: f32[32,128], index: 7, kind: input, shape index: {}]   ;;  %s7134_s8 = inlined_call_operand.vmem [shape: f32[1,128], index: 8, kind: input, shape index: {}]   ;;  %s7135_s9 = inlined_call_operand.hbm [shape: f32[2,8,8,128], index: 9, kind: output, shape index: {}]  }
   0x1   :  { %16 = vsyncpa [#allocation3 + $0x1], 0  ;;  %s4213_s30 = smov 0   ;;  %s4215_s10 = smov 0  }
   0x2   :  { %s4217_s11 = smov 0   ;;  %s4219_s12 = smov 0  }
   0x3 LB: > { %s4234_s13 = sadd.s32 4294967295, %s4157_s12   ;;  %s3123_s14 = sadd.s32 4294967294, %s4157_s12   ;;  %s4157_s12 = sphi %s4219_s12, %s7141_s12   ;;  %s4153_s11 = sphi %s4217_s11, %s7140_s11   ;;  %s4149_s10 = sphi %s4215_s10, %s7139_s10   ;;  %s4145_s30 = sphi %s4213_s30, %s7138_s30  }
   0x4   : > { %s4238_s15 = sadd.s32 1, %s4157_s12   ;;  %s223_s16 = sadd.s32 1, %s4153_s11 }
   0x5   : > { %s220_s17 = ssub.s32 %s4157_s12, %s4238_s15  ;;  %p233_p0 = scmp.ne.s32.totalorder %s4153_s11, %s4149_s10 }
   0x6   : > { %p221_p1 = scmp.eq.s32.totalorder %s220_s17, 0  ;;  %p234_p2 = scmp.eq.s32.totalorder %s4234_s13, 1 }
   0x7   : > { %p239_p3 = scmp.ne.s32.totalorder %s4149_s10, %s4145_s30  ;;  %p240_p4 = scmp.eq.s32.totalorder %s3123_s14, 1 }
   0x8   : > { %s4249_s18 = scalar_select %p221_p1, %s4153_s11, %s223_s16  }
   0x9   : > { %p4251_p5 = por %p234_p2, %p233_p0  ;;  %p4255_p6 = por %p240_p4, %p239_p3 }
   0xa   : > { %p3126_p7 = scmp.ge.s32.totalorder %s4157_s12, 1  ;;  %p290_p8 = scmp.lt.s32.totalorder %s4157_s12, 3 }
   0xc   : > { %p291_p9 = pnand %p3126_p7, %p290_p8 }
   0xd   : > { %p326_p10 = scmp.lt.s32.totalorder (!%p291_p9), %s4234_s13, 1  ;;  %s323_s16 = sand.u32 (!%p291_p9), 1, %s4149_s10  }
   0xe   : > { %294 = sbr.rel (%p291_p9) target bundleno = 1400 (0x578), region = 56  ;;  %s3127_s17 = sshll.u32 (!%p291_p9), %s323_s16, 6 }
   0xf   : > { %s325_s24 = scalar_lea.vmem (!%p291_p9), [#allocation2], %s3127_s17  ;;  %s4003_s25 = sshll.u32 (!%p291_p9), %s4234_s13, 6 }
  0x10   : > { %s3058_s28 = sshll.u32 (!%p291_p9), %s325_s24, 4  ;;  %s3046_s29 = scalar_lea.sflag (!%p291_p9), [#allocation3], %s323_s16  ;;  %s3059_s28 = int_to_ptr.vmem [resolvable:$true] %s3058_s28 }
  0x13   : > { %v3316_v0 = vld [vmem:[%s7127_s1 + $0x70] sm:$0xf]  ;;  %v3898_v1 = vld [vmem:[%s7127_s1 + $0x74] sm:$0xf0]  ;;  %v3308_v9 = vld [vmem:[%s7127_s1 + $0x60] sm:$0xf] }
  0x14   : > { %v3444_v2 = vld [vmem:[%s7127_s1 + $0x170] sm:$0xf]  ;;  %v3317_v3 = vor.u32 %v3898_v1, %v3316_v0  ;;  %v3930_v4 = vld [vmem:[%s7127_s1 + $0x174] sm:$0xf0]  ;;  %v3896_v10 = vld [vmem:[%s7127_s1 + $0x64] sm:$0xf0] }
  0x15   : > { %v3380_v5 = vld [vmem:[%s7127_s1 + $0xf0] sm:$0xf]  ;;  %v3914_v6 = vld [vmem:[%s7127_s1 + $0xf4] sm:$0xf0]  ;;  %v3445_v7 = vor.u32 %v3930_v4, %v3444_v2  ;;  %v3436_v11 = vld [vmem:[%s7127_s1 + $0x160] sm:$0xf]  ;;  %v3309_v12 = vor.u32 %v3896_v10, %v3308_v9 }
  0x16   : > { %v3381_v8 = vor.u32 %v3914_v6, %v3380_v5  ;;  %1259 = vmatpush.bf16.msra.mxu0 %v3317_v3  ;;  %v3928_v13 = vld [vmem:[%s7127_s1 + $0x164] sm:$0xf0]  ;;  %v3372_v14 = vld [vmem:[%s7127_s1 + $0xe0] sm:$0xf]  ;;  %v3300_v17 = vld [vmem:[%s7127_s1 + $0x50] sm:$0xf] }
  0x17   : > { %v3912_v15 = vld [vmem:[%s7127_s1 + $0xe4] sm:$0xf0]  ;;  %1317 = vmatpush.bf16.msra.mxu2 %v3445_v7  ;;  %4004 = vmatpush.bf16.msra.mxu3 %v3445_v7  ;;  %v3437_v16 = vor.u32 %v3928_v13, %v3436_v11  ;;  %v3894_v18 = vld [vmem:[%s7127_s1 + $0x54] sm:$0xf0]  ;;  %v3428_v20 = vld [vmem:[%s7127_s1 + $0x150] sm:$0xf] }
  0x18   : > { %1288 = vmatpush.bf16.msra.mxu1 %v3381_v8  ;;  %v3373_v19 = vor.u32 %v3912_v15, %v3372_v14  ;;  %v3926_v21 = vld [vmem:[%s7127_s1 + $0x154] sm:$0xf0]  ;;  %v3364_v22 = vld [vmem:[%s7127_s1 + $0xd0] sm:$0xf]  ;;  %v3301_v24 = vor.u32 %v3894_v18, %v3300_v17  ;;  %v3292_v26 = vld [vmem:[%s7127_s1 + $0x40] sm:$0xf] }
  0x19   : > { %v3910_v23 = vld [vmem:[%s7127_s1 + $0xd4] sm:$0xf0]  ;;  %v3429_v25 = vor.u32 %v3926_v21, %v3428_v20  ;;  %v3892_v27 = vld [vmem:[%s7127_s1 + $0x44] sm:$0xf0]  ;;  %v3420_v29 = vld [vmem:[%s7127_s1 + $0x140] sm:$0xf] }
  0x1a   : > { %1260 = vmatpush.bf16.msra.mxu0 %v3309_v12  ;;  %v3365_v28 = vor.u32 %v3910_v23, %v3364_v22  ;;  %v3924_v30 = vld [vmem:[%s7127_s1 + $0x144] sm:$0xf0]  ;;  %v3356_v31 = vld [vmem:[%s7127_s1 + $0xc0] sm:$0xf]  ;;  %v3293_v33 = vor.u32 %v3892_v27, %v3292_v26  ;;  %v3284_v35 = vld [vmem:[%s7127_s1 + $0x30] sm:$0xf] }
  0x1b   : > { %1318 = vmatpush.bf16.msra.mxu2 %v3437_v16  ;;  %4005 = vmatpush.bf16.msra.mxu3 %v3437_v16  ;;  %v3908_v32 = vld [vmem:[%s7127_s1 + $0xc4] sm:$0xf0]  ;;  %v3421_v34 = vor.u32 %v3924_v30, %v3420_v29  ;;  %v3890_v36 = vld [vmem:[%s7127_s1 + $0x34] sm:$0xf0]  ;;  %v3412_v38 = vld [vmem:[%s7127_s1 + $0x130] sm:$0xf] }
  0x1c   : > { %1289 = vmatpush.bf16.msra.mxu1 %v3373_v19  ;;  %v3357_v37 = vor.u32 %v3908_v32, %v3356_v31  ;;  %v3922_v39 = vld [vmem:[%s7127_s1 + $0x134] sm:$0xf0]  ;;  %v3348_v40 = vld [vmem:[%s7127_s1 + $0xb0] sm:$0xf]  ;;  %v3285_v42 = vor.u32 %v3890_v36, %v3284_v35  ;;  %v3276_v44 = vld [vmem:[%s7127_s1 + $0x20] sm:$0xf] }
  0x1d   : > { %v3906_v41 = vld [vmem:[%s7127_s1 + $0xb4] sm:$0xf0]  ;;  %v3413_v43 = vor.u32 %v3922_v39, %v3412_v38  ;;  %v3888_v45 = vld [vmem:[%s7127_s1 + $0x24] sm:$0xf0]  ;;  %v3404_v47 = vld [vmem:[%s7127_s1 + $0x120] sm:$0xf] }
  0x1e   : > { %1261 = vmatpush.bf16.msra.mxu0 %v3301_v24  ;;  %v3349_v46 = vor.u32 %v3906_v41, %v3348_v40  ;;  %v3920_v48 = vld [vmem:[%s7127_s1 + $0x124] sm:$0xf0]  ;;  %v3340_v49 = vld [vmem:[%s7127_s1 + $0xa0] sm:$0xf]  ;;  %s327_s21 = scalar_select %p326_p10, %s4234_s13, 1  ;;  %v3277_v51 = vor.u32 %v3888_v45, %v3276_v44  ;;  %vm1246_vm0 = vcmask 523264  }
  0x1f   : > { %1319 = vmatpush.bf16.msra.mxu2 %v3429_v25  ;;  %4006 = vmatpush.bf16.msra.mxu3 %v3429_v25  ;;  %v3904_v50 = vld [vmem:[%s7127_s1 + $0xa4] sm:$0xf0]  ;;  %v3405_v52 = vor.u32 %v3920_v48, %v3404_v47  ;;  %v3268_v53 = vld [vmem:[%s7127_s1 + $0x10] sm:$0xf]  ;;  %v3886_v54 = vld [vmem:[%s7127_s1 + $0x14] sm:$0xf0] }
  0x20   : > { %1290 = vmatpush.bf16.msra.mxu1 %v3365_v28  ;;  %v3341_v55 = vor.u32 %v3904_v50, %v3340_v49  ;;  %v3396_v56 = vld [vmem:[%s7127_s1 + $0x110] sm:$0xf]  ;;  %v3918_v57 = vld [vmem:[%s7127_s1 + $0x114] sm:$0xf0]  ;;  %s3850_s14 = sshll.u32 %s327_s21, 8  ;;  %v3269_v60 = vor.u32 %v3886_v54, %v3268_v53  ;;  %vm2863_vm5 = vcmask 261120   ;;  %s3057_s21 = scalar_lea.hbm %s7135_s9, %s4003_s25 }
  0x21   : > { %v3332_v58 = vld [vmem:[%s7127_s1 + $0x90] sm:$0xf]  ;;  %v3902_v59 = vld [vmem:[%s7127_s1 + $0x94] sm:$0xf0]  ;;  %v3260_v61 = vld [vmem:[%s7127_s1] sm:$0xf]  ;;  %v3397_v62 = vor.u32 %v3918_v57, %v3396_v56  ;;  %s4404_s23 = scalar_lea.vmem %s7126_s0, %s3850_s14 }
  0x22   : > { %1262 = vmatpush.bf16.msra.mxu0 %v3293_v33  ;;  %v3884_v63 = vld [vmem:[%s7127_s1 + $0x4] sm:$0xf0]  ;;  %v3388_v0 = vld [vmem:[%s7127_s1 + $0x100] sm:$0xf]  ;;  %v3333_v2 = vor.u32 %v3902_v59, %v3332_v58  ;;  %v3508_v5 = vld [vmem:[%s7127_s1 + $0x1f0] sm:$0xf] }
  0x23   : > { %1320 = vmatpush.bf16.msra.mxu2 %v3421_v34  ;;  %4007 = vmatpush.bf16.msra.mxu3 %v3421_v34  ;;  %v3916_v1 = vld [vmem:[%s7127_s1 + $0x104] sm:$0xf0]  ;;  %v3324_v3 = vld [vmem:[%s7127_s1 + $0x80] sm:$0xf]  ;;  %v3946_v6 = vld [vmem:[%s7127_s1 + $0x1f4] sm:$0xf0]  ;;  %v3261_v9 = vor.u32 %v3884_v63, %v3260_v61 }
  0x24   : > { %1291 = vmatpush.bf16.msra.mxu1 %v3357_v37  ;;  %v3900_v4 = vld [vmem:[%s7127_s1 + $0x84] sm:$0xf0]  ;;  %v3700_v7 = vld [vmem:[%s7127_s1 + $0x370] sm:$0xf]  ;;  %v3994_v8 = vld [vmem:[%s7127_s1 + $0x374] sm:$0xf0]  ;;  %v3389_v13 = vor.u32 %v3916_v1, %v3388_v0  ;;  %v3509_v18 = vor.u32 %v3946_v6, %v3508_v5 }
  0x25   : > { %v3132_v10 = vld [vmem:[%s4404_s23] sm:$0xf]  ;;  %v3140_v12 = vld [vmem:[%s4404_s23 + $0x8] sm:$0xf]  ;;  %v3325_v17 = vor.u32 %v3900_v4, %v3324_v3  ;;  %v3851_v19 = vld [vmem:[%s4404_s23 + $0x4] sm:$0xf]  ;;  %v3701_v22 = vor.u32 %v3994_v8, %v3700_v7 }
  0x26   : > { %1263 = vmatpush.bf16.msra.mxu0 %v3285_v42  ;;  %v3855_v11 = vld [vmem:[%s4404_s23 + $0x1c] sm:$0xf0]  ;;  %v3856_v14 = vld [vmem:[%s4404_s23 + $0x24] sm:$0xf0]  ;;  %v3134_v20 = vld [vmem:[%s4404_s23 + $0x20] sm:$0xf0] }
  0x27   : > { %1321 = vmatpush.bf16.msra.mxu2 %v3413_v43  ;;  %4008 = vmatpush.bf16.msra.mxu3 %v3413_v43  ;;  %v3204_v15 = vld [vmem:[%s4404_s23 + $0x88] sm:$0xf]  ;;  %v4432_v21 = vor.u32 %v3855_v11, %v3132_v10  ;;  %v3500_v23 = vld [vmem:[%s7127_s1 + $0x1e0] sm:$0xf]  ;;  %v4440_v25 = vor.u32 %v3856_v14, %v3140_v12  ;;  %v4450_v29 = vor.u32 %v3851_v19, %v3134_v20  ;;  %v3492_v31 = vld [vmem:[%s7127_s1 + $0x1d0] sm:$0xf] }
  0x28   : > { %1292 = vmatpush.bf16.msra.mxu1 %v3349_v46  ;;  %v3872_v16 = vld [vmem:[%s4404_s23 + $0xa4] sm:$0xf0]  ;;  %v3692_v27 = vld [vmem:[%s7127_s1 + $0x360] sm:$0xf]  ;;  %v3942_v33 = vld [vmem:[%s7127_s1 + $0x1d4] sm:$0xf0] }
  0x29   : > { %v3944_v24 = vld [vmem:[%s7127_s1 + $0x1e4] sm:$0xf0]  ;;  %v4442_v26 = vor.u32 %v3872_v16, %v3204_v15  ;;  %v3572_v34 = vld [vmem:[%s7127_s1 + $0x270] sm:$0xf]  ;;  %v3962_v35 = vld [vmem:[%s7127_s1 + $0x274] sm:$0xf0]  ;;  %v3493_v41 = vor.u32 %v3942_v33, %v3492_v31 }
  0x2a   : > { %1264 = vmatpush.bf16.msra.mxu0 %v3277_v51  ;;  %v3992_v28 = vld [vmem:[%s7127_s1 + $0x364] sm:$0xf0]  ;;  %v3501_v30 = vor.u32 %v3944_v24, %v3500_v23  ;;  %v3684_v36 = vld [vmem:[%s7127_s1 + $0x350] sm:$0xf]  ;;  %v3990_v37 = vld [vmem:[%s7127_s1 + $0x354] sm:$0xf0]  ;;  %v3573_v38 = vor.u32 %v3962_v35, %v3572_v34 }
  0x2b   : > { %1322 = vmatpush.bf16.msra.mxu2 %v3405_v52  ;;  %4009 = vmatpush.bf16.msra.mxu3 %v3405_v52  ;;  %v3693_v32 = vor.u32 %v3992_v28, %v3692_v27  ;;  %v3484_v39 = vld [vmem:[%s7127_s1 + $0x1c0] sm:$0xf]  ;;  %v3940_v40 = vld [vmem:[%s7127_s1 + $0x1c4] sm:$0xf0]  ;;  %v3636_v43 = vld [vmem:[%s7127_s1 + $0x2f0] sm:$0xf]  ;;  %v3685_v46 = vor.u32 %v3990_v37, %v3684_v36 }
  0x2c   : > { %1293 = vmatpush.bf16.msra.mxu1 %v3341_v55  ;;  %v3676_v42 = vld [vmem:[%s7127_s1 + $0x340] sm:$0xf]  ;;  %v3978_v44 = vld [vmem:[%s7127_s1 + $0x2f4] sm:$0xf0]  ;;  %v3960_v48 = vld [vmem:[%s7127_s1 + $0x264] sm:$0xf0]  ;;  %v3485_v58 = vor.u32 %v3940_v40, %v3484_v39 }
  0x2d   : > { %v3564_v45 = vld [vmem:[%s7127_s1 + $0x260] sm:$0xf]  ;;  %v3637_v47 = vor.u32 %v3978_v44, %v3636_v43  ;;  %v3976_v50 = vld [vmem:[%s7127_s1 + $0x2e4] sm:$0xf0]  ;;  %v3556_v53 = vld [vmem:[%s7127_s1 + $0x250] sm:$0xf] }
  0x2e   : > { %1265 = vmatpush.bf16.msra.mxu0 %v3269_v60  ;;  %v3628_v49 = vld [vmem:[%s7127_s1 + $0x2e0] sm:$0xf]  ;;  %v3988_v51 = vld [vmem:[%s7127_s1 + $0x344] sm:$0xf0]  ;;  %v3565_v52 = vor.u32 %v3960_v48, %v3564_v45  ;;  %v3958_v54 = vld [vmem:[%s7127_s1 + $0x254] sm:$0xf0] }
  0x2f   : > { %1323 = vmatpush.bf16.msra.mxu2 %v3397_v62  ;;  %4010 = vmatpush.bf16.msra.mxu3 %v3397_v62  ;;  %v3476_v55 = vld [vmem:[%s7127_s1 + $0x1b0] sm:$0xf]  ;;  %v3938_v56 = vld [vmem:[%s7127_s1 + $0x1b4] sm:$0xf0]  ;;  %v3629_v57 = vor.u32 %v3976_v50, %v3628_v49  ;;  %v3164_v59 = vld [vmem:[%s4404_s23 + $0x40] sm:$0xf]  ;;  %v3557_v61 = vor.u32 %v3958_v54, %v3556_v53  ;;  %v3677_v1 = vor.u32 %v3988_v51, %v3676_v42 }
  0x30   : > { %1294 = vmatpush.bf16.msra.mxu1 %v3333_v2  ;;  %v3863_v60 = vld [vmem:[%s4404_s23 + $0x5c] sm:$0xf0]  ;;  %v3620_v62 = vld [vmem:[%s7127_s1 + $0x2d0] sm:$0xf]  ;;  %v3974_v63 = vld [vmem:[%s7127_s1 + $0x2d4] sm:$0xf0]  ;;  %v3477_v10 = vor.u32 %v3938_v56, %v3476_v55 }
  0x31   : > { %v3548_v0 = vld [vmem:[%s7127_s1 + $0x240] sm:$0xf]  ;;  %v3956_v2 = vld [vmem:[%s7127_s1 + $0x244] sm:$0xf0]  ;;  %v3668_v4 = vld [vmem:[%s7127_s1 + $0x330] sm:$0xf]  ;;  %v4545_v15 = vor.u32 %v3863_v60, %v3164_v59 }
  0x32   : > { %1266 = vmatpush.bf16.msra.mxu0 %v3261_v9  ;;  %v3172_v3 = vld [vmem:[%s4404_s23 + $0x48] sm:$0xf]  ;;  %v3986_v5 = vld [vmem:[%s7127_s1 + $0x334] sm:$0xf0]  ;;  %v3621_v9 = vor.u32 %v3974_v63, %v3620_v62  ;;  %v3859_v11 = vld [vmem:[%s4404_s23 + $0x44] sm:$0xf]  ;;  %v3549_v14 = vor.u32 %v3956_v2, %v3548_v0 }
  0x33   : > { %1324 = vmatpush.bf16.msra.mxu2 %v3389_v13  ;;  %4011 = vmatpush.bf16.msra.mxu3 %v3389_v13  ;;  %v3864_v6 = vld [vmem:[%s4404_s23 + $0x64] sm:$0xf0]  ;;  %v3166_v12 = vld [vmem:[%s4404_s23 + $0x60] sm:$0xf0]  ;;  %v3468_v13 = vld [vmem:[%s7127_s1 + $0x1a0] sm:$0xf]  ;;  %v3669_v16 = vor.u32 %v3986_v5, %v3668_v4 }
  0x34   : > { %1295 = vmatpush.bf16.msra.mxu1 %v3325_v17  ;;  %v3236_v7 = vld [vmem:[%s4404_s23 + $0xc8] sm:$0xf]  ;;  %v4556_v20 = vor.u32 %v3864_v6, %v3172_v3  ;;  %v3660_v23 = vld [vmem:[%s7127_s1 + $0x320] sm:$0xf]  ;;  %v4566_v27 = vor.u32 %v3859_v11, %v3166_v12  ;;  %v3540_v31 = vld [vmem:[%s7127_s1 + $0x230] sm:$0xf] }
  0x35   : > { %1267 = vmatmul.bf16.vlgmr.msra.gmra.mxu0 %v4432_v21  ;;  %v3880_v8 = vld [vmem:[%s4404_s23 + $0xe4] sm:$0xf0]  ;;  %v3460_v34 = vld [vmem:[%s7127_s1 + $0x190] sm:$0xf]  ;;  %v3934_v35 = vld [vmem:[%s7127_s1 + $0x194] sm:$0xf0] }
  0x36   : > { %1325 = vmatmul.bf16.vlgmr.msra.gmra.mxu2 %v4440_v25  ;;  %1335 = vmatmul.bf16.vlgmr.msra.gmra.mxu3 %v4442_v26  ;;  %v3936_v17 = vld [vmem:[%s7127_s1 + $0x1a4] sm:$0xf0]  ;;  %v3652_v37 = vld [vmem:[%s7127_s1 + $0x310] sm:$0xf]  ;;  %v3970_v40 = vld [vmem:[%s7127_s1 + $0x2b4] sm:$0xf0]  ;;  %v3461_v43 = vor.u32 %v3934_v35, %v3460_v34 }
  0x37   : > { %1346 = vmatpush.bf16.msrb.mxu3 %v3509_v18  ;;  %1433 = vmatpush.bf16.msrb.mxu2 %v3701_v22  ;;  %v3612_v18 = vld [vmem:[%s7127_s1 + $0x2c0] sm:$0xf]  ;;  %v3972_v19 = vld [vmem:[%s7127_s1 + $0x2c4] sm:$0xf0]  ;;  %v4558_v22 = vor.u32 %v3880_v8, %v3236_v7  ;;  %v3469_v28 = vor.u32 %v3936_v17, %v3468_v13  ;;  %v3604_v39 = vld [vmem:[%s7127_s1 + $0x2b0] sm:$0xf] }
  0x38   : > { %1296 = vmatmul.bf16.vlgmr.msra.gmra.mxu1 %v4450_v29  ;;  %1375 = vmatpush.bf16.msrb.mxu0 %v3573_v38  ;;  %v3984_v24 = vld [vmem:[%s7127_s1 + $0x324] sm:$0xf0]  ;;  %v3982_v38 = vld [vmem:[%s7127_s1 + $0x314] sm:$0xf0]  ;;  %v3452_v44 = vld [vmem:[%s7127_s1 + $0x180] sm:$0xf] }
  0x39   : > { %1404 = vmatpush.bf16.msrb.mxu1 %v3637_v47  ;;  %v3661_v33 = vor.u32 %v3984_v24, %v3660_v23  ;;  %v3952_v42 = vld [vmem:[%s7127_s1 + $0x224] sm:$0xf0]  ;;  %v3653_v47 = vor.u32 %v3982_v38, %v3652_v37  ;;  %v3644_v48 = vld [vmem:[%s7127_s1 + $0x300] sm:$0xf]  ;;  %v3732_v53 = vld [vmem:[%s7127_s1 + $0x3b0] sm:$0xf] }
  0x3a   : > { %v3932_v45 = vld [vmem:[%s7127_s1 + $0x184] sm:$0xf0]  ;;  %v3596_v50 = vld [vmem:[%s7127_s1 + $0x2a0] sm:$0xf]  ;;  %v4002_v54 = vld [vmem:[%s7127_s1 + $0x3b4] sm:$0xf0] }
  0x3b   : > { %1347 = vmatpush.bf16.msrb.mxu3 %v3501_v30  ;;  %1434 = vmatpush.bf16.msrb.mxu2 %v3693_v32  ;;  %v3613_v30 = vor.u32 %v3972_v19, %v3612_v18  ;;  %v3954_v32 = vld [vmem:[%s7127_s1 + $0x234] sm:$0xf0]  ;;  %v3968_v51 = vld [vmem:[%s7127_s1 + $0x2a4] sm:$0xf0]  ;;  %v3524_v55 = vld [vmem:[%s7127_s1 + $0x210] sm:$0xf]  ;;  %v3733_v63 = vor.u32 %v4002_v54, %v3732_v53 }
  0x3c   : > { %1376 = vmatpush.bf16.msrb.mxu0 %v3565_v52  ;;  %v3541_v36 = vor.u32 %v3954_v32, %v3540_v31  ;;  %v3980_v52 = vld [vmem:[%s7127_s1 + $0x304] sm:$0xf0]  ;;  %v3950_v56 = vld [vmem:[%s7127_s1 + $0x214] sm:$0xf0]  ;;  %v3871_v59 = vld [vmem:[%s4404_s23 + $0x9c] sm:$0xf0]  ;;  %v3597_v60 = vor.u32 %v3968_v51, %v3596_v50 }
  0x3d   : > { %1405 = vmatpush.bf16.msrb.mxu1 %v3629_v57  ;;  %v3453_v57 = vor.u32 %v3932_v45, %v3452_v44  ;;  %v3852_v62 = vld [vmem:[%s4404_s23 + $0xc] sm:$0xf]  ;;  %v3588_v0 = vld [vmem:[%s7127_s1 + $0x290] sm:$0xf]  ;;  %v3724_v3 = vld [vmem:[%s7127_s1 + $0x3a0] sm:$0xf]  ;;  %v3525_v5 = vor.u32 %v3950_v56, %v3524_v55 }
  0x3e   : > { %v3142_v2 = vld [vmem:[%s4404_s23 + $0x28] sm:$0xf0]  ;;  %v4000_v4 = vld [vmem:[%s7127_s1 + $0x3a4] sm:$0xf0]  ;;  %v3156_v6 = vld [vmem:[%s4404_s23 + $0x18] sm:$0xf] }
  0x3f   : > { %1348 = vmatpush.bf16.msrb.mxu3 %v3493_v41  ;;  %1435 = vmatpush.bf16.msrb.mxu2 %v3685_v46  ;;  %v3532_v41 = vld [vmem:[%s7127_s1 + $0x220] sm:$0xf]  ;;  %v3605_v46 = vor.u32 %v3970_v40, %v3604_v39  ;;  %v3858_v7 = vld [vmem:[%s4404_s23 + $0x34] sm:$0xf0]  ;;  %v3867_v8 = vld [vmem:[%s4404_s23 + $0x84] sm:$0xf]  ;;  %v4666_v18 = vor.u32 %v3852_v62, %v3142_v2 }
  0x40   : > { %1377 = vmatpush.bf16.msrb.mxu0 %v3557_v61  ;;  %v3533_v49 = vor.u32 %v3952_v42, %v3532_v41  ;;  %v3645_v61 = vor.u32 %v3980_v52, %v3644_v48  ;;  %v3516_v11 = vld [vmem:[%s7127_s1 + $0x200] sm:$0xf]  ;;  %v3948_v12 = vld [vmem:[%s7127_s1 + $0x204] sm:$0xf0]  ;;  %v4668_v19 = vor.u32 %v3858_v7, %v3156_v6  ;;  %v3446_v31 = vld [vmem:[%s7127_s1 + $0x178] sm:$0xf0] }
  0x41   : > { %1406 = vmatpush.bf16.msrb.mxu1 %v3621_v9  ;;  %v3198_v9 = vld [vmem:[%s4404_s23 + $0xa0] sm:$0xf0]  ;;  %v3964_v17 = vld [vmem:[%s7127_s1 + $0x284] sm:$0xf0]  ;;  %v3517_v24 = vor.u32 %v3948_v12, %v3516_v11  ;;  %v3998_v34 = vld [vmem:[%s7127_s1 + $0x394] sm:$0xf0] }
  0x42   : > { %v4670_v23 = vor.u32 %v3867_v8, %v3198_v9  ;;  %v3438_v37 = vld [vmem:[%s7127_s1 + $0x168] sm:$0xf0]  ;;  %v3925_v39 = vld [vmem:[%s7127_s1 + $0x154] sm:$0xf]  ;;  %v3430_v40 = vld [vmem:[%s7127_s1 + $0x158] sm:$0xf0] }
  0x43   : > { %1349 = vmatpush.bf16.msrb.mxu3 %v3485_v58  ;;  %1436 = vmatpush.bf16.msrb.mxu2 %v3677_v1  ;;  %v3196_v58 = vld [vmem:[%s4404_s23 + $0x80] sm:$0xf]  ;;  %v3966_v1 = vld [vmem:[%s7127_s1 + $0x294] sm:$0xf0]  ;;  %v3433_v41 = vor.u32 %v3925_v39, %v3430_v40  ;;  %v3923_v42 = vld [vmem:[%s7127_s1 + $0x144] sm:$0xf] }
  0x44   : > { %1378 = vmatpush.bf16.msrb.mxu0 %v3549_v14  ;;  %v4658_v13 = vor.u32 %v3871_v59, %v3196_v58  ;;  %v3725_v14 = vor.u32 %v4000_v4, %v3724_v3  ;;  %v3228_v44 = vld [vmem:[%s4404_s23 + $0xc0] sm:$0xf]  ;;  %v3188_v48 = vld [vmem:[%s4404_s23 + $0x58] sm:$0xf]  ;;  %v3875_v50 = vld [vmem:[%s4404_s23 + $0xc4] sm:$0xf] }
  0x45   : > { %1272 = vmatmul.bf16.gmra.mxu0 %v4545_v15  ;;  %1407 = vmatpush.bf16.msrb.mxu1 %v3613_v30  ;;  %v3929_v30 = vld [vmem:[%s7127_s1 + $0x174] sm:$0xf]  ;;  %v3879_v45 = vld [vmem:[%s4404_s23 + $0xdc] sm:$0xf0]  ;;  %v3230_v51 = vld [vmem:[%s4404_s23 + $0xe0] sm:$0xf0] }
  0x46   : > { %1330 = vmatmul.bf16.gmra.mxu2 %v4556_v20  ;;  %1340 = vmatmul.bf16.gmra.mxu3 %v4558_v22  ;;  %v3449_v32 = vor.u32 %v3929_v30, %v3446_v31  ;;  %v4714_v53 = vor.u32 %v3879_v45, %v3228_v44  ;;  %v4720_v56 = vor.u32 %v3875_v50, %v3230_v51  ;;  %v3414_v58 = vld [vmem:[%s7127_s1 + $0x138] sm:$0xf0]  ;;  %v3917_v2 = vld [vmem:[%s7127_s1 + $0x114] sm:$0xf]  ;;  %v3390_v6 = vld [vmem:[%s7127_s1 + $0x108] sm:$0xf0] }
  0x47   : > { %1350 = vmatpush.bf16.msrb.mxu3 %v3477_v10  ;;  %1437 = vmatpush.bf16.msrb.mxu2 %v3669_v16  ;;  %v3589_v10 = vor.u32 %v3966_v1, %v3588_v0  ;;  %v3580_v16 = vld [vmem:[%s7127_s1 + $0x280] sm:$0xf]  ;;  %v3406_v0 = vld [vmem:[%s7127_s1 + $0x128] sm:$0xf0]  ;;  %v3398_v3 = vld [vmem:[%s7127_s1 + $0x118] sm:$0xf0] }
  0x48   : > { %1301 = vmatmul.bf16.gmra.mxu1 %v4566_v27  ;;  %1379 = vmatpush.bf16.msrb.mxu0 %v3541_v36  ;;  %v3927_v36 = vld [vmem:[%s7127_s1 + $0x164] sm:$0xf]  ;;  %v3401_v4 = vor.u32 %v3917_v2, %v3398_v3  ;;  %v3868_v7 = vld [vmem:[%s4404_s23 + $0x8c] sm:$0xf]  ;;  %v3148_v8 = vld [vmem:[%s4404_s23 + $0x10] sm:$0xf] }
  0x49   : > { %1408 = vmatpush.bf16.msrb.mxu1 %v3605_v46  ;;  %v3441_v38 = vor.u32 %v3927_v36, %v3438_v37  ;;  %v3860_v46 = vld [vmem:[%s4404_s23 + $0x4c] sm:$0xf]  ;;  %v3857_v9 = vld [vmem:[%s4404_s23 + $0x2c] sm:$0xf0]  ;;  %v3220_v11 = vld [vmem:[%s4404_s23 + $0x98] sm:$0xf] }
  0x4a   : > { %v3874_v12 = vld [vmem:[%s4404_s23 + $0xb4] sm:$0xf0]  ;;  %v3510_v36 = vld [vmem:[%s7127_s1 + $0x1f8] sm:$0xf0]  ;;  %v3913_v37 = vld [vmem:[%s7127_s1 + $0xf4] sm:$0xf] }
  0x4b   : > { %1351 = vmatpush.bf16.msrb.mxu3 %v3469_v28  ;;  %1438 = vmatpush.bf16.msrb.mxu2 %v3661_v33  ;;  %v3581_v28 = vor.u32 %v3964_v17, %v3580_v16  ;;  %v3716_v33 = vld [vmem:[%s7127_s1 + $0x390] sm:$0xf]  ;;  %v3150_v16 = vld [vmem:[%s4404_s23 + $0x30] sm:$0xf0]  ;;  %v4768_v30 = vor.u32 %v3874_v12, %v3220_v11  ;;  %v3382_v39 = vld [vmem:[%s7127_s1 + $0xf8] sm:$0xf0] }
  0x4c   : > { %1380 = vmatpush.bf16.msrb.mxu0 %v3533_v49  ;;  %v3717_v35 = vor.u32 %v3998_v34, %v3716_v33  ;;  %v3866_v49 = vld [vmem:[%s4404_s23 + $0x74] sm:$0xf0]  ;;  %v3318_v33 = vld [vmem:[%s7127_s1 + $0x78] sm:$0xf0]  ;;  %v3895_v40 = vld [vmem:[%s7127_s1 + $0x64] sm:$0xf] }
  0x4d   : > { %1409 = vmatpush.bf16.msrb.mxu1 %v3597_v60  ;;  %v4718_v55 = vor.u32 %v3866_v49, %v3188_v48  ;;  %v3708_v60 = vld [vmem:[%s7127_s1 + $0x380] sm:$0xf]  ;;  %v3911_v44 = vld [vmem:[%s7127_s1 + $0xe4] sm:$0xf]  ;;  %v3374_v45 = vld [vmem:[%s7127_s1 + $0xe8] sm:$0xf0] }
  0x4e   : > { %v3893_v48 = vld [vmem:[%s7127_s1 + $0x54] sm:$0xf]  ;;  %v3302_v49 = vld [vmem:[%s7127_s1 + $0x58] sm:$0xf0]  ;;  %v3377_v50 = vor.u32 %v3911_v44, %v3374_v45  ;;  %v3252_v2 = vld [vmem:[%s4404_s23 + $0xd8] sm:$0xf] }
  0x4f   : > { %1352 = vmatpush.bf16.msrb.mxu3 %v3461_v43  ;;  %1439 = vmatpush.bf16.msrb.mxu2 %v3653_v47  ;;  %v3422_v43 = vld [vmem:[%s7127_s1 + $0x148] sm:$0xf0]  ;;  %v3882_v3 = vld [vmem:[%s4404_s23 + $0xf4] sm:$0xf0]  ;;  %v3939_v44 = vld [vmem:[%s7127_s1 + $0x1c4] sm:$0xf] }
  0x50   : > { %1381 = vmatpush.bf16.msrb.mxu0 %v3525_v5  ;;  %v3174_v47 = vld [vmem:[%s4404_s23 + $0x68] sm:$0xf0]  ;;  %v3425_v52 = vor.u32 %v3923_v42, %v3422_v43  ;;  %v3915_v5 = vld [vmem:[%s7127_s1 + $0x104] sm:$0xf]  ;;  %v3385_v42 = vor.u32 %v3913_v37, %v3382_v39  ;;  %v4848_v11 = vor.u32 %v3882_v3, %v3252_v2  ;;  %v3350_v37 = vld [vmem:[%s7127_s1 + $0xb8] sm:$0xf0] }
  0x51   : > { %1410 = vmatpush.bf16.msrb.mxu1 %v3589_v10  ;;  %v4716_v54 = vor.u32 %v3860_v46, %v3174_v47  ;;  %v3206_v10 = vld [vmem:[%s4404_s23 + $0xa8] sm:$0xf0]  ;;  %v3393_v17 = vor.u32 %v3915_v5, %v3390_v6  ;;  %v3943_v46 = vld [vmem:[%s7127_s1 + $0x1e4] sm:$0xf]  ;;  %v3861_v5 = vld [vmem:[%s4404_s23 + $0x54] sm:$0xf] }
  0x52   : > { %v3502_v47 = vld [vmem:[%s7127_s1 + $0x1e8] sm:$0xf0]  ;;  %v3182_v6 = vld [vmem:[%s4404_s23 + $0x70] sm:$0xf0]  ;;  %vm2926_vm6 = vcmask 1041408   ;;  %vm2922_vm8 = vcmask 15360  }
  0x53   : > { %1353 = vmatpush.bf16.msrb.mxu3 %v3453_v57  ;;  %1440 = vmatpush.bf16.msrb.mxu2 %v3645_v61  ;;  %v3921_v57 = vld [vmem:[%s7127_s1 + $0x134] sm:$0xf]  ;;  %v3996_v61 = vld [vmem:[%s7127_s1 + $0x384] sm:$0xf0]  ;;  %v3505_v51 = vor.u32 %v3943_v46, %v3502_v47  ;;  %v4850_v12 = vor.u32 %v3861_v5, %v3182_v6  ;;  %v3278_v39 = vld [vmem:[%s7127_s1 + $0x28] sm:$0xf0] }
  0x54   : > { %1382 = vmatpush.bf16.msrb.mxu0 %v3517_v24  ;;  %v3417_v59 = vor.u32 %v3921_v57, %v3414_v58  ;;  %v3709_v62 = vor.u32 %v3996_v61, %v3708_v60  ;;  %v4764_v24 = vor.u32 %v3857_v9, %v3148_v8  ;;  %v3909_v57 = vld [vmem:[%s7127_s1 + $0xd4] sm:$0xf]  ;;  %v3366_v58 = vld [vmem:[%s7127_s1 + $0xd8] sm:$0xf0]  ;;  %v3294_v60 = vld [vmem:[%s7127_s1 + $0x48] sm:$0xf0] }
  0x55   : > { %1277 = vmatmul.bf16.gmra.mxu0 %v4658_v13  ;;  %1411 = vmatpush.bf16.msrb.mxu1 %v3581_v28  ;;  %v4766_v28 = vor.u32 %v3868_v7, %v3206_v10  ;;  %v3876_v61 = vld [vmem:[%s4404_s23 + $0xcc] sm:$0xf]  ;;  %v3907_v8 = vld [vmem:[%s7127_s1 + $0xc4] sm:$0xf]  ;;  %v3885_v46 = vld [vmem:[%s7127_s1 + $0x14] sm:$0xf] }
  0x56   : > { %1354 = vmatmul.bf16.vlgmr.msrb.gmra.mxu3 %v4666_v18  ;;  %1441 = vmatmul.bf16.vlgmr.msrb.gmra.mxu2 %v4668_v19  ;;  %v3358_v9 = vld [vmem:[%s7127_s1 + $0xc8] sm:$0xf0]  ;;  %v3270_v47 = vld [vmem:[%s7127_s1 + $0x18] sm:$0xf0]  ;;  %v3899_v5 = vld [vmem:[%s7127_s1 + $0x84] sm:$0xf] }
  0x57   : > { %1466 = vmatpush.bf16.msra.mxu3 %v3733_v63  ;;  %1549 = vmatpush.bf16.msra.mxu2 %v3449_v32  ;;  %v3919_v63 = vld [vmem:[%s7127_s1 + $0x124] sm:$0xf]  ;;  %v3897_v32 = vld [vmem:[%s7127_s1 + $0x74] sm:$0xf]  ;;  %v3486_v45 = vld [vmem:[%s7127_s1 + $0x1c8] sm:$0xf0] }
  0x58   : > { %1306 = vmatmul.bf16.gmra.mxu1 %v4670_v23  ;;  %v3409_v1 = vor.u32 %v3919_v63, %v3406_v0  ;;  %v3321_v34 = vor.u32 %v3897_v32, %v3318_v33  ;;  %v3865_v63 = vld [vmem:[%s4404_s23 + $0x6c] sm:$0xf0]  ;;  %v3369_v0 = vor.u32 %v3909_v57, %v3366_v58  ;;  %v3941_v33 = vld [vmem:[%s7127_s1 + $0x1d4] sm:$0xf]  ;;  %v3326_v6 = vld [vmem:[%s7127_s1 + $0x88] sm:$0xf0] }
  0x59   : > { %1520 = vmatpush.bf16.msra.mxu1 %v3385_v42  ;;  %v3903_v42 = vld [vmem:[%s7127_s1 + $0xa4] sm:$0xf]  ;;  %v3212_v57 = vld [vmem:[%s4404_s23 + $0x90] sm:$0xf]  ;;  %s3060_s14 = sshll.u32 %s3057_s21, 4  ;;  %s4115_s25 = scalar_lea.hbm %s7135_s9, 128  ;;  %s3061_s14 = int_to_ptr.hbm [resolvable:$true] %s3060_s14 }
  0x5a   : > { %1491 = vmatpush.bf16.msra.mxu0 %v3321_v34  ;;  %v3494_v34 = vld [vmem:[%s7127_s1 + $0x1d8] sm:$0xf0]  ;;  %v3873_v58 = vld [vmem:[%s4404_s23 + $0xac] sm:$0xf0]  ;;  %s4109_s17 = sshra.s32 %s3061_s14, 4  ;;  %s4110_s17 = int_to_ptr.hbm [resolvable:$true] %s4109_s17 }
  0x5b   : > { %1467 = vmatpush.bf16.msra.mxu3 %v3725_v14  ;;  %1550 = vmatpush.bf16.msra.mxu2 %v3441_v38  ;;  %v3853_v14 = vld [vmem:[%s4404_s23 + $0x14] sm:$0xf]  ;;  %v4916_v2 = vor.u32 %v3873_v58, %v3212_v57  ;;  %s4111_s13 = scalar_lea.hbm %s4110_s17, 64  ;;  %p4116_p0 = scmp.lt.s32.totalorder %s4110_s17, %s7135_s9 }
  0x5c   : > { %v4770_v31 = vor.u32 %v3853_v14, %v3150_v16  ;;  %v3361_v14 = vor.u32 %v3907_v8, %v3358_v9  ;;  %v3889_v16 = vld [vmem:[%s7127_s1 + $0x34] sm:$0xf]  ;;  %v3329_v9 = vor.u32 %v3899_v5, %v3326_v6  ;;  %v3654_v6 = vld [vmem:[%s7127_s1 + $0x318] sm:$0xf0]  ;;  %p4112_p11 = scmp.ne.s32.totalorder %s4110_s17, %s4111_s13  ;;  %p4117_p1 = scmp.lt.s32.totalorder %s4115_s25, %s4111_s13 }
  0x5d   : > { %1521 = vmatpush.bf16.msra.mxu1 %v3377_v50  ;;  %v3981_v5 = vld [vmem:[%s7127_s1 + $0x314] sm:$0xf] }
  0x5e   : > { %p4113_p12 = pnand %p4112_p11, %p4251_p5  ;;  %p4118_p2 = por %p4117_p1, %p4116_p0 }
  0x5f   : > { %1468 = vmatpush.bf16.msra.mxu3 %v3717_v35  ;;  %1551 = vmatpush.bf16.msra.mxu2 %v3433_v41  ;;  %v3945_v35 = vld [vmem:[%s7127_s1 + $0x1f4] sm:$0xf]  ;;  %v3310_v41 = vld [vmem:[%s7127_s1 + $0x68] sm:$0xf0] }
  0x60   : > { %v3513_v38 = vor.u32 %v3945_v35, %v3510_v36  ;;  %v3313_v43 = vor.u32 %v3895_v40, %v3310_v41  ;;  %v3905_v35 = vld [vmem:[%s7127_s1 + $0xb4] sm:$0xf]  ;;  %v3497_v36 = vor.u32 %v3941_v33, %v3494_v34  ;;  %v3478_v33 = vld [vmem:[%s7127_s1 + $0x1b8] sm:$0xf0]  ;;  %p4114_p13 = pneg %p4113_p12 }
  0x61   : > { %1522 = vmatpush.bf16.msra.mxu1 %v3369_v0  ;;  %v3353_v40 = vor.u32 %v3905_v35, %v3350_v37  ;;  %v3883_v0 = vld [vmem:[%s7127_s1 + $0x4] sm:$0xf]  ;;  %v3694_v35 = vld [vmem:[%s7127_s1 + $0x368] sm:$0xf0]  ;;  %v3989_v37 = vld [vmem:[%s7127_s1 + $0x354] sm:$0xf] }
  0x62   : > { %1492 = vmatpush.bf16.msra.mxu0 %v3313_v43  ;;  %v3342_v43 = vld [vmem:[%s7127_s1 + $0xa8] sm:$0xf0]  ;;  %p4119_p3 = pnand %p4118_p2, %p4114_p13 }
  0x63   : > { %1552 = vmatpush.bf16.msra.mxu2 %v3425_v52  ;;  %1469 = vmatpush.bf16.msra.mxu3 %v3709_v62  ;;  %v3305_v52 = vor.u32 %v3893_v48, %v3302_v49  ;;  %v3180_v62 = vld [vmem:[%s4404_s23 + $0x50] sm:$0xf]  ;;  %v3489_v48 = vor.u32 %v3939_v44, %v3486_v45  ;;  %v3273_v49 = vor.u32 %v3885_v46, %v3270_v47  ;;  %v3862_v45 = vld [vmem:[%s4404_s23 + $0x5c] sm:$0xf]  ;;  %v3877_v47 = vld [vmem:[%s4404_s23 + $0xd4] sm:$0xf] }
  0x64   : > { %v4838_v7 = vor.u32 %v3865_v63, %v3180_v62  ;;  %v3345_v50 = vor.u32 %v3903_v42, %v3342_v43  ;;  %v3214_v62 = vld [vmem:[%s4404_s23 + $0xb0] sm:$0xf0]  ;;  %v3244_v42 = vld [vmem:[%s4404_s23 + $0xd0] sm:$0xf]  ;;  %v3190_v46 = vld [vmem:[%s4404_s23 + $0x78] sm:$0xf0] }
  0x65   : > { %1282 = vmatmul.bf16.gmra.mxu0 %v4714_v53  ;;  %1523 = vmatpush.bf16.msra.mxu1 %v3361_v14  ;;  %v3993_v14 = vld [vmem:[%s7127_s1 + $0x374] sm:$0xf]  ;;  %v3881_v43 = vld [vmem:[%s4404_s23 + $0xec] sm:$0xf0]  ;;  %v4977_v57 = vor.u32 %v3862_v45, %v3190_v46  ;;  %v3959_v46 = vld [vmem:[%s7127_s1 + $0x264] sm:$0xf] }
  0x66   : > { %1359 = vmatmul.bf16.gmra.mxu3 %v4716_v54  ;;  %1446 = vmatmul.bf16.gmra.mxu2 %v4718_v55 }
  0x67   : > { %1553 = vmatpush.bf16.msra.mxu2 %v3417_v59  ;;  %1578 = vmatpush.bf16.msrb.mxu3 %v3513_v38  ;;  %v3891_v59 = vld [vmem:[%s7127_s1 + $0x44] sm:$0xf] }
  0x68   : > { %1311 = vmatmul.bf16.gmra.mxu1 %v4720_v56  ;;  %1493 = vmatpush.bf16.msra.mxu0 %v3305_v52  ;;  %v3887_v38 = vld [vmem:[%s7127_s1 + $0x24] sm:$0xf]  ;;  %v3334_v52 = vld [vmem:[%s7127_s1 + $0x98] sm:$0xf0] }
  0x69   : > { %v3281_v41 = vor.u32 %v3887_v38, %v3278_v39  ;;  %1524 = vmatpush.bf16.msra.mxu1 %v3353_v40  ;;  %v3686_v38 = vld [vmem:[%s7127_s1 + $0x358] sm:$0xf0]  ;;  %v3935_v39 = vld [vmem:[%s7127_s1 + $0x1a4] sm:$0xf]  ;;  %v3470_v40 = vld [vmem:[%s7127_s1 + $0x1a8] sm:$0xf0] }
  0x6a   : > { %v3473_v44 = vor.u32 %v3935_v39, %v3470_v40  ;;  %v3961_v39 = vld [vmem:[%s7127_s1 + $0x274] sm:$0xf]  ;;  %v3574_v40 = vld [vmem:[%s7127_s1 + $0x278] sm:$0xf0] }
  0x6b   : > { %1554 = vmatpush.bf16.msra.mxu2 %v3409_v1  ;;  %1579 = vmatpush.bf16.msrb.mxu3 %v3505_v51  ;;  %v3238_v1 = vld [vmem:[%s4404_s23 + $0xe8] sm:$0xf0]  ;;  %v3901_v51 = vld [vmem:[%s7127_s1 + $0x94] sm:$0xf] }
  0x6c   : > { %v4846_v10 = vor.u32 %v3876_v61, %v3238_v1  ;;  %v3869_v61 = vld [vmem:[%s4404_s23 + $0x94] sm:$0xf]  ;;  %v3337_v63 = vor.u32 %v3901_v51, %v3334_v52  ;;  %v3262_v1 = vld [vmem:[%s7127_s1 + $0x8] sm:$0xf0]  ;;  %v4975_v51 = vor.u32 %v3881_v43, %v3244_v42  ;;  %v3734_v43 = vld [vmem:[%s7127_s1 + $0x3b8] sm:$0xf0] }
  0x6d   : > { %1525 = vmatpush.bf16.msra.mxu1 %v3345_v50  ;;  %v3265_v3 = vor.u32 %v3883_v0, %v3262_v1  ;;  %v4926_v8 = vor.u32 %v3869_v61, %v3214_v62  ;;  %v3678_v50 = vld [vmem:[%s7127_s1 + $0x348] sm:$0xf0]  ;;  %v3933_v62 = vld [vmem:[%s7127_s1 + $0x194] sm:$0xf]  ;;  %v3983_v1 = vld [vmem:[%s7127_s1 + $0x324] sm:$0xf] }
  0x6e   : > { %v4001_v42 = vld [vmem:[%s7127_s1 + $0x3b4] sm:$0xf] }
  0x6f   : > { %1555 = vmatpush.bf16.msra.mxu2 %v3401_v4  ;;  %v3297_v4 = vor.u32 %v3891_v59, %v3294_v60  ;;  %1580 = vmatpush.bf16.msrb.mxu3 %v3497_v36  ;;  %v3854_v59 = vld [vmem:[%s4404_s23 + $0x1c] sm:$0xf] }
  0x70   : > { %v3158_v60 = vld [vmem:[%s4404_s23 + $0x38] sm:$0xf0] }
  0x71   : > { %1494 = vmatpush.bf16.msra.mxu0 %v3297_v4  ;;  %v4918_v4 = vor.u32 %v3854_v59, %v3158_v60  ;;  %1526 = vmatpush.bf16.msra.mxu1 %v3337_v63  ;;  %v3985_v59 = vld [vmem:[%s7127_s1 + $0x334] sm:$0xf]  ;;  %v3670_v60 = vld [vmem:[%s7127_s1 + $0x338] sm:$0xf0] }
  0x72   : > { %v3673_v61 = vor.u32 %v3985_v59, %v3670_v60  ;;  %v3462_v63 = vld [vmem:[%s7127_s1 + $0x198] sm:$0xf0]  ;;  %v3630_v59 = vld [vmem:[%s7127_s1 + $0x2e8] sm:$0xf0] }
  0x73   : > { %1556 = vmatpush.bf16.msra.mxu2 %v3393_v17  ;;  %v3286_v17 = vld [vmem:[%s7127_s1 + $0x38] sm:$0xf0]  ;;  %1581 = vmatpush.bf16.msrb.mxu3 %v3489_v48  ;;  %v3246_v48 = vld [vmem:[%s4404_s23 + $0xf0] sm:$0xf0]  ;;  %v3465_v0 = vor.u32 %v3933_v62, %v3462_v63 }
  0x74   : > { %v3289_v32 = vor.u32 %v3889_v16, %v3286_v17  ;;  %v3702_v16 = vld [vmem:[%s7127_s1 + $0x378] sm:$0xf0]  ;;  %v4979_v58 = vor.u32 %v3877_v47, %v3246_v48  ;;  %v3566_v47 = vld [vmem:[%s7127_s1 + $0x268] sm:$0xf0]  ;;  %v3957_v62 = vld [vmem:[%s7127_s1 + $0x254] sm:$0xf] }
  0x75   : > { %1383 = vmatmul.bf16.vlgmr.msrb.gmra.mxu0 %v4764_v24  ;;  %v3705_v17 = vor.u32 %v3993_v14, %v3702_v16  ;;  %1527 = vmatpush.bf16.msra.mxu1 %v3329_v9  ;;  %v3931_v9 = vld [vmem:[%s7127_s1 + $0x184] sm:$0xf]  ;;  %v3454_v14 = vld [vmem:[%s7127_s1 + $0x188] sm:$0xf0]  ;;  %v3657_v16 = vor.u32 %v3981_v5, %v3654_v6  ;;  %v3558_v63 = vld [vmem:[%s7127_s1 + $0x258] sm:$0xf0] }
  0x76   : > { %1364 = vmatmul.bf16.gmra.mxu3 %v4766_v28  ;;  %1451 = vmatmul.bf16.gmra.mxu2 %v4768_v30  ;;  %v3254_v5 = vld [vmem:[%s4404_s23 + $0xf8] sm:$0xf0] }
  0x77   : > { %1495 = vmatpush.bf16.msra.mxu0 %v3289_v32  ;;  %v3937_v32 = vld [vmem:[%s7127_s1 + $0x1b4] sm:$0xf]  ;;  %1665 = vmatpush.bf16.msrb.mxu2 %v3705_v17  ;;  %v3457_v17 = vor.u32 %v3931_v9, %v3454_v14  ;;  %v3955_v9 = vld [vmem:[%s7127_s1 + $0x244] sm:$0xf]  ;;  %v3550_v14 = vld [vmem:[%s7127_s1 + $0x248] sm:$0xf0] }
  0x78   : > { %1412 = vmatmul.bf16.vlgmr.msrb.gmra.mxu1 %v4770_v31  ;;  %v3481_v34 = vor.u32 %v3937_v32, %v3478_v33  ;;  %v3870_v32 = vld [vmem:[%s4404_s23 + $0x9c] sm:$0xf] }
  0x79   : > { %v3222_v33 = vld [vmem:[%s4404_s23 + $0xb8] sm:$0xf0] }
  0x7a   : > { %1582 = vmatpush.bf16.msrb.mxu3 %v3481_v34  ;;  %v3979_v34 = vld [vmem:[%s7127_s1 + $0x304] sm:$0xf] }
  0x7b   : > { %1496 = vmatpush.bf16.msra.mxu0 %v3281_v41  ;;  %v3689_v41 = vor.u32 %v3989_v37, %v3686_v38  ;;  %v5026_v37 = vor.u32 %v3870_v32, %v3222_v33  ;;  %v3553_v32 = vor.u32 %v3955_v9, %v3550_v14  ;;  %v3947_v14 = vld [vmem:[%s7127_s1 + $0x204] sm:$0xf] }
  0x7e   : > { %1583 = vmatpush.bf16.msrb.mxu3 %v3473_v44  ;;  %v3977_v44 = vld [vmem:[%s7127_s1 + $0x2f4] sm:$0xf] }
  0x7f   : > { %1497 = vmatpush.bf16.msra.mxu0 %v3273_v49  ;;  %v3987_v49 = vld [vmem:[%s7127_s1 + $0x344] sm:$0xf] }
  0x80   : > { %v3681_v52 = vor.u32 %v3987_v49, %v3678_v50 }
  0x82   : > { %1584 = vmatpush.bf16.msrb.mxu3 %v3465_v0  ;;  %v3561_v0 = vor.u32 %v3957_v62, %v3558_v63  ;;  %v3598_v62 = vld [vmem:[%s7127_s1 + $0x2a8] sm:$0xf0] }
  0x83   : > { %1498 = vmatpush.bf16.msra.mxu0 %v3265_v3 }
  0x85   : > { %1388 = vmatmul.bf16.gmra.mxu0 %v4838_v7 }
  0x86   : > { %1369 = vmatmul.bf16.gmra.mxu3 %v4846_v10  ;;  %1456 = vmatmul.bf16.gmra.mxu2 %v4848_v11 }
  0x87   : > { %1585 = vmatpush.bf16.msrb.mxu3 %v3457_v17 }
  0x88   : > { %1417 = vmatmul.bf16.gmra.mxu1 %v4850_v12 }
  0x95   : > { %1393 = vmatmul.bf16.gmra.mxu0 %v4916_v2 }
  0x96   : > { %3738 = vmatmul.msk.bf16.vlgmr.msra.gmra.mxu3 %vm1246_vm0, %v4918_v4  ;;  %1557 = vmatmul.bf16.vlgmr.msra.gmra.mxu2 %v4440_v25  ;;  %v3991_v25 = vld [vmem:[%s7127_s1 + $0x364] sm:$0xf] }
  0x97   : > { %v3697_v36 = vor.u32 %v3991_v25, %v3694_v35  ;;  %v3646_v25 = vld [vmem:[%s7127_s1 + $0x308] sm:$0xf0] }
  0x98   : > { %1422 = vmatmul.bf16.gmra.mxu1 %v4926_v8  ;;  %v3649_v35 = vor.u32 %v3979_v34, %v3646_v25  ;;  %v3971_v25 = vld [vmem:[%s7127_s1 + $0x2c4] sm:$0xf] }
  0x99   : > { %1666 = vmatpush.bf16.msrb.mxu2 %v3697_v36 }
  0x9d   : > { %1667 = vmatpush.bf16.msrb.mxu2 %v3689_v41  ;;  %v3577_v41 = vor.u32 %v3961_v39, %v3574_v40 }
  0x9f   : > { %1607 = vmatpush.bf16.msrb.mxu0 %v3577_v41  ;;  %v3953_v41 = vld [vmem:[%s7127_s1 + $0x234] sm:$0xf] }
  0xa1   : > { %1668 = vmatpush.bf16.msrb.mxu2 %v3681_v52  ;;  %v3975_v52 = vld [vmem:[%s7127_s1 + $0x2e4] sm:$0xf] }
  0xa2   : > { %v3633_v60 = vor.u32 %v3975_v52, %v3630_v59 }
  0xa5   : > { %1398 = vmatmul.bf16.gmra.mxu0 %v4975_v51  ;;  %1669 = vmatpush.bf16.msrb.mxu2 %v3673_v61 }
  0xa6   : > { %3739 = vmatmul.msk.bf16.gmra.mxu3 %vm1246_vm0, %v4977_v57  ;;  %1562 = vmatmul.bf16.gmra.mxu2 %v4556_v20  ;;  %v3662_v20 = vld [vmem:[%s7127_s1 + $0x328] sm:$0xf0] }
  0xa7   : > { %v3665_v3 = vor.u32 %v3983_v1, %v3662_v20  ;;  %v3973_v1 = vld [vmem:[%s7127_s1 + $0x2d4] sm:$0xf]  ;;  %v3622_v20 = vld [vmem:[%s7127_s1 + $0x2d8] sm:$0xf0] }
  0xa8   : > { %1427 = vmatmul.bf16.gmra.mxu1 %v4979_v58  ;;  %v3625_v6 = vor.u32 %v3973_v1, %v3622_v20  ;;  %v3949_v1 = vld [vmem:[%s7127_s1 + $0x214] sm:$0xf]  ;;  %v3526_v20 = vld [vmem:[%s7127_s1 + $0x218] sm:$0xf0] }
  0xa9   : > { %1670 = vmatpush.bf16.msrb.mxu2 %v3665_v3  ;;  %v3878_v3 = vld [vmem:[%s4404_s23 + $0xdc] sm:$0xf] }
  0xaa   : > { %v5099_v34 = vor.u32 %v3878_v3, %v3254_v5  ;;  %v3529_v3 = vor.u32 %v3949_v1, %v3526_v20  ;;  %v3965_v5 = vld [vmem:[%s7127_s1 + $0x294] sm:$0xf]  ;;  %v1866_v20 = vld [vmem:[%s7129_s3 + $0x148] sm:$0xff] }
  0xad   : > { %1671 = vmatpush.bf16.msrb.mxu2 %v3657_v16 }
  0xb1   : > { %1672 = vmatpush.bf16.msrb.mxu2 %v3649_v35  ;;  %v3614_v35 = vld [vmem:[%s7127_s1 + $0x2c8] sm:$0xf0] }
  0xb2   : > { %v5024_v36 = vpop.f32.mrf.mxu0  ;;  %v3617_v40 = vor.u32 %v3971_v25, %v3614_v35 }
  0xb5   : > { %v5028_v38 = vpop.f32.mrf.mxu1  ;;  %1499 = vmatmul.bf16.vlgmr.msra.gmra.mxu0 %v4432_v21  ;;  %v3737_v21 = vor.u32 %v4001_v42, %v3734_v43  ;;  %v3542_v42 = vld [vmem:[%s7127_s1 + $0x238] sm:$0xf0] }
  0xb6   : > { %3740 = vmatmul.msk.bf16.gmra.mxu3 %vm1246_vm0, %v5026_v37  ;;  %1567 = vmatmul.bf16.gmra.mxu2 %v4442_v26  ;;  %v3638_v26 = vld [vmem:[%s7127_s1 + $0x2f8] sm:$0xf0]  ;;  %v3545_v43 = vor.u32 %v3953_v41, %v3542_v42  ;;  %v3963_v42 = vld [vmem:[%s7127_s1 + $0x284] sm:$0xf] }
  0xb7   : > { %v3641_v45 = vor.u32 %v3977_v44, %v3638_v26  ;;  %1698 = vmatpush.bf16.msra.mxu3 %v3737_v21  ;;  %v3999_v44 = vld [vmem:[%s7127_s1 + $0x3a4] sm:$0xf]  ;;  %v3726_v21 = vld [vmem:[%s7127_s1 + $0x3a8] sm:$0xf0]  ;;  %v3969_v26 = vld [vmem:[%s7127_s1 + $0x2b4] sm:$0xf] }
  0xb8   : > { %1528 = vmatmul.bf16.vlgmr.msra.gmra.mxu1 %v4450_v29  ;;  %v3569_v29 = vor.u32 %v3959_v46, %v3566_v47  ;;  %v3951_v46 = vld [vmem:[%s7127_s1 + $0x224] sm:$0xf]  ;;  %v3534_v47 = vld [vmem:[%s7127_s1 + $0x228] sm:$0xf0] }
  0xb9   : > { %v5059_v48 = vpop.f32.mrf.mxu2  ;;  %v5061_v49 = vpop.f32.mrf.mxu3  ;;  %1636 = vmatpush.bf16.msrb.mxu1 %v3641_v45 }
  0xba   : > { %v5063_v50 = vpop.f32.mrf.mxu0  ;;  %1608 = vmatpush.bf16.msrb.mxu0 %v3569_v29 }
  0xbd   : > { %v5071_v61 = vpop.f32.mrf.mxu1  ;;  %1637 = vmatpush.bf16.msrb.mxu1 %v3633_v60  ;;  %v3967_v60 = vld [vmem:[%s7127_s1 + $0x2a4] sm:$0xf] }
  0xbe   : > { %1609 = vmatpush.bf16.msrb.mxu0 %v3561_v0  ;;  %v3601_v0 = vor.u32 %v3967_v60, %v3598_v62  ;;  %v1868_v60 = vld [vmem:[%s7129_s3 + $0x158] sm:$0xff]  ;;  %v1867_v62 = vld [vmem:[%s7129_s3 + $0x150] sm:$0xff] }
  0xc1   : > { %v5093_v16 = vpop.f32.mrf.mxu2  ;;  %v5095_v17 = vpop.f32.mrf.mxu3  ;;  %1638 = vmatpush.bf16.msrb.mxu1 %v3625_v6  ;;  %v3590_v6 = vld [vmem:[%s7127_s1 + $0x298] sm:$0xf0] }
  0xc2   : > { %v5097_v33 = vpop.f32.mrf.mxu0  ;;  %1610 = vmatpush.bf16.msrb.mxu0 %v3553_v32  ;;  %v3593_v9 = vor.u32 %v3965_v5, %v3590_v6  ;;  %v3518_v32 = vld [vmem:[%s7127_s1 + $0x208] sm:$0xf0]  ;;  %v1865_v5 = vld [vmem:[%s7129_s3 + $0x140] sm:$0xff] }
  0xc3   : > { %v3521_v35 = vor.u32 %v3947_v14, %v3518_v32  ;;  %v3710_v14 = vld [vmem:[%s7127_s1 + $0x388] sm:$0xf0]  ;;  %v1864_v32 = vld [vmem:[%s7129_s3 + $0x138] sm:$0xff] }
  0xc5   : > { %v5107_v39 = vpop.f32.mrf.mxu1  ;;  %1504 = vmatmul.bf16.gmra.mxu0 %v4545_v15  ;;  %v3729_v15 = vor.u32 %v3999_v44, %v3726_v21  ;;  %1639 = vmatpush.bf16.msrb.mxu1 %v3617_v40 }
  0xc6   : > { %3741 = vmatmul.msk.bf16.gmra.mxu3 %vm1246_vm0, %v5099_v34  ;;  %1572 = vmatmul.bf16.gmra.mxu2 %v4558_v22  ;;  %v3606_v22 = vld [vmem:[%s7127_s1 + $0x2b8] sm:$0xf0] }
  0xc7   : > { %1611 = vmatpush.bf16.msrb.mxu0 %v3545_v43  ;;  %v3609_v45 = vor.u32 %v3969_v26, %v3606_v22  ;;  %1699 = vmatpush.bf16.msra.mxu3 %v3729_v15  ;;  %v3582_v43 = vld [vmem:[%s7127_s1 + $0x288] sm:$0xf0]  ;;  %v3997_v26 = vld [vmem:[%s7127_s1 + $0x394] sm:$0xf]  ;;  %v3718_v15 = vld [vmem:[%s7127_s1 + $0x398] sm:$0xf0] }
  0xc8   : > { %1533 = vmatmul.bf16.gmra.mxu1 %v4566_v27  ;;  %v3537_v27 = vor.u32 %v3951_v46, %v3534_v47  ;;  %v3585_v21 = vor.u32 %v3963_v42, %v3582_v43  ;;  %v1872_v22 = vld [vmem:[%s7129_s3 + $0x178] sm:$0xff]  ;;  %v1870_v46 = vld [vmem:[%s7129_s3 + $0x168] sm:$0xff] }
  0xc9   : > { %v5138_v29 = vpop.f32.mrf.mxu2  ;;  %v5140_v52 = vpop.f32.mrf.mxu3  ;;  %1640 = vmatpush.bf16.msrb.mxu1 %v3609_v45  ;;  %v3721_v45 = vor.u32 %v3997_v26, %v3718_v15  ;;  %2199 = vmatpush.msra.mxu2 %v1872_v22  ;;  %v1862_v42 = vld [vmem:[%s7129_s3 + $0x128] sm:$0xff]  ;;  %v1859_v15 = vld [vmem:[%s7129_s3 + $0x110] sm:$0xff] }
  0xca   : > { %v5142_v59 = vpop.f32.mrf.mxu0 }
  0xcb   : > { %1612 = vmatpush.bf16.msrb.mxu0 %v3537_v27  ;;  %1700 = vmatpush.bf16.msra.mxu3 %v3721_v45  ;;  %v1869_v27 = vld [vmem:[%s7129_s3 + $0x160] sm:$0xff] }
  0xcd   : > { %v5150_v63 = vpop.f32.mrf.mxu1  ;;  %1641 = vmatpush.bf16.msrb.mxu1 %v3601_v0 }
  0xcf   : > { %1613 = vmatpush.bf16.msrb.mxu0 %v3529_v3 }
  0xd1   : > { %v5170_v25 = vpop.f32.mrf.mxu3  ;;  %v5172_v40 = vpop.f32.mrf.mxu2  ;;  %1642 = vmatpush.bf16.msrb.mxu1 %v3593_v9  ;;  %v3995_v9 = vld [vmem:[%s7127_s1 + $0x384] sm:$0xf] }
  0xd2   : > { %v5174_v41 = vpop.f32.mrf.mxu0 }
  0xd3   : > { %1614 = vmatpush.bf16.msrb.mxu0 %v3521_v35 }
  0xd5   : > { %v5182_v44 = vpop.f32.mrf.mxu1  ;;  %1509 = vmatmul.bf16.gmra.mxu0 %v4658_v13  ;;  %1643 = vmatpush.bf16.msrb.mxu1 %v3585_v21  ;;  %v1871_v13 = vld [vmem:[%s7129_s3 + $0x170] sm:$0xff]  ;;  %v1860_v21 = vld [vmem:[%s7129_s3 + $0x118] sm:$0xff] }
  0xd6   : > { %1586 = vmatmul.bf16.vlgmr.msrb.gmra.mxu3 %v4666_v18  ;;  %1673 = vmatmul.bf16.vlgmr.msrb.gmra.mxu2 %v4668_v19 }
  0xd7   : > { %2200 = vmatpush.msra.mxu2 %v1871_v13  ;;  %v1858_v13 = vld [vmem:[%s7129_s3 + $0x108] sm:$0xff] }
  0xd8   : > { %1538 = vmatmul.bf16.gmra.mxu1 %v4670_v23 }
  0xd9   : > { %v5200_v18 = vpop.f32.mrf.mxu3  ;;  %2201 = vmatpush.msra.mxu2 %v1870_v46  ;;  %v5207_v47 = vpop.f32.mrf.mxu2 }
  0xda   : > { %v5202_v19 = vpop.f32.mrf.mxu0 }
  0xdb   : > { %2202 = vmatpush.msra.mxu2 %v1869_v27  ;;  %v1857_v27 = vld [vmem:[%s7129_s3 + $0x100] sm:$0xff] }
  0xdd   : > { %v5209_v23 = vpop.f32.mrf.mxu1  ;;  %2203 = vmatpush.msra.mxu2 %v1868_v60 }
  0xdf   : > { %2204 = vmatpush.msra.mxu2 %v1867_v62 }
  0xe1   : > { %v5220_v0 = vpop.f32.mrf.mxu3  ;;  %2205 = vmatpush.msra.mxu2 %v1866_v20  ;;  %v5233_v6 = vpop.f32.mrf.mxu2 }
  0xe2   : > { %v5222_v1 = vpop.f32.mrf.mxu0 }
  0xe3   : > { %2206 = vmatpush.msra.mxu2 %v1865_v5 }
  0xe5   : > { %v5227_v3 = vpop.f32.mrf.mxu1  ;;  %1514 = vmatmul.bf16.gmra.mxu0 %v4714_v53  ;;  %v3713_v53 = vor.u32 %v3995_v9, %v3710_v14  ;;  %2207 = vmatpush.msra.mxu2 %v1864_v32  ;;  %v5291_v9 = vld [vmem:[%s7128_s2] sm:$0x3] }
  0xe6   : > { %1591 = vmatmul.bf16.gmra.mxu3 %v4716_v54  ;;  %1678 = vmatmul.bf16.gmra.mxu2 %v4718_v55  ;;  %v1863_v54 = vld [vmem:[%s7129_s3 + $0x130] sm:$0xff] }
  0xe7   : > { %1701 = vmatpush.bf16.msra.mxu3 %v3713_v53  ;;  %2208 = vmatpush.msra.mxu2 %v1863_v54 }
  0xe8   : > { %1543 = vmatmul.bf16.gmra.mxu1 %v4720_v56  ;;  %v1861_v56 = vld [vmem:[%s7129_s3 + $0x120] sm:$0xff] }
  0xe9   : > { %v5250_v55 = vpop.f32.mrf.mxu3  ;;  %2209 = vmatpush.msra.mxu2 %v1862_v42  ;;  %v5265_v26 = vpop.f32.mrf.mxu2 }
  0xea   : > { %v5252_v35 = vpop.f32.mrf.mxu0 }
  0xeb   : > { %2210 = vmatpush.msra.mxu2 %v1861_v56 }
  0xed   : > { %v5257_v43 = vpop.f32.mrf.mxu1  ;;  %2211 = vmatpush.msra.mxu2 %v1860_v21 }
  0xef   : > { %2212 = vmatpush.msra.mxu2 %v1859_v15 }
  0xf1   : > { %v5270_v22 = vpop.f32.mrf.mxu3  ;;  %2213 = vmatpush.msra.mxu2 %v1858_v13  ;;  %v5284_v62 = vpop.f32.mrf.mxu2 }
  0xf2   : > { %v1384_v45 = vpop.f32.mrf.mxu0 }
  0xf3   : > { %2214 = vmatpush.msra.mxu2 %v1857_v27 }
  0xf5   : > { %v1413_v46 = vpop.f32.mrf.mxu1  ;;  %1615 = vmatmul.bf16.vlgmr.msrb.gmra.mxu0 %v4764_v24  ;;  %v5294_v24 = vperm.slane %v5291_v9, 0 }
  0xf6   : > { %1596 = vmatmul.bf16.gmra.mxu3 %v4766_v28  ;;  %1683 = vmatmul.bf16.gmra.mxu2 %v4768_v30 }
  0xf7   : > { %v1271_v21 = vadd.f32 %v5063_v50, %v5294_v24  ;;  %v1838_v50 = vld [vmem:[%s7129_s3 + $0x68] sm:$0xff]  ;;  %v1274_v27 = vadd.f32 %v5097_v33, %v5294_v24  ;;  %v1836_v33 = vld [vmem:[%s7129_s3 + $0x58] sm:$0xff] }
  0xf8   : > { %1644 = vmatmul.bf16.vlgmr.msrb.gmra.mxu1 %v4770_v31  ;;  %v1269_v31 = vadd.f32 %v5024_v36, %v5294_v24 }
  0xf9   : > { %v5282_v60 = vpop.f32.mrf.mxu3  ;;  %v5302_v14 = vpop.f32.mrf.mxu2 }
  0xfa   : > { %v1386_v20 = vpop.f32.mrf.mxu0  ;;  %v1298_v53 = vadd.f32 %v5028_v38, %v1269_v31  ;;  %v1839_v38 = vld [vmem:[%s7129_s3 + $0x70] sm:$0xff] }
  0xfc   : > { %v1327_v36 = vadd.f32 %v5059_v48, %v1298_v53  ;;  %v1300_v48 = vadd.f32 %v5071_v61, %v1271_v21  ;;  %v1837_v61 = vld [vmem:[%s7129_s3 + $0x60] sm:$0xff]  ;;  %v4159_v53 = vmov 0.0   ;;  %v1835_v21 = vld [vmem:[%s7129_s3 + $0x50] sm:$0xff] }
  0xfd   : > { %v5286_v5 = vpop.f32.mrf.mxu1 }
 0x101   : > { %v5296_v28 = vpop.f32.mrf.mxu3 }
 0x102   : > { %v5298_v30 = vpop.f32.mrf.mxu0 }
 0x105   : > { %v5304_v32 = vpop.f32.mrf.mxu1  ;;  %1620 = vmatmul.bf16.gmra.mxu0 %v4838_v7  ;;  %v5320_v7 = vpop.f32.mrf.mxu2 }
 0x106   : > { %1601 = vmatmul.bf16.gmra.mxu3 %v4846_v10  ;;  %1688 = vmatmul.bf16.gmra.mxu2 %v4848_v11  ;;  %v1840_v10 = vld [vmem:[%s7129_s3 + $0x78] sm:$0xff]  ;;  %v1356_v11 = vadd.f32 %v5200_v18, %v1327_v36 }
 0x107   : > { %2117 = vmatpush.msra.mxu0 %v1840_v10  ;;  %v1935_v10 = vld [vmem:[%s7129_s3 + $0x370] sm:$0xff] }
 0x108   : > { %1649 = vmatmul.bf16.gmra.mxu1 %v4850_v12  ;;  %v1385_v15 = vadd.f32 %v1384_v45, %v1356_v11  ;;  %v1329_v45 = vadd.f32 %v5093_v16, %v1300_v48  ;;  %v1303_v16 = vadd.f32 %v5107_v39, %v1274_v27  ;;  %v1834_v39 = vld [vmem:[%s7129_s3 + $0x48] sm:$0xff]  ;;  %v1276_v27 = vadd.f32 %v5142_v59, %v5294_v24  ;;  %v1831_v59 = vld [vmem:[%s7129_s3 + $0x30] sm:$0xff] }
 0x109   : > { %v5311_v54 = vpop.f32.mrf.mxu3  ;;  %2118 = vmatpush.msra.mxu0 %v1839_v38 }
 0x10a   : > { %v5313_v42 = vpop.f32.mrf.mxu0  ;;  %v1414_v31 = vadd.f32 %v1413_v46, %v1385_v15  ;;  %v1358_v46 = vadd.f32 %v5220_v0, %v1329_v45  ;;  %v1934_v0 = vld [vmem:[%s7129_s3 + $0x368] sm:$0xff]  ;;  %v1332_v48 = vadd.f32 %v5138_v29, %v1303_v16  ;;  %v1832_v29 = vld [vmem:[%s7129_s3 + $0x38] sm:$0xff] }
 0x10b   : > { %2119 = vmatpush.msra.mxu0 %v1838_v50  ;;  %v1932_v45 = vld [vmem:[%s7129_s3 + $0x358] sm:$0xff] }
 0x10c   : > { %v1387_v11 = vadd.f32 %v1386_v20, %v1358_v46  ;;  %v1933_v20 = vld [vmem:[%s7129_s3 + $0x360] sm:$0xff] }
 0x10d   : > { %v5316_v56 = vpop.f32.mrf.mxu1  ;;  %2120 = vmatpush.msra.mxu0 %v1837_v61  ;;  %v5358_v36 = vpop.f32.mrf.mxu2 }
 0x10e   : > { %v1416_v61 = vadd.f32 %v5286_v5, %v1387_v11  ;;  %v1931_v5 = vld [vmem:[%s7129_s3 + $0x350] sm:$0xff] }
 0x10f   : > { %2121 = vmatpush.msra.mxu0 %v1836_v33 }
 0x111   : > { %v5326_v12 = vpop.f32.mrf.mxu3  ;;  %2122 = vmatpush.msra.mxu0 %v1835_v21  ;;  %v1930_v21 = vld [vmem:[%s7129_s3 + $0x348] sm:$0xff] }
 0x112   : > { %v5332_v13 = vpop.f32.mrf.mxu0 }
 0x113   : > { %2123 = vmatpush.msra.mxu0 %v1834_v39 }
 0x115   : > { %v5339_v18 = vpop.f32.mrf.mxu1  ;;  %1625 = vmatmul.bf16.gmra.mxu0 %v4916_v2  ;;  %v1936_v2 = vld [vmem:[%s7129_s3 + $0x378] sm:$0xff]  ;;  %v5405_v46 = vpop.f32.mrf.mxu2 }
 0x116   : > { %3742 = vmatmul.msk.bf16.vlgmr.msra.gmra.mxu3 %vm1246_vm0, %v4918_v4  ;;  %2215 = vmatmul.f32.vlgmr.msra.gmra.mxu2 %v4159_v53 }
 0x117   : > { %2363 = vmatpush.msrb.mxu2 %v1936_v2  ;;  %v1305_v2 = vadd.f32 %v5150_v63, %v1276_v27  ;;  %v1830_v63 = vld [vmem:[%s7129_s3 + $0x28] sm:$0xff] }
 0x118   : > { %1654 = vmatmul.bf16.gmra.mxu1 %v4926_v8  ;;  %v1443_v8 = vadd.f32 %v5207_v47, %v1414_v31  ;;  %v1833_v47 = vld [vmem:[%s7129_s3 + $0x40] sm:$0xff]  ;;  %v1361_v31 = vadd.f32 %v5250_v55, %v1332_v48 }
 0x119   : > { %v1471_v4 = vpop.f32.mrf.mxu3  ;;  %2364 = vmatpush.msrb.mxu2 %v1935_v10  ;;  %2124 = vmatpush.msra.mxu0 %v1833_v47 }
 0x11a   : > { %v5367_v38 = vpop.f32.mrf.mxu0  ;;  %v5376_v15 = vadd.f32 %v1471_v4, %v1443_v8  ;;  %v1390_v16 = vadd.f32 %v5298_v30, %v1361_v31  ;;  %v1445_v4 = vadd.f32 %v5233_v6, %v1416_v61  ;;  %v1929_v6 = vld [vmem:[%s7129_s3 + $0x340] sm:$0xff]  ;;  %v1334_v30 = vadd.f32 %v5172_v40, %v1305_v2  ;;  %v1928_v40 = vld [vmem:[%s7129_s3 + $0x338] sm:$0xff] }
 0x11b   : > { %2365 = vmatpush.msrb.mxu2 %v1934_v0  ;;  %2125 = vmatpush.msra.mxu0 %v1832_v29  ;;  %v1279_v8 = vadd.f32 %v5174_v41, %v5294_v24  ;;  %v1927_v0 = vld [vmem:[%s7129_s3 + $0x330] sm:$0xff] }
 0x11c   : > { %v1419_v39 = vadd.f32 %v5304_v32, %v1390_v16  ;;  %v1363_v41 = vadd.f32 %v5270_v22, %v1334_v30  ;;  %v1827_v22 = vld [vmem:[%s7129_s3 + $0x10] sm:$0xff] }
 0x11d   : > { %v5378_v50 = vpop.f32.mrf.mxu1  ;;  %2366 = vmatpush.msrb.mxu2 %v1933_v20  ;;  %2126 = vmatpush.msra.mxu0 %v1831_v59  ;;  %v5453_v27 = vpop.f32.mrf.mxu2  ;;  %v1925_v59 = vld [vmem:[%s7129_s3 + $0x320] sm:$0xff] }
 0x11e   : > { %2218 = vmatmul.f32.gmra.mxu2 %v5376_v15  ;;  %v1392_v48 = vadd.f32 %v5313_v42, %v1363_v41  ;;  %v1448_v47 = vadd.f32 %v5265_v26, %v1419_v39  ;;  %v1926_v26 = vld [vmem:[%s7129_s3 + $0x328] sm:$0xff]  ;;  %v1281_v42 = vadd.f32 %v5202_v19, %v5294_v24 }
 0x11f   : > { %2367 = vmatpush.msrb.mxu2 %v1932_v45  ;;  %2127 = vmatpush.msra.mxu0 %v1830_v63 }
 0x120   : > { %v1421_v31 = vadd.f32 %v5316_v56, %v1392_v48  ;;  %v1310_v56 = vadd.f32 %v5209_v23, %v1281_v42  ;;  %v1284_v23 = vadd.f32 %v5222_v1, %v5294_v24 }
 0x121   : > { %v1473_v33 = vpop.f32.mrf.mxu3  ;;  %2368 = vmatpush.msrb.mxu2 %v1931_v5 }
 0x122   : > { %v5408_v55 = vpop.f32.mrf.mxu0  ;;  %v5413_v10 = vadd.f32 %v1473_v33, %v1445_v4  ;;  %v1825_v33 = vld [vmem:[%s7129_s3] sm:$0xff]  ;;  %v1450_v16 = vadd.f32 %v5284_v62, %v1421_v31  ;;  %v1339_v62 = vadd.f32 %v5095_v17, %v1310_v56  ;;  %v1313_v17 = vadd.f32 %v5227_v3, %v1284_v23  ;;  %v1902_v31 = vld [vmem:[%s7129_s3 + $0x268] sm:$0xff]  ;;  %v1887_v56 = vld [vmem:[%s7129_s3 + $0x1f0] sm:$0xff] }
 0x123   : > { %2369 = vmatpush.msrb.mxu2 %v1930_v21  ;;  %v1923_v21 = vld [vmem:[%s7129_s3 + $0x310] sm:$0xff] }
 0x124   : > { %v1368_v39 = vadd.f32 %v5296_v28, %v1339_v62  ;;  %v1899_v62 = vld [vmem:[%s7129_s3 + $0x250] sm:$0xff] }
 0x125   : > { %v5415_v11 = vpop.f32.mrf.mxu1  ;;  %1630 = vmatmul.bf16.gmra.mxu0 %v4975_v51  ;;  %v1829_v51 = vld [vmem:[%s7129_s3 + $0x20] sm:$0xff]  ;;  %2370 = vmatpush.msrb.mxu2 %v1929_v6  ;;  %v1922_v6 = vld [vmem:[%s7129_s3 + $0x308] sm:$0xff]  ;;  %v5500_v30 = vpop.f32.mrf.mxu2 }
 0x126   : > { %3743 = vmatmul.msk.bf16.gmra.mxu3 %vm1246_vm0, %v4977_v57  ;;  %2221 = vmatmul.f32.gmra.mxu2 %v5413_v10  ;;  %v1828_v57 = vld [vmem:[%s7129_s3 + $0x18] sm:$0xff]  ;;  %v1397_v1 = vadd.f32 %v5367_v38, %v1368_v39  ;;  %v1885_v39 = vld [vmem:[%s7129_s3 + $0x1e0] sm:$0xff] }
 0x127   : > { %2128 = vmatpush.msra.mxu0 %v1829_v51  ;;  %2371 = vmatpush.msrb.mxu2 %v1928_v40 }
 0x128   : > { %1659 = vmatmul.bf16.gmra.mxu1 %v4979_v58  ;;  %v1308_v58 = vadd.f32 %v5182_v44, %v1279_v8  ;;  %v1826_v44 = vld [vmem:[%s7129_s3 + $0x8] sm:$0xff]  ;;  %v1921_v8 = vld [vmem:[%s7129_s3 + $0x300] sm:$0xff]  ;;  %v1426_v28 = vadd.f32 %v5378_v50, %v1397_v1 }
 0x129   : > { %v1476_v32 = vpop.f32.mrf.mxu3  ;;  %2129 = vmatpush.msra.mxu0 %v1828_v57  ;;  %2372 = vmatpush.msrb.mxu2 %v1927_v0  ;;  %v1998_v1 = vld [vmem:[%s7129_s3 + $0x568] sm:$0xff] }
 0x12a   : > { %v5448_v20 = vpop.f32.mrf.mxu0  ;;  %v5455_v61 = vadd.f32 %v1476_v32, %v1448_v47  ;;  %v1337_v45 = vadd.f32 %v5061_v49, %v1308_v58  ;;  %v1924_v49 = vld [vmem:[%s7129_s3 + $0x318] sm:$0xff]  ;;  %v1342_v32 = vadd.f32 %v5140_v52, %v1313_v17  ;;  %v1898_v17 = vld [vmem:[%s7129_s3 + $0x248] sm:$0xff] }
 0x12b   : > { %2130 = vmatpush.msra.mxu0 %v1827_v22  ;;  %2373 = vmatpush.msrb.mxu2 %v1926_v26 }
 0x12c   : > { %v1366_v5 = vadd.f32 %v5282_v60, %v1337_v45  ;;  %v1371_v38 = vadd.f32 %v5311_v54, %v1342_v32  ;;  %v1997_v32 = vld [vmem:[%s7129_s3 + $0x560] sm:$0xff] }
 0x12d   : > { %v5457_v29 = vpop.f32.mrf.mxu1  ;;  %2131 = vmatpush.msra.mxu0 %v1826_v44  ;;  %2374 = vmatpush.msrb.mxu2 %v1925_v59 }
 0x12e   : > { %2224 = vmatmul.f32.gmra.mxu2 %v5455_v61  ;;  %v1395_v2 = vadd.f32 %v5332_v13, %v1366_v5  ;;  %v1400_v58 = vadd.f32 %v5408_v55, %v1371_v38  ;;  %v1888_v5 = vld [vmem:[%s7129_s3 + $0x1f8] sm:$0xff]  ;;  %v1883_v38 = vld [vmem:[%s7129_s3 + $0x1d0] sm:$0xff] }
 0x12f   : > { %2132 = vmatpush.msra.mxu0 %v1825_v33  ;;  %2375 = vmatpush.msrb.mxu2 %v1924_v49  ;;  %v1901_v49 = vld [vmem:[%s7129_s3 + $0x260] sm:$0xff] }
 0x130   : > { %v1424_v13 = vadd.f32 %v5339_v18, %v1395_v2  ;;  %v1429_v47 = vadd.f32 %v5415_v11, %v1400_v58  ;;  %v1723_v11 = vlaneseq  ;;  %2240 = vmatpush.msrb.mxu3 %v1888_v5  ;;  %v1996_v58 = vld [vmem:[%s7129_s3 + $0x558] sm:$0xff] }
 0x131   : > { %v1478_v19 = vpop.f32.mrf.mxu3  ;;  %2376 = vmatpush.msrb.mxu2 %v1923_v21  ;;  %v2000_v21 = vld [vmem:[%s7129_s3 + $0x578] sm:$0xff] }
 0x132   : > { %v5483_v4 = vpop.f32.mrf.mxu0  ;;  %v5488_v60 = vadd.f32 %v1478_v19, %v1450_v16  ;;  %v1453_v18 = vadd.f32 %v5302_v14, %v1424_v13  ;;  %v5525_v14 = vpop.f32.mrf.mxu2  ;;  %v1900_v16 = vld [vmem:[%s7129_s3 + $0x258] sm:$0xff]  ;;  %2241 = vmatpush.msrb.mxu3 %v1887_v56  ;;  %v1999_v13 = vld [vmem:[%s7129_s3 + $0x570] sm:$0xff]  ;;  %v1878_v56 = vld [vmem:[%s7129_s3 + $0x1a8] sm:$0xff] }
 0x133   : > { %2377 = vmatpush.msrb.mxu2 %v1922_v6  ;;  %v1886_v6 = vld [vmem:[%s7129_s3 + $0x1e8] sm:$0xff]  ;;  %v1892_v5 = vld [vmem:[%s7129_s3 + $0x218] sm:$0xff] }
 0x134   : > { %2242 = vmatpush.msrb.mxu3 %v1886_v6  ;;  %v1991_v6 = vld [vmem:[%s7129_s3 + $0x530] sm:$0xff] }
 0x135   : > { %v5490_v63 = vpop.f32.mrf.mxu1  ;;  %2133 = vmatmul.f32.vlgmr.msra.gmra.mxu0 %v4159_v53  ;;  %2378 = vmatpush.msrb.mxu2 %v1921_v8  ;;  %v1727_v8 = vrot.slane %v5413_v10, 7 }
 0x136   : > { %3744 = vmatmul.msk.bf16.gmra.mxu3 %vm1246_vm0, %v5026_v37  ;;  %2227 = vmatmul.f32.gmra.mxu2 %v5488_v60  ;;  %v1286_v37 = vadd.f32 %v5252_v35, %v5294_v24  ;;  %v1455_v35 = vadd.f32 %v5320_v7, %v1426_v28 }
 0x137   : > { %2527 = vmatpush.msra.mxu2 %v2000_v21  ;;  %2243 = vmatpush.msrb.mxu3 %v1885_v39  ;;  %v1891_v21 = vld [vmem:[%s7129_s3 + $0x210] sm:$0xff]  ;;  %v1890_v39 = vld [vmem:[%s7129_s3 + $0x208] sm:$0xff] }
 0x138   : > { %v1315_v3 = vadd.f32 %v5257_v43, %v1286_v37  ;;  %v1897_v37 = vld [vmem:[%s7129_s3 + $0x240] sm:$0xff] }
 0x139   : > { %v1481_v51 = vpop.f32.mrf.mxu3  ;;  %2528 = vmatpush.msra.mxu2 %v1999_v13  ;;  %v1877_v13 = vld [vmem:[%s7129_s3 + $0x1a0] sm:$0xff] }
 0x13a   : > { %v5512_v40 = vpop.f32.mrf.mxu0  ;;  %v5516_v41 = vadd.f32 %v1481_v51, %v1453_v18  ;;  %v1344_v48 = vadd.f32 %v5170_v25, %v1315_v3  ;;  %v5542_v55 = vpop.f32.mrf.mxu2  ;;  %v1458_v25 = vadd.f32 %v5358_v36, %v1429_v47  ;;  %v5557_v36 = vshrl.u32 %v1723_v11, 7  ;;  %v1884_v18 = vld [vmem:[%s7129_s3 + $0x1d8] sm:$0xff]  ;;  %v1895_v47 = vld [vmem:[%s7129_s3 + $0x230] sm:$0xff]  ;;  %v1994_v11 = vld [vmem:[%s7129_s3 + $0x548] sm:$0xff] }
 0x13b   : > { %2529 = vmatpush.msra.mxu2 %v1998_v1  ;;  %2244 = vmatpush.msrb.mxu3 %v1884_v18  ;;  %v1876_v1 = vld [vmem:[%s7129_s3 + $0x198] sm:$0xff]  ;;  %v1889_v18 = vld [vmem:[%s7129_s3 + $0x200] sm:$0xff] }
 0x13c   : > { %v1373_v50 = vadd.f32 %v5326_v12, %v1344_v48  ;;  %vm1756_vm1 = vcmp.ne.s32.totalorder %v5557_v36, 0  ;;  %vm1741_vm2 = vcmp.lt.s32.totalorder %v5557_v36, 1  ;;  %vm1787_vm3 = vcmp.lt.s32.totalorder %v5557_v36, 7 }
 0x13d   : > { %v5518_v57 = vpop.f32.mrf.mxu1  ;;  %2530 = vmatpush.msra.mxu2 %v1997_v32  ;;  %2245 = vmatpush.msrb.mxu3 %v1883_v38  ;;  %v1989_v32 = vld [vmem:[%s7129_s3 + $0x520] sm:$0xff]  ;;  %v1856_v38 = vld [vmem:[%s7129_s3 + $0xf8] sm:$0xff]  ;;  %vm1802_vm4 = vcmp.ne.s32.totalorder %v5557_v36, 7 }
 0x13e   : > { %2230 = vmatmul.f32.gmra.mxu2 %v5516_v41  ;;  %v1402_v54 = vadd.f32 %v5448_v20, %v1373_v50  ;;  %2158 = vmatpush.msra.mxu1 %v1856_v38 }
 0x13f   : > { %2531 = vmatpush.msra.mxu2 %v1996_v58  ;;  %v1875_v58 = vld [vmem:[%s7129_s3 + $0x190] sm:$0xff] }
 0x140   : > { %v1431_v22 = vadd.f32 %v5457_v29, %v1402_v54  ;;  %v1903_v29 = vld [vmem:[%s7129_s3 + $0x270] sm:$0xff] }
 0x141   : > { %v1483_v0 = vpop.f32.mrf.mxu3  ;;  %v1995_v54 = vld [vmem:[%s7129_s3 + $0x550] sm:$0xff] }
 0x142   : > { %v5529_v24 = vpop.f32.mrf.mxu0  ;;  %v5532_v52 = vadd.f32 %v1483_v0, %v1455_v35  ;;  %v1460_v20 = vadd.f32 %v5405_v46, %v1431_v22  ;;  %v5567_v33 = vpop.f32.mrf.mxu2  ;;  %v1725_v46 = vrot.slane %v5376_v15, 7  ;;  %v1896_v0 = vld [vmem:[%s7129_s3 + $0x238] sm:$0xff]  ;;  %v1882_v35 = vld [vmem:[%s7129_s3 + $0x1c8] sm:$0xff]  ;;  %2532 = vmatpush.msra.mxu2 %v1995_v54 }
 0x143   : > { %2246 = vmatpush.msrb.mxu3 %v1882_v35  ;;  %v1894_v22 = vld [vmem:[%s7129_s3 + $0x228] sm:$0xff]  ;;  %v1988_v35 = vld [vmem:[%s7129_s3 + $0x518] sm:$0xff] }
 0x144   : > { %v5634_v3 = vsel %vm1741_vm2, %v1725_v46, %v1727_v8  ;;  %2533 = vmatpush.msra.mxu2 %v1994_v11  ;;  %v1874_v54 = vld [vmem:[%s7129_s3 + $0x188] sm:$0xff]  ;;  %v1855_v11 = vld [vmem:[%s7129_s3 + $0xf0] sm:$0xff] }
 0x145   : > { %v5539_v43 = vpop.f32.mrf.mxu1  ;;  %2159 = vmatpush.msra.mxu1 %v1855_v11 }
 0x146   : > { %3745 = vmatmul.msk.bf16.gmra.mxu3 %vm1246_vm0, %v5099_v34  ;;  %2233 = vmatmul.f32.gmra.mxu2 %v5532_v52  ;;  %v1904_v34 = vld [vmem:[%s7129_s3 + $0x278] sm:$0xff] }
 0x147   : > { %2281 = vmatpush.msrb.mxu0 %v1904_v34  ;;  %v1880_v34 = vld [vmem:[%s7129_s3 + $0x1b8] sm:$0xff] }
 0x149   : > { %v1486_v7 = vpop.f32.mrf.mxu3  ;;  %2282 = vmatpush.msrb.mxu0 %v1903_v29  ;;  %v1993_v29 = vld [vmem:[%s7129_s3 + $0x540] sm:$0xff] }
 0x14a   : > { %v5546_v44 = vadd.f32 %v1486_v7, %v1458_v25  ;;  %v5548_v12 = vpop.f32.mrf.mxu0  ;;  %v5630_v28 = vpop.f32.mrf.mxu2  ;;  %v1729_v7 = vrot.slane %v5455_v61, 7  ;;  %v1881_v25 = vld [vmem:[%s7129_s3 + $0x1c0] sm:$0xff]  ;;  %2534 = vmatpush.msra.mxu2 %v1993_v29  ;;  %v1986_v29 = vld [vmem:[%s7129_s3 + $0x508] sm:$0xff] }
 0x14b   : > { %2283 = vmatpush.msrb.mxu0 %v1902_v31  ;;  %2247 = vmatpush.msrb.mxu3 %v1881_v25  ;;  %v1733_v25 = vrot.slane %v5516_v41, 7 }
 0x14c   : > { %v5687_v31 = vsel %vm1741_vm2, %v1727_v8, %v1729_v7  ;;  %v1737_v38 = vrot.slane %v5546_v44, 7 }
 0x14d   : > { %v5555_v26 = vpop.f32.mrf.mxu1  ;;  %2284 = vmatpush.msrb.mxu0 %v1901_v49  ;;  %2248 = vmatpush.msrb.mxu3 %v1880_v34  ;;  %v1992_v49 = vld [vmem:[%s7129_s3 + $0x538] sm:$0xff]  ;;  %v1873_v34 = vld [vmem:[%s7129_s3 + $0x180] sm:$0xff] }
 0x14e   : > { %2236 = vmatmul.f32.gmra.mxu2 %v5546_v44 }
 0x14f   : > { %2285 = vmatpush.msrb.mxu0 %v1900_v16  ;;  %2535 = vmatpush.msra.mxu2 %v1992_v49  ;;  %v1985_v49 = vld [vmem:[%s7129_s3 + $0x500] sm:$0xff] }
 0x151   : > { %v1488_v42 = vpop.f32.mrf.mxu3  ;;  %2286 = vmatpush.msrb.mxu0 %v1899_v62  ;;  %v1731_v62 = vrot.slane %v5488_v60, 7  ;;  %2536 = vmatpush.msra.mxu2 %v1991_v6  ;;  %v1735_v6 = vrot.slane %v5532_v52, 7 }
 0x152   : > { %v5562_v45 = vadd.f32 %v1488_v42, %v1460_v20  ;;  %v5586_v2 = vpop.f32.mrf.mxu0  ;;  %v1893_v42 = vld [vmem:[%s7129_s3 + $0x220] sm:$0xff] }
 0x153   : > { %2287 = vmatpush.msrb.mxu0 %v1898_v17  ;;  %v1990_v17 = vld [vmem:[%s7129_s3 + $0x528] sm:$0xff]  ;;  %v5840_v11 = vsel %vm1741_vm2, %v1735_v6, %v1737_v38 }
 0x154   : > { %v1739_v59 = vrot.slane %v5562_v45, 7  ;;  %2537 = vmatpush.msra.mxu2 %v1990_v17  ;;  %v5812_v17 = vperm.slane %v5291_v9, 1 }
 0x155   : > { %v5613_v51 = vpop.f32.mrf.mxu1  ;;  %2288 = vmatpush.msrb.mxu0 %v1897_v37  ;;  %v5737_v37 = vsel %vm1741_vm2, %v1729_v7, %v1731_v62 }
 0x156   : > { %v1754_v19 = vsel %vm1741_vm2, %v1739_v59, %v1725_v46  ;;  %v1879_v46 = vld [vmem:[%s7129_s3 + $0x1b0] sm:$0xff]  ;;  %2538 = vmatpush.msra.mxu2 %v1989_v32  ;;  %v1501_v9 = vadd.f32 %v5483_v4, %v5812_v17 }
 0x157   : > { %3746 = vmatmul.msk.f32.gmra.mxu0 %vm1756_vm1, %v1754_v19  ;;  %3774 = vmatmul.msk.f32.vlgmr.msrb.gmra.mxu2 %vm1756_vm1, %v1754_v19  ;;  %v5704_v19 = vpop.f32.mrf.mxu2 }
 0x158   : > { %2289 = vmatpush.msrb.mxu0 %v1896_v0  ;;  %2249 = vmatpush.msrb.mxu3 %v1879_v46  ;;  %v1854_v46 = vld [vmem:[%s7129_s3 + $0xe8] sm:$0xff] }
 0x159   : > { %v5601_v23 = vpop.f32.mrf.mxu3  ;;  %2539 = vmatpush.msra.mxu2 %v1988_v35  ;;  %2160 = vmatpush.msra.mxu1 %v1854_v46  ;;  %v1851_v35 = vld [vmem:[%s7129_s3 + $0xd0] sm:$0xff]  ;;  %v1503_v46 = vadd.f32 %v5512_v40, %v5812_v17  ;;  %v1968_v40 = vld [vmem:[%s7129_s3 + $0x478] sm:$0xff] }
 0x15a   : > { %v5654_v48 = vpop.f32.mrf.mxu0  ;;  %2290 = vmatpush.msrb.mxu0 %v1895_v47  ;;  %2250 = vmatpush.msrb.mxu3 %v1878_v56 }
 0x15c   : > { %2291 = vmatpush.msrb.mxu0 %v1894_v22  ;;  %2251 = vmatpush.msrb.mxu3 %v1877_v13  ;;  %v1987_v22 = vld [vmem:[%s7129_s3 + $0x510] sm:$0xff] }
 0x15d   : > { %v5677_v20 = vpop.f32.mrf.mxu1  ;;  %2540 = vmatpush.msra.mxu2 %v1987_v22 }
 0x15e   : > { %2292 = vmatpush.msrb.mxu0 %v1893_v42  ;;  %2252 = vmatpush.msrb.mxu3 %v1876_v1  ;;  %v5816_v1 = vsel %vm1741_vm2, %v1733_v25, %v1735_v6  ;;  %v1848_v6 = vld [vmem:[%s7129_s3 + $0xb8] sm:$0xff] }
 0x15f   : > { %3747 = vmatmul.msk.f32.gmra.mxu0 %vm1756_vm1, %v5634_v3  ;;  %3775 = vmatmul.msk.f32.gmra.mxu2 %vm1756_vm1, %v5634_v3  ;;  %v5764_v7 = vpop.f32.mrf.mxu2 }
 0x160   : > { %2293 = vmatpush.msrb.mxu0 %v1892_v5  ;;  %2253 = vmatpush.msrb.mxu3 %v1875_v58  ;;  %v5786_v5 = vsel %vm1741_vm2, %v1731_v62, %v1733_v25  ;;  %v1853_v62 = vld [vmem:[%s7129_s3 + $0xe0] sm:$0xff]  ;;  %v1530_v25 = vadd.f32 %v5490_v63, %v1501_v9 }
 0x161   : > { %v5656_v50 = vpop.f32.mrf.mxu3  ;;  %2541 = vmatpush.msra.mxu2 %v1986_v29  ;;  %2161 = vmatpush.msra.mxu1 %v1853_v62  ;;  %v1849_v29 = vld [vmem:[%s7129_s3 + $0xc0] sm:$0xff] }
 0x162   : > { %v5721_v8 = vpop.f32.mrf.mxu0  ;;  %2294 = vmatpush.msrb.mxu0 %v1891_v21  ;;  %2254 = vmatpush.msrb.mxu3 %v1874_v54  ;;  %v1850_v54 = vld [vmem:[%s7129_s3 + $0xc8] sm:$0xff]  ;;  %v1559_v63 = vadd.f32 %v5453_v27, %v1530_v25  ;;  %v5864_v27 = vsel %vm1741_vm2, %v1737_v38, %v1739_v59  ;;  %v1967_v59 = vld [vmem:[%s7129_s3 + $0x470] sm:$0xff]  ;;  %v1506_v38 = vadd.f32 %v5529_v24, %v5812_v17 }
 0x163   : > { %2542 = vmatpush.msra.mxu2 %v1985_v49 }
 0x164   : > { %2295 = vmatpush.msrb.mxu0 %v1890_v39  ;;  %2255 = vmatpush.msrb.mxu3 %v1873_v34  ;;  %v1852_v39 = vld [vmem:[%s7129_s3 + $0xd8] sm:$0xff]  ;;  %v1588_v62 = vadd.f32 %v5601_v23, %v1559_v63 }
 0x165   : > { %v5745_v0 = vpop.f32.mrf.mxu1  ;;  %2256 = vmatmul.f32.vlgmr.msrb.gmra.mxu3 %v4159_v53  ;;  %2162 = vmatpush.msra.mxu1 %v1852_v39  ;;  %v1532_v39 = vadd.f32 %v5518_v57, %v1503_v46  ;;  %v1847_v57 = vld [vmem:[%s7129_s3 + $0xb0] sm:$0xff]  ;;  %v1965_v46 = vld [vmem:[%s7129_s3 + $0x460] sm:$0xff] }
 0x166   : > { %2296 = vmatpush.msrb.mxu0 %v1889_v18 }
 0x167   : > { %3748 = vmatmul.msk.f32.gmra.mxu0 %vm1756_vm1, %v5687_v31  ;;  %3776 = vmatmul.msk.f32.gmra.mxu2 %vm1756_vm1, %v5687_v31  ;;  %v5806_v13 = vpop.f32.mrf.mxu2  ;;  %v1561_v24 = vadd.f32 %v5500_v30, %v1532_v39  ;;  %v2064_v39 = vld [vmem:[%s7129_s3 + $0x778] sm:$0xff] }
 0x168   : > { %2163 = vmatpush.msra.mxu1 %v1851_v35  ;;  %2445 = vmatpush.msra.mxu0 %v1968_v40 }
 0x169   : > { %v5709_v16 = vpop.f32.mrf.mxu3  ;;  %v1590_v40 = vadd.f32 %v5656_v50, %v1561_v24  ;;  %v1964_v50 = vld [vmem:[%s7129_s3 + $0x458] sm:$0xff]  ;;  %2691 = vmatpush.msrb.mxu2 %v2064_v39  ;;  %v2063_v24 = vld [vmem:[%s7129_s3 + $0x770] sm:$0xff] }
 0x16a   : > { %v5776_v42 = vpop.f32.mrf.mxu0  ;;  %2164 = vmatpush.msra.mxu1 %v1850_v54  ;;  %v1773_v54 = vrot.slane %v5413_v10, 1  ;;  %2446 = vmatpush.msra.mxu0 %v1967_v59 }
 0x16b   : > { %2692 = vmatpush.msrb.mxu2 %v2063_v24 }
 0x16c   : > { %2165 = vmatpush.msra.mxu1 %v1849_v29  ;;  %v1771_v29 = vrot.slane %v5376_v15, 1 }
 0x16d   : > { %v5798_v56 = vpop.f32.mrf.mxu1 }
 0x16e   : > { %2166 = vmatpush.msra.mxu1 %v1848_v6  ;;  %v1846_v6 = vld [vmem:[%s7129_s3 + $0xa8] sm:$0xff]  ;;  %v1800_v30 = vsel %vm1787_vm3, %v1771_v29, %v1773_v54 }
 0x16f   : > { %3749 = vmatmul.msk.f32.gmra.mxu0 %vm1756_vm1, %v5737_v37  ;;  %3777 = vmatmul.msk.f32.gmra.mxu2 %vm1756_vm1, %v5737_v37  ;;  %v5836_v22 = vpop.f32.mrf.mxu2 }
 0x170   : > { %2167 = vmatpush.msra.mxu1 %v1847_v57  ;;  %v1951_v57 = vld [vmem:[%s7129_s3 + $0x3f0] sm:$0xff] }
 0x171   : > { %v5759_v47 = vpop.f32.mrf.mxu3 }
 0x172   : > { %v1616_v18 = vpop.f32.mrf.mxu0  ;;  %2168 = vmatpush.msra.mxu1 %v1846_v6  ;;  %v1845_v6 = vld [vmem:[%s7129_s3 + $0xa0] sm:$0xff] }
 0x173   : > { %v1617_v9 = vadd.f32 %v1616_v18, %v1588_v62  ;;  %v1966_v18 = vld [vmem:[%s7129_s3 + $0x468] sm:$0xff]  ;;  %v1535_v62 = vadd.f32 %v5539_v43, %v1506_v38  ;;  %v1952_v43 = vld [vmem:[%s7129_s3 + $0x3f8] sm:$0xff] }
 0x174   : > { %2447 = vmatpush.msra.mxu0 %v1966_v18  ;;  %2404 = vmatpush.msra.mxu3 %v1952_v43  ;;  %v1963_v18 = vld [vmem:[%s7129_s3 + $0x450] sm:$0xff] }
 0x175   : > { %v1645_v58 = vpop.f32.mrf.mxu1  ;;  %2169 = vmatpush.msra.mxu1 %v1845_v6 }
 0x176   : > { %v1646_v63 = vadd.f32 %v1645_v58, %v1617_v9  ;;  %2448 = vmatpush.msra.mxu0 %v1965_v46  ;;  %2405 = vmatpush.msra.mxu3 %v1951_v57  ;;  %v1960_v57 = vld [vmem:[%s7129_s3 + $0x438] sm:$0xff] }
 0x177   : > { %3750 = vmatmul.msk.f32.gmra.mxu0 %vm1756_vm1, %v5786_v5  ;;  %3778 = vmatmul.msk.f32.gmra.mxu2 %vm1756_vm1, %v5786_v5  ;;  %v5874_v23 = vpop.f32.mrf.mxu2 }
 0x178   : > { %v1675_v59 = vadd.f32 %v5806_v13, %v1646_v63  ;;  %2449 = vmatpush.msra.mxu0 %v1964_v50  ;;  %v1775_v63 = vrot.slane %v5455_v61, 1  ;;  %v1961_v50 = vld [vmem:[%s7129_s3 + $0x440] sm:$0xff] }
 0x179   : > { %v5800_v21 = vpop.f32.mrf.mxu3 }
 0x17a   : > { %v1618_v4 = vpop.f32.mrf.mxu0  ;;  %2450 = vmatpush.msra.mxu0 %v1963_v18 }
 0x17b   : > { %v1619_v9 = vadd.f32 %v1618_v4, %v1590_v40  ;;  %v1564_v4 = vadd.f32 %v5525_v14, %v1535_v62  ;;  %v1950_v40 = vld [vmem:[%s7129_s3 + $0x3e8] sm:$0xff] }
 0x17c   : > { %v1962_v14 = vld [vmem:[%s7129_s3 + $0x448] sm:$0xff]  ;;  %2406 = vmatpush.msra.mxu3 %v1950_v40 }
 0x17d   : > { %v1647_v49 = vpop.f32.mrf.mxu1  ;;  %v2062_v62 = vld [vmem:[%s7129_s3 + $0x768] sm:$0xff]  ;;  %2451 = vmatpush.msra.mxu0 %v1962_v14  ;;  %v1959_v14 = vld [vmem:[%s7129_s3 + $0x430] sm:$0xff] }
 0x17e   : > { %v1648_v43 = vadd.f32 %v1647_v49, %v1619_v9  ;;  %2693 = vmatpush.msrb.mxu2 %v2062_v62  ;;  %v1593_v49 = vadd.f32 %v5709_v16, %v1564_v4  ;;  %v5971_v9 = vsel %vm1787_vm3, %v1773_v54, %v1775_v63  ;;  %v1948_v16 = vld [vmem:[%s7129_s3 + $0x3d8] sm:$0xff]  ;;  %v2059_v62 = vld [vmem:[%s7129_s3 + $0x750] sm:$0xff] }
 0x17f   : > { %3751 = vmatmul.msk.f32.gmra.mxu0 %vm1756_vm1, %v5816_v1  ;;  %3779 = vmatmul.msk.f32.gmra.mxu2 %vm1756_vm1, %v5816_v1  ;;  %v5934_v46 = vpop.f32.mrf.mxu2  ;;  %v2060_v54 = vld [vmem:[%s7129_s3 + $0x758] sm:$0xff] }
 0x180   : > { %2452 = vmatpush.msra.mxu0 %v1961_v50  ;;  %v1677_v4 = vadd.f32 %v5836_v22, %v1648_v43  ;;  %v1777_v22 = vrot.slane %v5488_v60, 1  ;;  %v1843_v43 = vld [vmem:[%s7129_s3 + $0x90] sm:$0xff]  ;;  %v2058_v50 = vld [vmem:[%s7129_s3 + $0x748] sm:$0xff] }
 0x181   : > { %v5824_v32 = vpop.f32.mrf.mxu3 }
 0x182   : > { %v5887_v25 = vpop.f32.mrf.mxu0  ;;  %2453 = vmatpush.msra.mxu0 %v1960_v57 }
 0x183   : > { %v1622_v24 = vadd.f32 %v5887_v25, %v1593_v49  ;;  %v1947_v25 = vld [vmem:[%s7129_s3 + $0x3d0] sm:$0xff]  ;;  %v1946_v49 = vld [vmem:[%s7129_s3 + $0x3c8] sm:$0xff] }
 0x184   : > { %2454 = vmatpush.msra.mxu0 %v1959_v14 }
 0x185   : > { %v5908_v58 = vpop.f32.mrf.mxu1 }
 0x187   : > { %3752 = vmatmul.msk.f32.gmra.mxu0 %vm1756_vm1, %v5840_v11  ;;  %3780 = vmatmul.msk.f32.gmra.mxu2 %vm1756_vm1, %v5840_v11 }
 0x189   : > { %v5848_v34 = vpop.f32.mrf.mxu3 }
 0x18a   : > { %v1623_v39 = vpop.f32.mrf.mxu0 }
 0x18d   : > { %v1652_v6 = vpop.f32.mrf.mxu1 }
 0x18f   : > { %2297 = vmatmul.f32.vlgmr.msrb.gmra.mxu0 %v4159_v53  ;;  %3781 = vmatmul.msk.f32.gmra.mxu2 %vm1756_vm1, %v5864_v27 }
 0x191   : > { %v5876_v35 = vpop.f32.mrf.mxu3 }
 0x197   : > { %3760 = vmatmul.msk.f32.gmra.mxu0 %vm1802_vm4, %v1800_v30  ;;  %3790 = vmatmul.msk.f32.vlgmr.msra.gmra.mxu2 %vm1802_vm4, %v1800_v30  ;;  %v1508_v30 = vadd.f32 %v5548_v12, %v5812_v17  ;;  %v1844_v12 = vld [vmem:[%s7129_s3 + $0x98] sm:$0xff] }
 0x198   : > { %2170 = vmatpush.msra.mxu1 %v1844_v12  ;;  %v1651_v12 = vadd.f32 %v5908_v58, %v1622_v24  ;;  %v1626_v24 = vpop.f32.mrf.mxu0 }
 0x199   : > { %v1703_v38 = vpop.f32.mrf.mxu3  ;;  %v1537_v18 = vadd.f32 %v5555_v26, %v1508_v30  ;;  %v1511_v26 = vadd.f32 %v5586_v2, %v5812_v17  ;;  %v1958_v2 = vld [vmem:[%s7129_s3 + $0x428] sm:$0xff] }
 0x19a   : > { %v5936_v13 = vadd.f32 %v1703_v38, %v1675_v59  ;;  %v1949_v59 = vld [vmem:[%s7129_s3 + $0x3e0] sm:$0xff]  ;;  %2171 = vmatpush.msra.mxu1 %v1843_v43  ;;  %2455 = vmatpush.msra.mxu0 %v1958_v2  ;;  %v2055_v43 = vld [vmem:[%s7129_s3 + $0x730] sm:$0xff] }
 0x19b   : > { %v2061_v38 = vld [vmem:[%s7129_s3 + $0x760] sm:$0xff]  ;;  %2407 = vmatpush.msra.mxu3 %v1949_v59  ;;  %v1566_v59 = vadd.f32 %v5542_v55, %v1537_v18  ;;  %v1842_v55 = vld [vmem:[%s7129_s3 + $0x88] sm:$0xff]  ;;  %v1540_v57 = vadd.f32 %v5613_v51, %v1511_v26 }
 0x19c   : > { %2259 = vmatmul.f32.gmra.mxu3 %v5936_v13  ;;  %2694 = vmatpush.msrb.mxu2 %v2061_v38  ;;  %v6015_v38 = vpop.f32.mrf.mxu2  ;;  %v2057_v18 = vld [vmem:[%s7129_s3 + $0x740] sm:$0xff] }
 0x19d   : > { %2408 = vmatpush.msra.mxu3 %v1948_v16  ;;  %v1957_v16 = vld [vmem:[%s7129_s3 + $0x420] sm:$0xff]  ;;  %v1595_v58 = vadd.f32 %v5759_v47, %v1566_v59  ;;  %2172 = vmatpush.msra.mxu1 %v1842_v55  ;;  %v1956_v47 = vld [vmem:[%s7129_s3 + $0x418] sm:$0xff]  ;;  %v1569_v26 = vadd.f32 %v5567_v33, %v1540_v57  ;;  %v1954_v33 = vld [vmem:[%s7129_s3 + $0x408] sm:$0xff]  ;;  %v1513_v59 = vadd.f32 %v5654_v48, %v5812_v17 }
 0x19e   : > { %2695 = vmatpush.msrb.mxu2 %v2060_v54  ;;  %v6034_v54 = vsel %vm1787_vm3, %v1775_v63, %v1777_v22  ;;  %v1945_v51 = vld [vmem:[%s7129_s3 + $0x3c0] sm:$0xff]  ;;  %2456 = vmatpush.msra.mxu0 %v1957_v16  ;;  %v2054_v16 = vld [vmem:[%s7129_s3 + $0x728] sm:$0xff] }
 0x19f   : > { %3761 = vmatmul.msk.f32.gmra.mxu0 %vm1802_vm4, %v5971_v9  ;;  %3791 = vmatmul.msk.f32.gmra.mxu2 %vm1802_vm4, %v5971_v9  ;;  %v1624_v63 = vadd.f32 %v1623_v39, %v1595_v58  ;;  %v1779_v39 = vrot.slane %v5516_v41, 1  ;;  %v1841_v2 = vld [vmem:[%s7129_s3 + $0x80] sm:$0xff]  ;;  %v1598_v55 = vadd.f32 %v5800_v21, %v1569_v26  ;;  %v1920_v58 = vld [vmem:[%s7129_s3 + $0x2f8] sm:$0xff]  ;;  %v1942_v21 = vld [vmem:[%s7129_s3 + $0x3a8] sm:$0xff] }
 0x1a0   : > { %2696 = vmatpush.msrb.mxu2 %v2059_v62  ;;  %2409 = vmatpush.msra.mxu3 %v1947_v25  ;;  %v1955_v62 = vld [vmem:[%s7129_s3 + $0x410] sm:$0xff] }
 0x1a1   : > { %v1705_v40 = vpop.f32.mrf.mxu3  ;;  %2457 = vmatpush.msra.mxu0 %v1956_v47  ;;  %2173 = vmatpush.msra.mxu1 %v1841_v2  ;;  %v6088_v48 = vsel %vm1787_vm3, %v1777_v22, %v1779_v39  ;;  %v2053_v22 = vld [vmem:[%s7129_s3 + $0x720] sm:$0xff]  ;;  %v2051_v26 = vld [vmem:[%s7129_s3 + $0x710] sm:$0xff]  ;;  %v1940_v2 = vld [vmem:[%s7129_s3 + $0x398] sm:$0xff] }
 0x1a2   : > { %v5999_v30 = vadd.f32 %v1705_v40, %v1677_v4  ;;  %2697 = vmatpush.msrb.mxu2 %v2058_v50  ;;  %v1680_v4 = vadd.f32 %v5874_v23, %v1651_v12  ;;  %2410 = vmatpush.msra.mxu3 %v1946_v49  ;;  %v2056_v40 = vld [vmem:[%s7129_s3 + $0x738] sm:$0xff]  ;;  %v1655_v50 = vpop.f32.mrf.mxu1  ;;  %v1653_v12 = vadd.f32 %v1652_v6, %v1624_v63  ;;  %v1943_v49 = vld [vmem:[%s7129_s3 + $0x3b0] sm:$0xff]  ;;  %v1953_v6 = vld [vmem:[%s7129_s3 + $0x400] sm:$0xff]  ;;  %v1628_v63 = vpop.f32.mrf.mxu0 }
 0x1a3   : > { %v1944_v23 = vld [vmem:[%s7129_s3 + $0x3b8] sm:$0xff]  ;;  %2458 = vmatpush.msra.mxu0 %v1955_v62  ;;  %2174 = vmatmul.f32.vlgmr.msra.gmra.mxu1 %v4159_v53 }
 0x1a4   : > { %2262 = vmatmul.f32.gmra.mxu3 %v5999_v30  ;;  %2698 = vmatpush.msrb.mxu2 %v2057_v18  ;;  %v6084_v57 = vpop.f32.mrf.mxu2  ;;  %v1542_v18 = vadd.f32 %v5677_v20, %v1513_v59  ;;  %v1682_v47 = vadd.f32 %v5934_v46, %v1653_v12  ;;  %v1781_v20 = vrot.slane %v5532_v52, 1  ;;  %v1941_v46 = vld [vmem:[%s7129_s3 + $0x3a0] sm:$0xff] }
 0x1a5   : > { %2411 = vmatpush.msra.mxu3 %v1945_v51  ;;  %2459 = vmatpush.msra.mxu0 %v1954_v33  ;;  %v1627_v51 = vadd.f32 %v1626_v24, %v1598_v55  ;;  %v1919_v24 = vld [vmem:[%s7129_s3 + $0x2f0] sm:$0xff]  ;;  %v2050_v33 = vld [vmem:[%s7129_s3 + $0x708] sm:$0xff] }
 0x1a6   : > { %2699 = vmatpush.msrb.mxu2 %v2056_v40  ;;  %2322 = vmatpush.msrb.mxu1 %v1920_v58  ;;  %v2052_v40 = vld [vmem:[%s7129_s3 + $0x718] sm:$0xff] }
 0x1a7   : > { %3762 = vmatmul.msk.f32.gmra.mxu0 %vm1802_vm4, %v6034_v54  ;;  %3792 = vmatmul.msk.f32.gmra.mxu2 %vm1802_vm4, %v6034_v54 }
 0x1a8   : > { %2412 = vmatpush.msra.mxu3 %v1944_v23  ;;  %2700 = vmatpush.msrb.mxu2 %v2055_v43  ;;  %v1656_v23 = vadd.f32 %v1655_v50, %v1627_v51  ;;  %v1939_v50 = vld [vmem:[%s7129_s3 + $0x390] sm:$0xff]  ;;  %v1518_v51 = vadd.f32 %v5776_v42, %v5812_v17  ;;  %v1916_v42 = vld [vmem:[%s7129_s3 + $0x2d8] sm:$0xff] }
 0x1a9   : > { %v1708_v14 = vpop.f32.mrf.mxu3  ;;  %2460 = vmatpush.msra.mxu0 %v1953_v6  ;;  %2323 = vmatpush.msrb.mxu1 %v1919_v24 }
 0x1aa   : > { %v6059_v25 = vadd.f32 %v1708_v14, %v1680_v4  ;;  %2413 = vmatpush.msra.mxu3 %v1943_v49  ;;  %2701 = vmatpush.msrb.mxu2 %v2054_v16  ;;  %v1516_v14 = vadd.f32 %v5721_v8, %v5812_v17  ;;  %v1571_v8 = vadd.f32 %v5630_v28, %v1542_v18  ;;  %v1657_v43 = vpop.f32.mrf.mxu1  ;;  %v1631_v18 = vpop.f32.mrf.mxu0 }
 0x1ab   : > { %v6140_v28 = vsel %vm1787_vm3, %v1779_v39, %v1781_v20  ;;  %v1685_v16 = vadd.f32 %v6015_v38, %v1656_v23  ;;  %v1917_v38 = vld [vmem:[%s7129_s3 + $0x2e0] sm:$0xff]  ;;  %v1547_v17 = vadd.f32 %v5798_v56, %v1518_v51  ;;  %v2030_v51 = vld [vmem:[%s7129_s3 + $0x668] sm:$0xff] }
 0x1ac   : > { %2265 = vmatmul.f32.gmra.mxu3 %v6059_v25  ;;  %2702 = vmatpush.msrb.mxu2 %v2053_v22  ;;  %v1545_v59 = vadd.f32 %v5745_v0, %v1516_v14  ;;  %v1600_v12 = vadd.f32 %v5824_v32, %v1571_v8  ;;  %v2049_v0 = vld [vmem:[%s7129_s3 + $0x700] sm:$0xff]  ;;  %v1918_v32 = vld [vmem:[%s7129_s3 + $0x2e8] sm:$0xff]  ;;  %v1689_v39 = vpop.f32.mrf.mxu2  ;;  %v1915_v8 = vld [vmem:[%s7129_s3 + $0x2d0] sm:$0xff] }
 0x1ad   : > { %2414 = vmatpush.msra.mxu3 %v1942_v21  ;;  %2324 = vmatpush.msrb.mxu1 %v1918_v32  ;;  %v1783_v21 = vrot.slane %v5546_v44, 1  ;;  %v1938_v22 = vld [vmem:[%s7129_s3 + $0x388] sm:$0xff]  ;;  %v1576_v23 = vadd.f32 %v5764_v7, %v1547_v17  ;;  %v2028_v17 = vld [vmem:[%s7129_s3 + $0x658] sm:$0xff] }
 0x1ae   : > { %2703 = vmatpush.msrb.mxu2 %v2052_v40  ;;  %v1629_v49 = vadd.f32 %v1628_v63, %v1600_v12  ;;  %v1574_v6 = vadd.f32 %v5704_v19, %v1545_v59  ;;  %v1914_v7 = vld [vmem:[%s7129_s3 + $0x2c8] sm:$0xff] }
 0x1af   : > { %3763 = vmatmul.msk.f32.gmra.mxu0 %vm1802_vm4, %v6088_v48  ;;  %3793 = vmatmul.msk.f32.gmra.mxu2 %vm1802_vm4, %v6088_v48 }
 0x1b0   : > { %2415 = vmatpush.msra.mxu3 %v1941_v46  ;;  %2704 = vmatpush.msrb.mxu2 %v2051_v26  ;;  %v1658_v19 = vadd.f32 %v1657_v43, %v1629_v49  ;;  %v1603_v63 = vadd.f32 %v5848_v34, %v1574_v6  ;;  %v1785_v26 = vrot.slane %v5562_v45, 1  ;;  %v2032_v6 = vld [vmem:[%s7129_s3 + $0x678] sm:$0xff] }
 0x1b1   : > { %v1710_v4 = vpop.f32.mrf.mxu3  ;;  %2325 = vmatpush.msrb.mxu1 %v1917_v38  ;;  %2609 = vmatpush.msrb.mxu0 %v2032_v6  ;;  %v1726_v38 = vrot.slane %v5936_v13, 7  ;;  %v1906_v6 = vld [vmem:[%s7129_s3 + $0x288] sm:$0xff] }
 0x1b2   : > { %v6116_v62 = vadd.f32 %v1710_v4, %v1682_v47  ;;  %2416 = vmatpush.msra.mxu3 %v1940_v2  ;;  %2705 = vmatpush.msrb.mxu2 %v2050_v33  ;;  %v1937_v47 = vld [vmem:[%s7129_s3 + $0x380] sm:$0xff]  ;;  %v6177_v4 = vsel %vm1787_vm3, %v1781_v20, %v1783_v21  ;;  %v1660_v40 = vpop.f32.mrf.mxu1  ;;  %v1632_v34 = vadd.f32 %v1631_v18, %v1603_v63  ;;  %v1633_v56 = vpop.f32.mrf.mxu0 }
 0x1b3   : > { %v1687_v14 = vadd.f32 %v6084_v57, %v1658_v19  ;;  %2326 = vmatpush.msrb.mxu1 %v1916_v42  ;;  %v1605_v57 = vadd.f32 %v5876_v35, %v1576_v23  ;;  %v6201_v2 = vsel %vm1787_vm3, %v1783_v21, %v1785_v26  ;;  %v2029_v63 = vld [vmem:[%s7129_s3 + $0x660] sm:$0xff]  ;;  %v2016_v42 = vld [vmem:[%s7129_s3 + $0x5f8] sm:$0xff]  ;;  %v2026_v23 = vld [vmem:[%s7129_s3 + $0x648] sm:$0xff] }
 0x1b4   : > { %2268 = vmatmul.f32.gmra.mxu3 %v6116_v62  ;;  %2706 = vmatpush.msrb.mxu2 %v2049_v0  ;;  %v1691_v46 = vpop.f32.mrf.mxu2  ;;  %v1661_v43 = vadd.f32 %v1660_v40, %v1632_v34  ;;  %v1913_v0 = vld [vmem:[%s7129_s3 + $0x2c0] sm:$0xff]  ;;  %v1910_v40 = vld [vmem:[%s7129_s3 + $0x2a8] sm:$0xff] }
 0x1b5   : > { %2417 = vmatpush.msra.mxu3 %v1939_v50  ;;  %2327 = vmatpush.msrb.mxu1 %v1915_v8  ;;  %v1634_v33 = vadd.f32 %v1633_v56, %v1605_v57  ;;  %v1908_v56 = vld [vmem:[%s7129_s3 + $0x298] sm:$0xff] }
 0x1b6   : > { %v1690_v59 = vadd.f32 %v1689_v39, %v1661_v43  ;;  %v6224_v39 = vsel %vm1787_vm3, %v1785_v26, %v1771_v29  ;;  %v2014_v26 = vld [vmem:[%s7129_s3 + $0x5e8] sm:$0xff]  ;;  %v2013_v43 = vld [vmem:[%s7129_s3 + $0x5e0] sm:$0xff] }
 0x1b7   : > { %3764 = vmatmul.msk.f32.gmra.mxu0 %vm1802_vm4, %v6140_v28  ;;  %3794 = vmatmul.msk.f32.gmra.mxu2 %vm1802_vm4, %v6140_v28 }
 0x1b8   : > { %2418 = vmatpush.msra.mxu3 %v1938_v22  ;;  %2328 = vmatpush.msrb.mxu1 %v1914_v7  ;;  %v1911_v22 = vld [vmem:[%s7129_s3 + $0x2b0] sm:$0xff]  ;;  %v2025_v7 = vld [vmem:[%s7129_s3 + $0x640] sm:$0xff] }
 0x1b9   : > { %v1713_v55 = vpop.f32.mrf.mxu3 }
 0x1ba   : > { %v6159_v58 = vadd.f32 %v1713_v55, %v1685_v16  ;;  %2419 = vmatpush.msra.mxu3 %v1937_v47  ;;  %v1662_v35 = vpop.f32.mrf.mxu1  ;;  %2329 = vmatpush.msrb.mxu1 %v1913_v0  ;;  %v1912_v16 = vld [vmem:[%s7129_s3 + $0x2b8] sm:$0xff]  ;;  %v6273_v34 = vpop.f32.mrf.mxu0 }
 0x1bb   : > { %v1663_v49 = vadd.f32 %v1662_v35, %v1634_v33  ;;  %v2012_v33 = vld [vmem:[%s7129_s3 + $0x5d8] sm:$0xff] }
 0x1bc   : > { %2271 = vmatmul.f32.gmra.mxu3 %v6159_v58  ;;  %v6217_v32 = vpop.f32.mrf.mxu2  ;;  %2330 = vmatpush.msrb.mxu1 %v1912_v16  ;;  %v2024_v35 = vld [vmem:[%s7129_s3 + $0x638] sm:$0xff]  ;;  %v2023_v16 = vld [vmem:[%s7129_s3 + $0x630] sm:$0xff] }
 0x1bd   : > { %v1692_v55 = vadd.f32 %v1691_v46, %v1663_v49  ;;  %2568 = vmatpush.msrb.mxu3 %v2016_v42  ;;  %v1909_v46 = vld [vmem:[%s7129_s3 + $0x2a0] sm:$0xff]  ;;  %v2020_v42 = vld [vmem:[%s7129_s3 + $0x618] sm:$0xff] }
 0x1be   : > { %2331 = vmatpush.msrb.mxu1 %v1911_v22 }
 0x1bf   : > { %3765 = vmatmul.msk.f32.gmra.mxu0 %vm1802_vm4, %v6177_v4  ;;  %3795 = vmatmul.msk.f32.gmra.mxu2 %vm1802_vm4, %v6177_v4 }
 0x1c0   : > { %2332 = vmatpush.msrb.mxu1 %v1910_v40 }
 0x1c1   : > { %v1715_v20 = vpop.f32.mrf.mxu3 }
 0x1c2   : > { %v6190_v24 = vadd.f32 %v1715_v20, %v1687_v14  ;;  %v1728_v14 = vrot.slane %v5999_v30, 7  ;;  %v2015_v20 = vld [vmem:[%s7129_s3 + $0x5f0] sm:$0xff]  ;;  %2333 = vmatpush.msrb.mxu1 %v1909_v46  ;;  %v1734_v46 = vrot.slane %v6159_v58, 7 }
 0x1c3   : > { %2569 = vmatpush.msrb.mxu3 %v2015_v20  ;;  %v2019_v20 = vld [vmem:[%s7129_s3 + $0x610] sm:$0xff] }
 0x1c4   : > { %2274 = vmatmul.f32.gmra.mxu3 %v6190_v24  ;;  %v6249_v19 = vpop.f32.mrf.mxu2  ;;  %v6290_v8 = vsel %vm1741_vm2, %v1726_v38, %v1728_v14  ;;  %2334 = vmatpush.msrb.mxu1 %v1908_v56 }
 0x1c5   : > { %2570 = vmatpush.msrb.mxu3 %v2014_v26  ;;  %v2018_v26 = vld [vmem:[%s7129_s3 + $0x608] sm:$0xff] }
 0x1c7   : > { %3766 = vmatmul.msk.f32.gmra.mxu0 %vm1802_vm4, %v6201_v2  ;;  %3796 = vmatmul.msk.f32.gmra.mxu2 %vm1802_vm4, %v6201_v2 }
 0x1c8   : > { %2571 = vmatpush.msrb.mxu3 %v2013_v43 }
 0x1c9   : > { %v1718_v12 = vpop.f32.mrf.mxu3 }
 0x1ca   : > { %v6212_v50 = vadd.f32 %v1718_v12, %v1690_v59  ;;  %v1730_v59 = vrot.slane %v6059_v25, 7  ;;  %v1907_v12 = vld [vmem:[%s7129_s3 + $0x290] sm:$0xff]  ;;  %2572 = vmatpush.msrb.mxu3 %v2012_v33  ;;  %v2004_v33 = vld [vmem:[%s7129_s3 + $0x598] sm:$0xff] }
 0x1cb   : > { %2335 = vmatpush.msrb.mxu1 %v1907_v12  ;;  %v1736_v12 = vrot.slane %v6190_v24, 7 }
 0x1cc   : > { %2277 = vmatmul.f32.gmra.mxu3 %v6212_v50  ;;  %v6307_v57 = vpop.f32.mrf.mxu2  ;;  %v6331_v49 = vsel %vm1741_vm2, %v1728_v14, %v1730_v59  ;;  %v1984_v14 = vld [vmem:[%s7129_s3 + $0x4f8] sm:$0xff] }
 0x1cd   : > { %2336 = vmatpush.msrb.mxu1 %v1906_v6  ;;  %v6446_v6 = vsel %vm1741_vm2, %v1734_v46, %v1736_v12 }
 0x1cf   : > { %2461 = vmatmul.f32.vlgmr.msra.gmra.mxu0 %v5376_v15  ;;  %3797 = vmatmul.msk.f32.gmra.mxu2 %vm1802_vm4, %v6224_v39  ;;  %v2031_v15 = vld [vmem:[%s7129_s3 + $0x670] sm:$0xff] }
 0x1d0   : > { %2610 = vmatpush.msrb.mxu0 %v2031_v15  ;;  %v2009_v15 = vld [vmem:[%s7129_s3 + $0x5c0] sm:$0xff] }
 0x1d1   : > { %v1720_v21 = vpop.f32.mrf.mxu3 }
 0x1d2   : > { %v6236_v29 = vadd.f32 %v1720_v21, %v1692_v55  ;;  %2611 = vmatpush.msrb.mxu0 %v2030_v51  ;;  %v2010_v55 = vld [vmem:[%s7129_s3 + $0x5c8] sm:$0xff]  ;;  %v2021_v51 = vld [vmem:[%s7129_s3 + $0x620] sm:$0xff] }
 0x1d3   : > { %v2022_v21 = vld [vmem:[%s7129_s3 + $0x628] sm:$0xff] }
 0x1d4   : > { %v1740_v18 = vrot.slane %v6236_v29, 7  ;;  %2612 = vmatpush.msrb.mxu0 %v2029_v63  ;;  %v6327_v0 = vpop.f32.mrf.mxu0  ;;  %v6356_v22 = vpop.f32.mrf.mxu2 }
 0x1d6   : > { %v1755_v47 = vsel %vm1741_vm2, %v1740_v18, %v1726_v38  ;;  %2613 = vmatpush.msrb.mxu0 %v2028_v17  ;;  %v1732_v38 = vrot.slane %v6116_v62, 7  ;;  %v2007_v17 = vld [vmem:[%s7129_s3 + $0x5b0] sm:$0xff] }
 0x1d7   : > { %3753 = vmatmul.msk.f32.gmra.mxu1 %vm1756_vm1, %v1755_v47  ;;  %3782 = vmatmul.msk.f32.vlgmr.msra.gmra.mxu3 %vm1756_vm1, %v1755_v47  ;;  %v1905_v47 = vld [vmem:[%s7129_s3 + $0x280] sm:$0xff] }
 0x1d8   : > { %2464 = vmatmul.f32.gmra.mxu0 %v5413_v10  ;;  %2707 = vmatmul.f32.vlgmr.msrb.gmra.mxu2 %v5413_v10  ;;  %v2027_v10 = vld [vmem:[%s7129_s3 + $0x650] sm:$0xff]  ;;  %v6372_v40 = vsel %vm1741_vm2, %v1730_v59, %v1732_v38  ;;  %v6411_v56 = vsel %vm1741_vm2, %v1732_v38, %v1734_v46  ;;  %v1982_v59 = vld [vmem:[%s7129_s3 + $0x4e8] sm:$0xff]  ;;  %v1774_v46 = vrot.slane %v5999_v30, 1 }
 0x1d9   : > { %2614 = vmatpush.msrb.mxu0 %v2027_v10  ;;  %2337 = vmatpush.msrb.mxu1 %v1905_v47  ;;  %v2006_v10 = vld [vmem:[%s7129_s3 + $0x5a8] sm:$0xff] }
 0x1db   : > { %2615 = vmatpush.msrb.mxu0 %v2026_v23  ;;  %2486 = vmatpush.msra.mxu1 %v1984_v14  ;;  %v1983_v23 = vld [vmem:[%s7129_s3 + $0x4f0] sm:$0xff] }
 0x1dc   : > { %v6368_v63 = vpop.f32.mrf.mxu0  ;;  %v6407_v43 = vpop.f32.mrf.mxu2 }
 0x1dd   : > { %2616 = vmatpush.msrb.mxu0 %v2025_v7  ;;  %2487 = vmatpush.msra.mxu1 %v1983_v23  ;;  %v2017_v7 = vld [vmem:[%s7129_s3 + $0x600] sm:$0xff]  ;;  %v2094_v23 = vld [vmem:[%s7129_s3 + $0x868] sm:$0xff] }
 0x1df   : > { %3754 = vmatmul.msk.f32.gmra.mxu1 %vm1756_vm1, %v6290_v8  ;;  %3783 = vmatmul.msk.f32.gmra.mxu3 %vm1756_vm1, %v6290_v8 }
 0x1e0   : > { %2467 = vmatmul.f32.gmra.mxu0 %v5455_v61  ;;  %2710 = vmatmul.f32.gmra.mxu2 %v5455_v61  ;;  %v2011_v61 = vld [vmem:[%s7129_s3 + $0x5d0] sm:$0xff] }
 0x1e1   : > { %2617 = vmatpush.msrb.mxu0 %v2024_v35  ;;  %2573 = vmatpush.msrb.mxu3 %v2011_v61  ;;  %v2003_v61 = vld [vmem:[%s7129_s3 + $0x590] sm:$0xff] }
 0x1e2   : > { %2488 = vmatpush.msra.mxu1 %v1982_v59  ;;  %v2093_v59 = vld [vmem:[%s7129_s3 + $0x860] sm:$0xff] }
 0x1e3   : > { %2618 = vmatpush.msrb.mxu0 %v2023_v16  ;;  %2574 = vmatpush.msrb.mxu3 %v2010_v55  ;;  %v2002_v16 = vld [vmem:[%s7129_s3 + $0x588] sm:$0xff]  ;;  %v1981_v55 = vld [vmem:[%s7129_s3 + $0x4e0] sm:$0xff] }
 0x1e4   : > { %v6428_v35 = vpop.f32.mrf.mxu0  ;;  %2489 = vmatpush.msra.mxu1 %v1981_v55  ;;  %v1776_v55 = vrot.slane %v6059_v25, 1 }
 0x1e5   : > { %2619 = vmatpush.msrb.mxu0 %v2022_v21  ;;  %2575 = vmatpush.msrb.mxu3 %v2009_v15  ;;  %v2001_v21 = vld [vmem:[%s7129_s3 + $0x580] sm:$0xff]  ;;  %v1980_v15 = vld [vmem:[%s7129_s3 + $0x4d8] sm:$0xff] }
 0x1e6   : > { %2490 = vmatpush.msra.mxu1 %v1980_v15  ;;  %v1973_v15 = vld [vmem:[%s7129_s3 + $0x4a0] sm:$0xff] }
 0x1e7   : > { %3755 = vmatmul.msk.f32.gmra.mxu1 %vm1756_vm1, %v6331_v49  ;;  %3784 = vmatmul.msk.f32.gmra.mxu3 %vm1756_vm1, %v6331_v49 }
 0x1e8   : > { %2470 = vmatmul.f32.gmra.mxu0 %v5488_v60  ;;  %2713 = vmatmul.f32.gmra.mxu2 %v5488_v60  ;;  %v2008_v60 = vld [vmem:[%s7129_s3 + $0x5b8] sm:$0xff] }
 0x1e9   : > { %2620 = vmatpush.msrb.mxu0 %v2021_v51  ;;  %2576 = vmatpush.msrb.mxu3 %v2008_v60  ;;  %v1738_v51 = vrot.slane %v6212_v50, 7  ;;  %v1979_v60 = vld [vmem:[%s7129_s3 + $0x4d0] sm:$0xff] }
 0x1ea   : > { %2491 = vmatpush.msra.mxu1 %v1979_v60  ;;  %v2077_v60 = vld [vmem:[%s7129_s3 + $0x7e0] sm:$0xff] }
 0x1eb   : > { %2621 = vmatpush.msrb.mxu0 %v2020_v42  ;;  %2577 = vmatpush.msrb.mxu3 %v2007_v17  ;;  %v6470_v47 = vsel %vm1741_vm2, %v1736_v12, %v1738_v51  ;;  %v1977_v17 = vld [vmem:[%s7129_s3 + $0x4c0] sm:$0xff]  ;;  %v2080_v12 = vld [vmem:[%s7129_s3 + $0x7f8] sm:$0xff] }
 0x1ec   : > { %v6462_v38 = vpop.f32.mrf.mxu0 }
 0x1ed   : > { %2622 = vmatpush.msrb.mxu0 %v2019_v20  ;;  %2578 = vmatpush.msrb.mxu3 %v2006_v10  ;;  %v6494_v20 = vsel %vm1741_vm2, %v1738_v51, %v1740_v18  ;;  %v2096_v18 = vld [vmem:[%s7129_s3 + $0x878] sm:$0xff]  ;;  %v2078_v51 = vld [vmem:[%s7129_s3 + $0x7e8] sm:$0xff] }
 0x1ee   : > { %4012 = vmatpush.msra.mxu2 %v2096_v18 }
 0x1ef   : > { %3756 = vmatmul.msk.f32.gmra.mxu1 %vm1756_vm1, %v6372_v40  ;;  %3785 = vmatmul.msk.f32.gmra.mxu3 %vm1756_vm1, %v6372_v40 }
 0x1f0   : > { %2473 = vmatmul.f32.gmra.mxu0 %v5516_v41  ;;  %2716 = vmatmul.f32.gmra.mxu2 %v5516_v41  ;;  %v2005_v41 = vld [vmem:[%s7129_s3 + $0x5a0] sm:$0xff] }
 0x1f1   : > { %2623 = vmatpush.msrb.mxu0 %v2018_v26  ;;  %2579 = vmatpush.msrb.mxu3 %v2005_v41  ;;  %v2095_v26 = vld [vmem:[%s7129_s3 + $0x870] sm:$0xff] }
 0x1f2   : > { %v1975_v41 = vld [vmem:[%s7129_s3 + $0x4b0] sm:$0xff]  ;;  %4013 = vmatpush.msra.mxu2 %v2095_v26 }
 0x1f3   : > { %2624 = vmatpush.msrb.mxu0 %v2017_v7  ;;  %2580 = vmatpush.msrb.mxu3 %v2004_v33 }
 0x1f4   : > { %v6488_v14 = vpop.f32.mrf.mxu0  ;;  %4014 = vmatpush.msra.mxu2 %v2094_v23 }
 0x1f5   : > { %2581 = vmatpush.msrb.mxu3 %v2003_v61  ;;  %2773 = vmatpush.msra.mxu0 %v2096_v18  ;;  %v1974_v61 = vld [vmem:[%s7129_s3 + $0x4a8] sm:$0xff] }
 0x1f6   : > { %4015 = vmatpush.msra.mxu2 %v2093_v59 }
 0x1f7   : > { %3757 = vmatmul.msk.f32.gmra.mxu1 %vm1756_vm1, %v6411_v56  ;;  %3786 = vmatmul.msk.f32.gmra.mxu3 %vm1756_vm1, %v6411_v56 }
 0x1f8   : > { %2476 = vmatmul.f32.gmra.mxu0 %v5532_v52  ;;  %2719 = vmatmul.f32.gmra.mxu2 %v5532_v52  ;;  %v6442_v52 = vpop.f32.mrf.mxu2 }
 0x1f9   : > { %2582 = vmatpush.msrb.mxu3 %v2002_v16  ;;  %2774 = vmatpush.msra.mxu0 %v2095_v26  ;;  %v2092_v16 = vld [vmem:[%s7129_s3 + $0x858] sm:$0xff] }
 0x1fa   : > { %4016 = vmatpush.msra.mxu2 %v2092_v16  ;;  %v2076_v26 = vld [vmem:[%s7129_s3 + $0x7d8] sm:$0xff] }
 0x1fb   : > { %2583 = vmatpush.msrb.mxu3 %v2001_v21  ;;  %2775 = vmatpush.msra.mxu0 %v2094_v23  ;;  %v2079_v21 = vld [vmem:[%s7129_s3 + $0x7f0] sm:$0xff]  ;;  %v2088_v23 = vld [vmem:[%s7129_s3 + $0x838] sm:$0xff] }
 0x1fc   : > { %v6523_v7 = vpop.f32.mrf.mxu0 }
 0x1fd   : > { %2776 = vmatpush.msra.mxu0 %v2093_v59  ;;  %2732 = vmatpush.msra.mxu3 %v2080_v12  ;;  %v2074_v59 = vld [vmem:[%s7129_s3 + $0x7c8] sm:$0xff]  ;;  %v6610_v12 = vld [vmem:[%s7130_s4] ss:$0 sm:$0xff] }
 0x1ff   : > { %3758 = vmatmul.msk.f32.gmra.mxu1 %vm1756_vm1, %v6446_v6  ;;  %3787 = vmatmul.msk.f32.gmra.mxu3 %vm1756_vm1, %v6446_v6 }
 0x200   : > { %2479 = vmatmul.f32.gmra.mxu0 %v5546_v44  ;;  %2722 = vmatmul.f32.gmra.mxu2 %v5546_v44  ;;  %v1978_v44 = vld [vmem:[%s7129_s3 + $0x4c8] sm:$0xff]  ;;  %v6481_v42 = vpop.f32.mrf.mxu2 }
 0x201   : > { %2492 = vmatpush.msra.mxu1 %v1978_v44  ;;  %2777 = vmatpush.msra.mxu0 %v2092_v16  ;;  %v6566_v44 = vsel %vm1787_vm3, %v1774_v46, %v1776_v55  ;;  %v2257_v16 = vpop.f32.mrf.mxu3 }
 0x202   : > { %2733 = vmatpush.msra.mxu3 %v2079_v21 }
 0x203   : > { %2493 = vmatpush.msra.mxu1 %v1977_v17  ;;  %v2090_v17 = vld [vmem:[%s7129_s3 + $0x848] sm:$0xff] }
 0x204   : > { %2734 = vmatpush.msra.mxu3 %v2078_v51  ;;  %v6580_v18 = vpop.f32.mrf.mxu0  ;;  %v2086_v51 = vld [vmem:[%s7129_s3 + $0x828] sm:$0xff] }
 0x206   : > { %2735 = vmatpush.msra.mxu3 %v2077_v60  ;;  %v2072_v60 = vld [vmem:[%s7129_s3 + $0x7b8] sm:$0xff] }
 0x207   : > { %3759 = vmatmul.msk.f32.gmra.mxu1 %vm1756_vm1, %v6470_v47  ;;  %3788 = vmatmul.msk.f32.gmra.mxu3 %vm1756_vm1, %v6470_v47 }
 0x208   : > { %2482 = vmatmul.f32.gmra.mxu0 %v5562_v45  ;;  %2725 = vmatmul.f32.gmra.mxu2 %v5562_v45  ;;  %v1976_v45 = vld [vmem:[%s7129_s3 + $0x4b8] sm:$0xff]  ;;  %v6509_v10 = vpop.f32.mrf.mxu2 }
 0x209   : > { %2494 = vmatpush.msra.mxu1 %v1976_v45  ;;  %v1972_v45 = vld [vmem:[%s7129_s3 + $0x498] sm:$0xff]  ;;  %2736 = vmatpush.msra.mxu3 %v2076_v26 }
 0x20b   : > { %2495 = vmatpush.msra.mxu1 %v1975_v41  ;;  %v1778_v41 = vrot.slane %v6116_v62, 1 }
 0x20d   : > { %2496 = vmatpush.msra.mxu1 %v1974_v61  ;;  %v2073_v61 = vld [vmem:[%s7129_s3 + $0x7c0] sm:$0xff]  ;;  %v6614_v21 = vsel %vm1787_vm3, %v1776_v55, %v1778_v41  ;;  %v2135_v55 = vadd.f32 %v6610_v12, %v6273_v34 }
 0x20e   : > { %v2085_v34 = vld [vmem:[%s7129_s3 + $0x820] sm:$0xff] }
 0x20f   : > { %2338 = vmatmul.f32.vlgmr.msrb.gmra.mxu1 %v4159_v53  ;;  %3789 = vmatmul.msk.f32.gmra.mxu3 %vm1756_vm1, %v6494_v20 }
 0x210   : > { %3806 = vmatmul.msk.f32.vlgmr.msrb.gmra.mxu0 %vm1756_vm1, %v5634_v3  ;;  %2728 = vmatmul.f32.gmra.mxu2 %v4159_v53  ;;  %v1772_v3 = vrot.slane %v5936_v13, 1 }
 0x211   : > { %2497 = vmatpush.msra.mxu1 %v1973_v15  ;;  %v1970_v15 = vld [vmem:[%s7129_s3 + $0x488] sm:$0xff] }
 0x212   : > { %v1801_v33 = vsel %vm1787_vm3, %v1772_v3, %v1774_v46  ;;  %v2089_v46 = vld [vmem:[%s7129_s3 + $0x840] sm:$0xff] }
 0x213   : > { %2498 = vmatpush.msra.mxu1 %v1972_v45  ;;  %v1780_v45 = vrot.slane %v6159_v58, 1 }
 0x217   : > { %3767 = vmatmul.msk.f32.gmra.mxu1 %vm1802_vm4, %v1801_v33  ;;  %3798 = vmatmul.msk.f32.vlgmr.msrb.gmra.mxu3 %vm1802_vm4, %v1801_v33  ;;  %v1971_v33 = vld [vmem:[%s7129_s3 + $0x490] sm:$0xff] }
 0x218   : > { %3807 = vmatmul.msk.f32.gmra.mxu0 %vm1756_vm1, %v5687_v31  ;;  %v2091_v31 = vld [vmem:[%s7129_s3 + $0x850] sm:$0xff]  ;;  %2499 = vmatpush.msra.mxu1 %v1971_v33  ;;  %v2069_v33 = vld [vmem:[%s7129_s3 + $0x7a0] sm:$0xff] }
 0x219   : > { %2778 = vmatpush.msra.mxu0 %v2091_v31  ;;  %4017 = vmatpush.msra.mxu2 %v2091_v31  ;;  %v2087_v31 = vld [vmem:[%s7129_s3 + $0x830] sm:$0xff] }
 0x21a   : > { %2500 = vmatpush.msra.mxu1 %v1970_v15 }
 0x21b   : > { %2779 = vmatpush.msra.mxu0 %v2090_v17  ;;  %4018 = vmatpush.msra.mxu2 %v2090_v17  ;;  %v2298_v17 = vpop.f32.mrf.mxu0 }
 0x21d   : > { %2780 = vmatpush.msra.mxu0 %v2089_v46  ;;  %4019 = vmatpush.msra.mxu2 %v2089_v46  ;;  %v1969_v46 = vld [vmem:[%s7129_s3 + $0x480] sm:$0xff] }
 0x21e   : > { %2501 = vmatpush.msra.mxu1 %v1969_v46 }
 0x21f   : > { %3768 = vmatmul.msk.f32.gmra.mxu1 %vm1802_vm4, %v6566_v44  ;;  %3799 = vmatmul.msk.f32.gmra.mxu3 %vm1802_vm4, %v6566_v44  ;;  %v6672_v15 = vpop.f32.mrf.mxu3 }
 0x220   : > { %3808 = vmatmul.msk.f32.gmra.mxu0 %vm1756_vm1, %v5737_v37  ;;  %v2075_v37 = vld [vmem:[%s7129_s3 + $0x7d0] sm:$0xff]  ;;  %4020 = vmatpush.msra.mxu2 %v2088_v23  ;;  %v2175_v26 = vpop.f32.mrf.mxu1 }
 0x221   : > { %2737 = vmatpush.msra.mxu3 %v2075_v37  ;;  %2781 = vmatpush.msra.mxu0 %v2088_v23  ;;  %v2176_v23 = vadd.f32 %v2175_v26, %v2135_v55  ;;  %v2070_v37 = vld [vmem:[%s7129_s3 + $0x7a8] sm:$0xff]  ;;  %v2068_v55 = vld [vmem:[%s7129_s3 + $0x798] sm:$0xff] }
 0x222   : > { %4021 = vmatpush.msra.mxu2 %v2087_v31  ;;  %v2066_v26 = vld [vmem:[%s7129_s3 + $0x788] sm:$0xff] }
 0x223   : > { %2738 = vmatpush.msra.mxu3 %v2074_v59  ;;  %2782 = vmatpush.msra.mxu0 %v2087_v31  ;;  %v6657_v59 = vsel %vm1787_vm3, %v1778_v41, %v1780_v45  ;;  %v2217_v31 = vadd.f32 %v6217_v32, %v2176_v23  ;;  %v2048_v41 = vld [vmem:[%s7129_s3 + $0x6f8] sm:$0xff]  ;;  %v2083_v32 = vld [vmem:[%s7129_s3 + $0x810] sm:$0xff]  ;;  %v6693_v46 = vpop.f32.mrf.mxu0 }
 0x224   : > { %4022 = vmatpush.msra.mxu2 %v2086_v51  ;;  %2650 = vmatpush.msrb.mxu1 %v2048_v41  ;;  %v2045_v41 = vld [vmem:[%s7129_s3 + $0x6e0] sm:$0xff] }
 0x225   : > { %2739 = vmatpush.msra.mxu3 %v2073_v61  ;;  %2783 = vmatpush.msra.mxu0 %v2086_v51  ;;  %v2084_v61 = vld [vmem:[%s7129_s3 + $0x818] sm:$0xff]  ;;  %v1782_v51 = vrot.slane %v6190_v24, 1 }
 0x226   : > { %4023 = vmatpush.msra.mxu2 %v2085_v34 }
 0x227   : > { %3769 = vmatmul.msk.f32.gmra.mxu1 %vm1802_vm4, %v6614_v21  ;;  %3800 = vmatmul.msk.f32.gmra.mxu3 %vm1802_vm4, %v6614_v21 }
 0x228   : > { %3809 = vmatmul.msk.f32.gmra.mxu0 %vm1756_vm1, %v5786_v5  ;;  %2740 = vmatpush.msra.mxu3 %v2072_v60  ;;  %v2071_v5 = vld [vmem:[%s7129_s3 + $0x7b0] sm:$0xff]  ;;  %v2082_v60 = vld [vmem:[%s7129_s3 + $0x808] sm:$0xff] }
 0x229   : > { %2784 = vmatpush.msra.mxu0 %v2085_v34  ;;  %v2047_v34 = vld [vmem:[%s7129_s3 + $0x6f0] sm:$0xff]  ;;  %4024 = vmatpush.msra.mxu2 %v2084_v61 }
 0x22a   : > { %2741 = vmatpush.msra.mxu3 %v2071_v5  ;;  %v2258_v5 = vadd.f32 %v2257_v16, %v2217_v31  ;;  %2651 = vmatpush.msrb.mxu1 %v2047_v34  ;;  %v2081_v16 = vld [vmem:[%s7129_s3 + $0x800] sm:$0xff]  ;;  %v6723_v31 = vpop.f32.mrf.mxu2 }
 0x22b   : > { %2785 = vmatpush.msra.mxu0 %v2084_v61  ;;  %4025 = vmatpush.msra.mxu2 %v2083_v32  ;;  %v1784_v61 = vrot.slane %v6212_v50, 1 }
 0x22c   : > { %2742 = vmatpush.msra.mxu3 %v2070_v37  ;;  %v6698_v23 = vadd.f32 %v2298_v17, %v2258_v5  ;;  %v6702_v37 = vsel %vm1787_vm3, %v1780_v45, %v1782_v51  ;;  %v2046_v17 = vld [vmem:[%s7129_s3 + $0x6e8] sm:$0xff]  ;;  %v2263_v45 = vpop.f32.mrf.mxu3 }
 0x22d   : > { %2786 = vmatpush.msra.mxu0 %v2083_v32  ;;  %4026 = vmatpush.msra.mxu2 %v2082_v60  ;;  %v2304_v32 = vpop.f32.mrf.mxu0 }
 0x22e   : > { %2743 = vmatpush.msra.mxu3 %v2069_v33  ;;  %v2065_v33 = vld [vmem:[%s7129_s3 + $0x780] sm:$0xff]  ;;  %2652 = vmatpush.msrb.mxu1 %v2046_v17  ;;  %v2040_v17 = vld [vmem:[%s7129_s3 + $0x6b8] sm:$0xff] }
 0x22f   : > { %3770 = vmatmul.msk.f32.gmra.mxu1 %vm1802_vm4, %v6657_v59  ;;  %3801 = vmatmul.msk.f32.gmra.mxu3 %vm1802_vm4, %v6657_v59 }
 0x230   : > { %3810 = vmatmul.msk.f32.gmra.mxu0 %vm1756_vm1, %v5816_v1  ;;  %2744 = vmatpush.msra.mxu3 %v2068_v55  ;;  %v2067_v1 = vld [vmem:[%s7129_s3 + $0x790] sm:$0xff]  ;;  %v2044_v55 = vld [vmem:[%s7129_s3 + $0x6d8] sm:$0xff] }
 0x231   : > { %2787 = vmatpush.msra.mxu0 %v2082_v60  ;;  %4027 = vmatpush.msra.mxu2 %v2081_v16  ;;  %v2043_v60 = vld [vmem:[%s7129_s3 + $0x6d0] sm:$0xff] }
 0x232   : > { %2745 = vmatpush.msra.mxu3 %v2067_v1  ;;  %2810 = vmatmul.f32.vlgmr.msra.gmra.mxu2 %v4159_v53 }
 0x233   : > { %2788 = vmatpush.msra.mxu0 %v2081_v16  ;;  %2653 = vmatpush.msrb.mxu1 %v2045_v41 }
 0x234   : > { %2746 = vmatpush.msra.mxu3 %v2066_v26  ;;  %v2266_v1 = vpop.f32.mrf.mxu3  ;;  %v2041_v26 = vld [vmem:[%s7129_s3 + $0x6c0] sm:$0xff] }
 0x235   : > { %2654 = vmatpush.msrb.mxu1 %v2044_v55  ;;  %v2307_v5 = vpop.f32.mrf.mxu0 }
 0x236   : > { %2747 = vmatpush.msra.mxu3 %v2065_v33 }
 0x237   : > { %3771 = vmatmul.msk.f32.gmra.mxu1 %vm1802_vm4, %v6702_v37  ;;  %3802 = vmatmul.msk.f32.gmra.mxu3 %vm1802_vm4, %v6702_v37 }
 0x238   : > { %3811 = vmatmul.msk.f32.gmra.mxu0 %vm1756_vm1, %v5840_v11  ;;  %v6731_v11 = vsel %vm1787_vm3, %v1782_v51, %v1784_v61  ;;  %v1786_v51 = vrot.slane %v6236_v29, 1  ;;  %2655 = vmatpush.msrb.mxu1 %v2043_v60 }
 0x23a   : > { %v6751_v34 = vsel %vm1787_vm3, %v1784_v61, %v1786_v51  ;;  %v6772_v33 = vsel %vm1787_vm3, %v1786_v51, %v1772_v3  ;;  %v2138_v3 = vadd.f32 %v6610_v12, %v6327_v0 }
 0x23c   : > { %v6766_v16 = vpop.f32.mrf.mxu3 }
 0x23d   : > { %v2310_v61 = vpop.f32.mrf.mxu0 }
 0x23f   : > { %3772 = vmatmul.msk.f32.gmra.mxu1 %vm1802_vm4, %v6731_v11  ;;  %3803 = vmatmul.msk.f32.gmra.mxu3 %vm1802_vm4, %v6731_v11 }
 0x240   : > { %3812 = vmatmul.msk.f32.gmra.mxu0 %vm1756_vm1, %v5864_v27  ;;  %v2042_v27 = vld [vmem:[%s7129_s3 + $0x6c8] sm:$0xff] }
 0x241   : > { %2656 = vmatpush.msrb.mxu1 %v2042_v27 }
 0x243   : > { %2657 = vmatpush.msrb.mxu1 %v2041_v26 }
 0x244   : > { %v6795_v60 = vpop.f32.mrf.mxu3 }
 0x245   : > { %2658 = vmatpush.msrb.mxu1 %v2040_v17  ;;  %v6809_v26 = vpop.f32.mrf.mxu0 }
 0x247   : > { %3773 = vmatmul.msk.f32.gmra.mxu1 %vm1802_vm4, %v6751_v34  ;;  %3804 = vmatmul.msk.f32.gmra.mxu3 %vm1802_vm4, %v6751_v34 }
 0x248   : > { %2646 = vmatmul.f32.gmra.mxu0 %v4159_v53 }
 0x24f   : > { %2502 = vmatmul.f32.vlgmr.msra.gmra.mxu1 %v5936_v13  ;;  %3805 = vmatmul.msk.f32.gmra.mxu3 %vm1802_vm4, %v6772_v33  ;;  %v2039_v13 = vld [vmem:[%s7129_s3 + $0x6b0] sm:$0xff] }
 0x250   : > { %3820 = vmatmul.msk.f32.vlgmr.msra.gmra.mxu0 %vm1802_vm4, %v5971_v9  ;;  %2659 = vmatpush.msrb.mxu1 %v2039_v13  ;;  %v2038_v9 = vld [vmem:[%s7129_s3 + $0x6a8] sm:$0xff]  ;;  %v2144_v13 = vadd.f32 %v6610_v12, %v6428_v35 }
 0x252   : > { %2660 = vmatpush.msrb.mxu1 %v2038_v9 }
 0x254   : > { %v2178_v41 = vpop.f32.mrf.mxu1 }
 0x255   : > { %v2179_v55 = vadd.f32 %v2178_v41, %v2138_v3 }
 0x257   : > { %v2220_v51 = vadd.f32 %v6249_v19, %v2179_v55  ;;  %2505 = vmatmul.f32.gmra.mxu1 %v5999_v30  ;;  %2748 = vmatmul.f32.vlgmr.msra.gmra.mxu3 %v5999_v30  ;;  %v2141_v19 = vadd.f32 %v6610_v12, %v6368_v63  ;;  %v2037_v30 = vld [vmem:[%s7129_s3 + $0x6a0] sm:$0xff]  ;;  %v2036_v63 = vld [vmem:[%s7129_s3 + $0x698] sm:$0xff] }
 0x258   : > { %3821 = vmatmul.msk.f32.gmra.mxu0 %vm1802_vm4, %v6034_v54  ;;  %2661 = vmatpush.msrb.mxu1 %v2037_v30 }
 0x259   : > { %v2261_v0 = vadd.f32 %v6672_v15, %v2220_v51  ;;  %v2316_v51 = vpop.f32.mrf.mxu0 }
 0x25a   : > { %2662 = vmatpush.msrb.mxu1 %v2036_v63 }
 0x25b   : > { %v6807_v27 = vadd.f32 %v6693_v46, %v2261_v0  ;;  %v6820_v46 = vpop.f32.mrf.mxu3 }
 0x25c   : > { %v2181_v17 = vpop.f32.mrf.mxu1 }
 0x25d   : > { %v2182_v3 = vadd.f32 %v2181_v17, %v2141_v19 }
 0x25f   : > { %v2223_v54 = vadd.f32 %v6307_v57, %v2182_v3  ;;  %2508 = vmatmul.f32.gmra.mxu1 %v6059_v25  ;;  %2751 = vmatmul.f32.gmra.mxu3 %v6059_v25  ;;  %v2035_v57 = vld [vmem:[%s7129_s3 + $0x690] sm:$0xff] }
 0x260   : > { %3822 = vmatmul.msk.f32.gmra.mxu0 %vm1802_vm4, %v6088_v48  ;;  %2663 = vmatpush.msrb.mxu1 %v2035_v57  ;;  %v2034_v48 = vld [vmem:[%s7129_s3 + $0x688] sm:$0xff] }
 0x261   : > { %v2264_v15 = vadd.f32 %v2263_v45, %v2223_v54  ;;  %v2147_v45 = vadd.f32 %v6610_v12, %v6462_v38  ;;  %v2319_v38 = vpop.f32.mrf.mxu0 }
 0x262   : > { %2664 = vmatpush.msrb.mxu1 %v2034_v48 }
 0x263   : > { %v6827_v25 = vadd.f32 %v2304_v32, %v2264_v15  ;;  %v2383_v15 = vpop.f32.mrf.mxu2 }
 0x264   : > { %v2184_v41 = vpop.f32.mrf.mxu1 }
 0x265   : > { %v2185_v55 = vadd.f32 %v2184_v41, %v2144_v13 }
 0x267   : > { %v2226_v9 = vadd.f32 %v6356_v22, %v2185_v55  ;;  %2511 = vmatmul.f32.gmra.mxu1 %v6116_v62  ;;  %2754 = vmatmul.f32.gmra.mxu3 %v6116_v62  ;;  %v2033_v22 = vld [vmem:[%s7129_s3 + $0x680] sm:$0xff]  ;;  %v6845_v62 = vpop.f32.mrf.mxu3 }
 0x268   : > { %3823 = vmatmul.msk.f32.gmra.mxu0 %vm1802_vm4, %v6140_v28  ;;  %2665 = vmatpush.msrb.mxu1 %v2033_v22  ;;  %v2112_v28 = vld [vmem:[%s7129_s3 + $0x8f8] sm:$0xff] }
 0x269   : > { %v2267_v35 = vadd.f32 %v2266_v1, %v2226_v9  ;;  %4028 = vmatpush.msrb.mxu3 %v2112_v28 }
 0x26a   : > { %2814 = vmatpush.msra.mxu1 %v2112_v28 }
 0x26b   : > { %v6843_v32 = vadd.f32 %v2307_v5, %v2267_v35  ;;  %v2386_v35 = vpop.f32.mrf.mxu2 }
 0x26c   : > { %v2187_v0 = vpop.f32.mrf.mxu1 }
 0x26d   : > { %v2188_v19 = vadd.f32 %v2187_v0, %v2147_v45 }
 0x26f   : > { %v2229_v30 = vadd.f32 %v6407_v43, %v2188_v19  ;;  %2514 = vmatmul.f32.gmra.mxu1 %v6159_v58  ;;  %2757 = vmatmul.f32.gmra.mxu3 %v6159_v58  ;;  %v2111_v43 = vld [vmem:[%s7129_s3 + $0x8f0] sm:$0xff]  ;;  %v2150_v58 = vadd.f32 %v6610_v12, %v6488_v14  ;;  %v2421_v17 = vpop.f32.mrf.mxu3 }
 0x270   : > { %3824 = vmatmul.msk.f32.gmra.mxu0 %vm1802_vm4, %v6177_v4  ;;  %2815 = vmatpush.msra.mxu1 %v2111_v43 }
 0x271   : > { %v2270_v1 = vadd.f32 %v6766_v16, %v2229_v30  ;;  %4029 = vmatpush.msrb.mxu3 %v2111_v43  ;;  %v2110_v16 = vld [vmem:[%s7129_s3 + $0x8e8] sm:$0xff] }
 0x272   : > { %2816 = vmatpush.msra.mxu1 %v2110_v16  ;;  %v2102_v43 = vld [vmem:[%s7129_s3 + $0x8a8] sm:$0xff] }
 0x273   : > { %v6862_v5 = vadd.f32 %v2310_v61, %v2270_v1  ;;  %4030 = vmatpush.msrb.mxu3 %v2110_v16  ;;  %v2462_v61 = vpop.f32.mrf.mxu0  ;;  %v2389_v19 = vpop.f32.mrf.mxu2 }
 0x274   : > { %v2190_v3 = vpop.f32.mrf.mxu1 }
 0x275   : > { %v2191_v54 = vadd.f32 %v2190_v3, %v2150_v58 }
 0x277   : > { %v2232_v4 = vadd.f32 %v6442_v52, %v2191_v54  ;;  %2517 = vmatmul.f32.gmra.mxu1 %v6190_v24  ;;  %2760 = vmatmul.f32.gmra.mxu3 %v6190_v24  ;;  %v2109_v52 = vld [vmem:[%s7129_s3 + $0x8e0] sm:$0xff]  ;;  %v2153_v24 = vadd.f32 %v6610_v12, %v6523_v7  ;;  %v2424_v57 = vpop.f32.mrf.mxu3 }
 0x278   : > { %3825 = vmatmul.msk.f32.gmra.mxu0 %vm1802_vm4, %v6201_v2  ;;  %2817 = vmatpush.msra.mxu1 %v2109_v52  ;;  %v2101_v54 = vld [vmem:[%s7129_s3 + $0x8a0] sm:$0xff] }
 0x279   : > { %v2273_v14 = vadd.f32 %v6795_v60, %v2232_v4  ;;  %4031 = vmatpush.msrb.mxu3 %v2109_v52  ;;  %v2108_v60 = vld [vmem:[%s7129_s3 + $0x8d8] sm:$0xff] }
 0x27a   : > { %2818 = vmatpush.msra.mxu1 %v2108_v60 }
 0x27b   : > { %v6880_v63 = vadd.f32 %v6809_v26, %v2273_v14  ;;  %4032 = vmatpush.msrb.mxu3 %v2108_v60  ;;  %v2156_v26 = vadd.f32 %v6610_v12, %v6580_v18  ;;  %v2465_v55 = vpop.f32.mrf.mxu0  ;;  %v2105_v12 = vld [vmem:[%s7129_s3 + $0x8c0] sm:$0xff]  ;;  %v2392_v3 = vpop.f32.mrf.mxu2 }
 0x27c   : > { %v2193_v13 = vpop.f32.mrf.mxu1 }
 0x27d   : > { %v2194_v2 = vadd.f32 %v2193_v13, %v2153_v24 }
 0x27f   : > { %v2235_v41 = vadd.f32 %v6481_v42, %v2194_v2  ;;  %2520 = vmatmul.f32.gmra.mxu1 %v6212_v50  ;;  %2763 = vmatmul.f32.gmra.mxu3 %v6212_v50  ;;  %v2107_v42 = vld [vmem:[%s7129_s3 + $0x8d0] sm:$0xff]  ;;  %v2427_v45 = vpop.f32.mrf.mxu3 }
 0x280   : > { %3826 = vmatmul.msk.f32.gmra.mxu0 %vm1802_vm4, %v6224_v39  ;;  %2819 = vmatpush.msra.mxu1 %v2107_v42 }
 0x281   : > { %v2276_v7 = vadd.f32 %v6820_v46, %v2235_v41  ;;  %4033 = vmatpush.msrb.mxu3 %v2107_v42  ;;  %v2106_v46 = vld [vmem:[%s7129_s3 + $0x8c8] sm:$0xff] }
 0x282   : > { %2820 = vmatpush.msra.mxu1 %v2106_v46  ;;  %v2098_v41 = vld [vmem:[%s7129_s3 + $0x888] sm:$0xff] }
 0x283   : > { %v6897_v50 = vadd.f32 %v2316_v51, %v2276_v7  ;;  %4034 = vmatpush.msrb.mxu3 %v2106_v46  ;;  %v2468_v22 = vpop.f32.mrf.mxu0  ;;  %v2395_v13 = vpop.f32.mrf.mxu2  ;;  %v2097_v7 = vld [vmem:[%s7129_s3 + $0x880] sm:$0xff] }
 0x284   : > { %v2196_v9 = vpop.f32.mrf.mxu1  ;;  %2821 = vmatpush.msra.mxu1 %v2105_v12 }
 0x285   : > { %v2197_v48 = vadd.f32 %v2196_v9, %v2156_v26  ;;  %4035 = vmatpush.msrb.mxu3 %v2105_v12 }
 0x287   : > { %v2238_v39 = vadd.f32 %v6509_v10, %v2197_v48  ;;  %2523 = vmatmul.f32.gmra.mxu1 %v6236_v29  ;;  %2766 = vmatmul.f32.gmra.mxu3 %v6236_v29  ;;  %v2430_v28 = vpop.f32.mrf.mxu3 }
 0x289   : > { %v2279_v18 = vadd.f32 %v6845_v62, %v2238_v39  ;;  %v2104_v62 = vld [vmem:[%s7129_s3 + $0x8b8] sm:$0xff] }
 0x28a   : > { %2822 = vmatpush.msra.mxu1 %v2104_v62  ;;  %4036 = vmatpush.msrb.mxu3 %v2104_v62 }
 0x28b   : > { %v6909_v10 = vadd.f32 %v2319_v38, %v2279_v18  ;;  %v2471_v58 = vpop.f32.mrf.mxu0  ;;  %v2398_v48 = vpop.f32.mrf.mxu2 }
 0x28c   : > { %v2339_v51 = vpop.f32.mrf.mxu1 }
 0x28d   : > { %v2340_v29 = vadd.f32 %v2339_v51, %v6698_v23  ;;  %v2103_v23 = vld [vmem:[%s7129_s3 + $0x8b0] sm:$0xff] }
 0x28e   : > { %2823 = vmatpush.msra.mxu1 %v2103_v23  ;;  %4037 = vmatpush.msrb.mxu3 %v2103_v23 }
 0x28f   : > { %v2381_v0 = vadd.f32 %v6723_v31, %v2340_v29  ;;  %3813 = vmatmul.msk.f32.vlgmr.msrb.gmra.mxu1 %vm1756_vm1, %v6290_v8  ;;  %2769 = vmatmul.f32.gmra.mxu3 %v4159_v53  ;;  %v2433_v4 = vpop.f32.mrf.mxu3 }
 0x290   : > { %2824 = vmatpush.msra.mxu1 %v2102_v43  ;;  %4038 = vmatpush.msrb.mxu3 %v2102_v43 }
 0x291   : > { %v2422_v30 = vadd.f32 %v2421_v17, %v2381_v0 }
 0x292   : > { %2825 = vmatpush.msra.mxu1 %v2101_v54  ;;  %4039 = vmatpush.msrb.mxu3 %v2101_v54 }
 0x293   : > { %v6923_v31 = vadd.f32 %v2462_v61, %v2422_v30  ;;  %v2100_v61 = vld [vmem:[%s7129_s3 + $0x898] sm:$0xff]  ;;  %v2474_v24 = vpop.f32.mrf.mxu0  ;;  %v2401_v29 = vpop.f32.mrf.mxu2 }
 0x294   : > { %v2342_v8 = vpop.f32.mrf.mxu1  ;;  %2826 = vmatpush.msra.mxu1 %v2100_v61  ;;  %4040 = vmatpush.msrb.mxu3 %v2100_v61 }
 0x295   : > { %v2343_v38 = vadd.f32 %v2342_v8, %v6807_v27 }
 0x297   : > { %v2384_v1 = vadd.f32 %v2383_v15, %v2343_v38  ;;  %3814 = vmatmul.msk.f32.gmra.mxu1 %vm1756_vm1, %v6331_v49  ;;  %v2099_v15 = vld [vmem:[%s7129_s3 + $0x890] sm:$0xff] }
 0x298   : > { %2827 = vmatpush.msra.mxu1 %v2099_v15  ;;  %4041 = vmatpush.msrb.mxu3 %v2099_v15 }
 0x299   : > { %v2425_v17 = vadd.f32 %v2424_v57, %v2384_v1  ;;  %v2436_v57 = vpop.f32.mrf.mxu3 }
 0x29a   : > { %4042 = vmatpush.msrb.mxu3 %v2098_v41  ;;  %2828 = vmatpush.msra.mxu1 %v2098_v41 }
 0x29b   : > { %v6935_v27 = vadd.f32 %v2465_v55, %v2425_v17  ;;  %v2477_v26 = vpop.f32.mrf.mxu0 }
 0x29c   : > { %v2345_v16 = vpop.f32.mrf.mxu1  ;;  %4043 = vmatpush.msrb.mxu3 %v2097_v7  ;;  %2829 = vmatpush.msra.mxu1 %v2097_v7 }
 0x29d   : > { %v2346_v49 = vadd.f32 %v2345_v16, %v6827_v25  ;;  %2851 = vmatmul.f32.vlgmr.msrb.gmra.mxu3 %v4159_v53 }
 0x29f   : > { %v2387_v14 = vadd.f32 %v2386_v35, %v2346_v49  ;;  %3815 = vmatmul.msk.f32.gmra.mxu1 %vm1756_vm1, %v6372_v40 }
 0x2a1   : > { %v2428_v52 = vadd.f32 %v2427_v45, %v2387_v14 }
 0x2a3   : > { %v6947_v25 = vadd.f32 %v2468_v22, %v2428_v52  ;;  %v2480_v12 = vpop.f32.mrf.mxu0 }
 0x2a4   : > { %v2348_v2 = vpop.f32.mrf.mxu1 }
 0x2a5   : > { %v2349_v40 = vadd.f32 %v2348_v2, %v6843_v32 }
 0x2a7   : > { %v2390_v60 = vadd.f32 %v2389_v19, %v2349_v40  ;;  %3816 = vmatmul.msk.f32.gmra.mxu1 %vm1756_vm1, %v6411_v56  ;;  %v2439_v56 = vpop.f32.mrf.mxu3 }
 0x2a9   : > { %v2431_v42 = vadd.f32 %v2430_v28, %v2390_v60  ;;  %v2544_v28 = vpop.f32.mrf.mxu2 }
 0x2ab   : > { %v2472_v32 = vadd.f32 %v2471_v58, %v2431_v42  ;;  %v2483_v30 = vpop.f32.mrf.mxu0 }
 0x2ac   : > { %v2351_v55 = vpop.f32.mrf.mxu1 }
 0x2ad   : > { %v2352_v9 = vadd.f32 %v2351_v55, %v6862_v5 }
 0x2af   : > { %v2393_v35 = vadd.f32 %v2392_v3, %v2352_v9  ;;  %3817 = vmatmul.msk.f32.gmra.mxu1 %vm1756_vm1, %v6446_v6  ;;  %v2442_v22 = vpop.f32.mrf.mxu3 }
 0x2b1   : > { %v2434_v39 = vadd.f32 %v2433_v4, %v2393_v35 }
 0x2b3   : > { %v2475_v46 = vadd.f32 %v2474_v24, %v2434_v39  ;;  %v2626_v58 = vpop.f32.mrf.mxu0 }
 0x2b4   : > { %v2354_v45 = vpop.f32.mrf.mxu1 }
 0x2b5   : > { %v2355_v18 = vadd.f32 %v2354_v45, %v6880_v63 }
 0x2b7   : > { %v2396_v51 = vadd.f32 %v2395_v13, %v2355_v18  ;;  %3818 = vmatmul.msk.f32.gmra.mxu1 %vm1756_vm1, %v6470_v47  ;;  %v2585_v8 = vpop.f32.mrf.mxu3 }
 0x2b9   : > { %v2437_v5 = vadd.f32 %v2436_v57, %v2396_v51 }
 0x2bb   : > { %v2478_v0 = vadd.f32 %v2477_v26, %v2437_v5  ;;  %v2629_v14 = vpop.f32.mrf.mxu0 }
 0x2bc   : > { %v2357_v62 = vpop.f32.mrf.mxu1 }
 0x2bd   : > { %v2358_v19 = vadd.f32 %v2357_v62, %v6897_v50  ;;  %v2547_v50 = vpop.f32.mrf.mxu2 }
 0x2bf   : > { %v2399_v6 = vadd.f32 %v2398_v48, %v2358_v19  ;;  %3819 = vmatmul.msk.f32.gmra.mxu1 %vm1756_vm1, %v6494_v20  ;;  %v2588_v4 = vpop.f32.mrf.mxu3 }
 0x2c1   : > { %v2440_v63 = vadd.f32 %v2439_v56, %v2399_v6 }
 0x2c3   : > { %v2481_v23 = vadd.f32 %v2480_v12, %v2440_v63  ;;  %v2632_v40 = vpop.f32.mrf.mxu0 }
 0x2c4   : > { %v2360_v38 = vpop.f32.mrf.mxu1 }
 0x2c5   : > { %v2361_v47 = vadd.f32 %v2360_v38, %v6909_v10 }
 0x2c7   : > { %v2402_v1 = vadd.f32 %v2401_v29, %v2361_v47  ;;  %2687 = vmatmul.f32.gmra.mxu1 %v4159_v53  ;;  %v2550_v53 = vpop.f32.mrf.mxu2  ;;  %v2591_v24 = vpop.f32.mrf.mxu3 }
 0x2c9   : > { %v2443_v43 = vadd.f32 %v2442_v22, %v2402_v1 }
 0x2cb   : > { %v2484_v17 = vadd.f32 %v2483_v30, %v2443_v43 }
 0x2cc   : > { %v2503_v3 = vpop.f32.mrf.mxu1 }
 0x2cd   : > { %v2504_v54 = vadd.f32 %v2503_v3, %v6923_v31 }
 0x2cf   : > { %v2545_v20 = vadd.f32 %v2544_v28, %v2504_v54  ;;  %3827 = vmatmul.msk.f32.vlgmr.msra.gmra.mxu1 %vm1802_vm4, %v6566_v44  ;;  %v2553_v57 = vpop.f32.mrf.mxu2  ;;  %v2594_v41 = vpop.f32.mrf.mxu3 }
 0x2d1   : > { %v2586_v16 = vadd.f32 %v2585_v8, %v2545_v20 }
 0x2d3   : > { %v2627_v49 = vadd.f32 %v2626_v58, %v2586_v16 }
 0x2d4   : > { %v2506_v10 = vpop.f32.mrf.mxu1 }
 0x2d5   : > { %v2507_v61 = vadd.f32 %v2506_v10, %v6935_v27 }
 0x2d7   : > { %v2548_v52 = vadd.f32 %v2547_v50, %v2507_v61  ;;  %3828 = vmatmul.msk.f32.gmra.mxu1 %vm1802_vm4, %v6614_v21  ;;  %v2635_v21 = vpop.f32.mrf.mxu0  ;;  %v2597_v48 = vpop.f32.mrf.mxu3 }
 0x2d9   : > { %v2589_v31 = vadd.f32 %v2588_v4, %v2548_v52 }
 0x2db   : > { %v2630_v15 = vadd.f32 %v2629_v14, %v2589_v31 }
 0x2dc   : > { %v2509_v13 = vpop.f32.mrf.mxu1 }
 0x2dd   : > { %v2510_v2 = vadd.f32 %v2509_v13, %v6947_v25  ;;  %v2556_v25 = vpop.f32.mrf.mxu2 }
 0x2df   : > { %v2551_v44 = vadd.f32 %v2550_v53, %v2510_v2  ;;  %3829 = vmatmul.msk.f32.gmra.mxu1 %vm1802_vm4, %v6657_v59  ;;  %v2638_v45 = vpop.f32.mrf.mxu0  ;;  %v2600_v29 = vpop.f32.mrf.mxu3 }
 0x2e1   : > { %v2592_v27 = vadd.f32 %v2591_v24, %v2551_v44 }
 0x2e3   : > { %v2633_v60 = vadd.f32 %v2632_v40, %v2592_v27 }
 0x2e4   : > { %v2512_v7 = vpop.f32.mrf.mxu1 }
 0x2e5   : > { %v2513_v42 = vadd.f32 %v2512_v7, %v2472_v32  ;;  %v2559_v18 = vpop.f32.mrf.mxu2 }
 0x2e7   : > { %v2554_v26 = vadd.f32 %v2553_v57, %v2513_v42  ;;  %3830 = vmatmul.msk.f32.gmra.mxu1 %vm1802_vm4, %v6702_v37  ;;  %v2641_v43 = vpop.f32.mrf.mxu0 }
 0x2e9   : > { %v2595_v55 = vadd.f32 %v2594_v41, %v2554_v26 }
 0x2eb   : > { %v2636_v9 = vadd.f32 %v2635_v21, %v2595_v55 }
 0x2ec   : > { %v2515_v35 = vpop.f32.mrf.mxu1 }
 0x2ed   : > { %v2516_v56 = vadd.f32 %v2515_v35, %v2475_v46  ;;  %v2562_v62 = vpop.f32.mrf.mxu2 }
 0x2ef   : > { %v2557_v39 = vadd.f32 %v2556_v25, %v2516_v56  ;;  %3831 = vmatmul.msk.f32.gmra.mxu1 %vm1802_vm4, %v6731_v11  ;;  %v2603_v11 = vpop.f32.mrf.mxu3  ;;  %v2644_v54 = vpop.f32.mrf.mxu0 }
 0x2f1   : > { %v2598_v59 = vadd.f32 %v2597_v48, %v2557_v39 }
 0x2f3   : > { %v2639_v32 = vadd.f32 %v2638_v45, %v2598_v59 }
 0x2f4   : > { %v2518_v12 = vpop.f32.mrf.mxu1 }
 0x2f5   : > { %v2519_v51 = vadd.f32 %v2518_v12, %v2478_v0  ;;  %v2565_v47 = vpop.f32.mrf.mxu2 }
 0x2f7   : > { %v2560_v37 = vadd.f32 %v2559_v18, %v2519_v51  ;;  %3832 = vmatmul.msk.f32.gmra.mxu1 %vm1802_vm4, %v6751_v34  ;;  %v2606_v58 = vpop.f32.mrf.mxu3  ;;  %v2647_v16 = vpop.f32.mrf.mxu0 }
 0x2f9   : > { %v2601_v5 = vadd.f32 %v2600_v29, %v2560_v37 }
 0x2fb   : > { %v2642_v55 = vadd.f32 %v2641_v43, %v2601_v5 }
 0x2fc   : > { %v2521_v22 = vpop.f32.mrf.mxu1 }
 0x2fd   : > { %v2522_v46 = vadd.f32 %v2521_v22, %v2481_v23  ;;  %v2708_v3 = vpop.f32.mrf.mxu2 }
 0x2ff   : > { %v2563_v19 = vadd.f32 %v2562_v62, %v2522_v46  ;;  %3833 = vmatmul.msk.f32.gmra.mxu1 %vm1802_vm4, %v6772_v33  ;;  %v2749_v4 = vpop.f32.mrf.mxu3  ;;  %v2790_v61 = vpop.f32.mrf.mxu0 }
 0x301   : > { %v2604_v6 = vadd.f32 %v2603_v11, %v2563_v19 }
 0x303   : > { %v2645_v11 = vadd.f32 %v2644_v54, %v2604_v6 }
 0x304   : > { %v2524_v30 = vpop.f32.mrf.mxu1 }
 0x305   : > { %v2525_v63 = vadd.f32 %v2524_v30, %v2484_v17  ;;  %v2711_v20 = vpop.f32.mrf.mxu2 }
 0x307   : > { %v2752_v14 = vpop.f32.mrf.mxu3  ;;  %v2793_v31 = vpop.f32.mrf.mxu0  ;;  %v2566_v42 = vadd.f32 %v2565_v47, %v2525_v63 }
 0x309   : > { %v2607_v25 = vadd.f32 %v2606_v58, %v2566_v42 }
 0x30b   : > { %v2648_v18 = vadd.f32 %v2647_v16, %v2607_v25 }
 0x30c   : > { %v2667_v0 = vpop.f32.mrf.mxu1 }
 0x30d   : > { %v2668_v28 = vadd.f32 %v2667_v0, %v2627_v49  ;;  %v2714_v10 = vpop.f32.mrf.mxu2 }
 0x30f   : > { %v2755_v53 = vpop.f32.mrf.mxu3  ;;  %v2796_v40 = vpop.f32.mrf.mxu0  ;;  %v2709_v48 = vadd.f32 %v2708_v3, %v2668_v28 }
 0x311   : > { %v2750_v51 = vadd.f32 %v2749_v4, %v2709_v48 }
 0x313   : > { %v2791_v30 = vadd.f32 %v2790_v61, %v2750_v51 }
 0x314   : > { %v2670_v8 = vpop.f32.mrf.mxu1 }
 0x315   : > { %v2671_v38 = vadd.f32 %v2670_v8, %v2630_v15  ;;  %v2717_v52 = vpop.f32.mrf.mxu2  ;;  %v2896_v8 = vld [vmem:[%s7131_s5 + $0x18] sm:$0xff] }
 0x316   : > { %2912 = vmatpush.msrb.mxu2 %v2896_v8 }
 0x317   : > { %v2758_v15 = vpop.f32.mrf.mxu3  ;;  %v2799_v41 = vpop.f32.mrf.mxu0  ;;  %v2712_v21 = vadd.f32 %v2711_v20, %v2671_v38 }
 0x31c   : > { %v2673_v1 = vpop.f32.mrf.mxu1 }
 0x31d   : > { %v2674_v34 = vadd.f32 %v2673_v1, %v2633_v60  ;;  %v2720_v2 = vpop.f32.mrf.mxu2 }
 0x31f   : > { %v2761_v44 = vpop.f32.mrf.mxu3  ;;  %v2715_v35 = vadd.f32 %v2714_v10, %v2674_v34  ;;  %v2802_v56 = vpop.f32.mrf.mxu0 }
 0x321   : > { %v2756_v29 = vadd.f32 %v2755_v53, %v2715_v35 }
 0x323   : > { %v2797_v0 = vadd.f32 %v2796_v40, %v2756_v29 }
 0x324   : > { %v2676_v23 = vpop.f32.mrf.mxu1 }
 0x325   : > { %v2677_v50 = vadd.f32 %v2676_v23, %v2636_v9  ;;  %v2723_v27 = vpop.f32.mrf.mxu2  ;;  %v2895_v23 = vld [vmem:[%s7131_s5 + $0x10] sm:$0xff] }
 0x326   : > { %2913 = vmatpush.msrb.mxu2 %v2895_v23  ;;  %v2967_v23 = vld [vmem:[%s7133_s7 + $0x18] sm:$0xff] }
 0x327   : > { %v2764_v60 = vpop.f32.mrf.mxu3  ;;  %v2718_v45 = vadd.f32 %v2717_v52, %v2677_v50  ;;  %v2805_v50 = vpop.f32.mrf.mxu0  ;;  %v2921_v52 = vld [vmem:[%s7132_s6] sm:$0x3] }
 0x328   : > { %3835 = vmatpush.msk.msra.mxu3 %vm2926_vm6, %v2921_v52 }
 0x329   : > { %v2759_v19 = vadd.f32 %v2758_v15, %v2718_v45 }
 0x32b   : > { %v2800_v6 = vadd.f32 %v2799_v41, %v2759_v19 }
 0x32c   : > { %v2679_v36 = vpop.f32.mrf.mxu1 }
 0x32d   : > { %v2680_v33 = vadd.f32 %v2679_v36, %v2639_v32  ;;  %v2726_v26 = vpop.f32.mrf.mxu2  ;;  %v2753_v32 = vadd.f32 %v2752_v14, %v2712_v21  ;;  %v2894_v36 = vld [vmem:[%s7131_s5 + $0x8] sm:$0xff]  ;;  %v2893_v14 = vld [vmem:[%s7131_s5] sm:$0xff] }
 0x32e   : > { %2914 = vmatpush.msrb.mxu2 %v2894_v36  ;;  %v2964_v36 = vld [vmem:[%s7133_s7] sm:$0xff] }
 0x32f   : > { %v2767_v39 = vpop.f32.mrf.mxu3  ;;  %v2721_v12 = vadd.f32 %v2720_v2, %v2680_v33  ;;  %v2794_v62 = vadd.f32 %v2793_v31, %v2753_v32  ;;  %v4160_v2 = vmov 64.0  }
 0x330   : > { %2915 = vmatpush.msrb.mxu2 %v2893_v14  ;;  %4089 = vrcp.f32 %v4160_v2 }
 0x331   : > { %v2762_v28 = vadd.f32 %v2761_v44, %v2721_v12 }
 0x332   : > { %3008 = vmatpush.msra.mxu2 %v2967_v23 }
 0x333   : > { %v2803_v4 = vadd.f32 %v2802_v56, %v2762_v28 }
 0x334   : > { %v2682_v17 = vpop.f32.mrf.mxu1 }
 0x335   : > { %v2683_v59 = vadd.f32 %v2682_v17, %v2642_v55  ;;  %v2729_v22 = vpop.f32.mrf.mxu2 }
 0x336   : > { %v4090_v48 = vpop.eup %4089 }
 0x337   : > { %v2724_v37 = vadd.f32 %v2723_v27, %v2683_v59  ;;  %v2770_v1 = vpop.f32.mrf.mxu3  ;;  %v2886_v12 = vmul.f32 64.0, %v4090_v48  ;;  %vm2890_vm7 = vweird.f32 %v4090_v48 }
 0x339   : > { %v2765_v34 = vadd.f32 %v2764_v60, %v2724_v37 }
 0x33b   : > { %v2806_v16 = vadd.f32 %v2805_v50, %v2765_v34  ;;  %v2966_v50 = vld [vmem:[%s7133_s7 + $0x10] sm:$0xff] }
 0x33c   : > { %v2685_v49 = vpop.f32.mrf.mxu1  ;;  %3009 = vmatpush.msra.mxu2 %v2966_v50 }
 0x33d   : > { %v2686_v38 = vadd.f32 %v2685_v49, %v2645_v11  ;;  %v2811_v61 = vpop.f32.mrf.mxu2 }
 0x33f   : > { %v2727_v33 = vadd.f32 %v2726_v26, %v2686_v38  ;;  %v2852_v41 = vpop.f32.mrf.mxu3  ;;  %v2808_v26 = vpop.f32.mrf.mxu0 }
 0x344   : > { %v2688_v24 = vpop.f32.mrf.mxu1 }
 0x345   : > { %v2689_v46 = vadd.f32 %v2688_v24, %v2648_v18 }
 0x347   : > { %v2730_v47 = vadd.f32 %v2729_v22, %v2689_v46  ;;  %v2887_v46 = vsub.f32 1.0, %v2886_v12 }
 0x349   : > { %v2771_v20 = vadd.f32 %v2770_v1, %v2730_v47  ;;  %v2888_v11 = vmul.f32 %v4090_v48, %v2887_v46 }
 0x34b   : > { %v2812_v40 = vadd.f32 %v2811_v61, %v2771_v20 }
 0x34c   : > { %v2831_v13 = vpop.f32.mrf.mxu1 }
 0x34d   : > { %v7003_v43 = vadd.f32 %v2831_v13, %v2791_v30  ;;  %v2768_v13 = vadd.f32 %v2767_v39, %v2727_v33  ;;  %v7043_v55 = vadd.f32 %v2852_v41, %v2812_v40 }
 0x34f   : > { %v2855_v17 = vmax.f32 %v7003_v43, 0.0  ;;  %v2862_v32 = vmax.f32 %v7043_v55, 0.0 }
 0x351   : > { %v2864_v44 = vsel %vm2863_vm5, %v2855_v17, 0.0  ;;  %v2877_v22 = vsel %vm2863_vm5, %v2862_v32, 0.0 }
 0x354   : > { %v2834_v57 = vpop.f32.mrf.mxu1 }
 0x355   : > { %v6998_v63 = vadd.f32 %v2834_v57, %v2794_v62 }
 0x357   : > { %v2856_v3 = vmax.f32 %v6998_v63, 0.0 }
 0x359   : > { %v2865_v24 = vsel %vm2863_vm5, %v2856_v3, 0.0 }
 0x35a   : > { %v2866_v60 = vadd.f32 %v2865_v24, %v2864_v44 }
 0x35c   : > { %v2837_v7 = vpop.f32.mrf.mxu1 }
 0x35d   : > { %v7005_v58 = vadd.f32 %v2837_v7, %v2797_v0  ;;  %v2889_v0 = vadd.f32 %v4090_v48, %v2888_v11 }
 0x35f   : > { %v2857_v10 = vmax.f32 %v7005_v58, 0.0  ;;  %v2891_v38 = vsel %vm2890_vm7, %v4090_v48, %v2889_v0 }
 0x361   : > { %v2867_v57 = vsel %vm2863_vm5, %v2857_v10, 0.0 }
 0x362   : > { %v2868_v21 = vadd.f32 %v2867_v57, %v2866_v60 }
 0x364   : > { %v2840_v9 = vpop.f32.mrf.mxu1 }
 0x365   : > { %v7011_v54 = vadd.f32 %v2840_v9, %v2800_v6  ;;  %v2809_v9 = vadd.f32 %v2808_v26, %v2768_v13 }
 0x367   : > { %v2858_v31 = vmax.f32 %v7011_v54, 0.0  ;;  %v4088_v54 = vld [vmem:[%s7134_s8] ss:$0 sm:$0xff] }
 0x369   : > { %v2869_v7 = vsel %vm2863_vm5, %v2858_v31, 0.0 }
 0x36a   : > { %v2870_v35 = vadd.f32 %v2869_v7, %v2868_v21 }
 0x36c   : > { %v2843_v5 = vpop.f32.mrf.mxu1 }
 0x36d   : > { %v7021_v49 = vadd.f32 %v2843_v5, %v2803_v4  ;;  %v2965_v4 = vld [vmem:[%s7133_s7 + $0x8] sm:$0xff] }
 0x36e   : > { %3010 = vmatpush.msra.mxu2 %v2965_v4 }
 0x36f   : > { %v2859_v27 = vmax.f32 %v7021_v49, 0.0 }
 0x370   : > { %3011 = vmatpush.msra.mxu2 %v2964_v36 }
 0x371   : > { %v2871_v25 = vsel %vm2863_vm5, %v2859_v27, 0.0 }
 0x372   : > { %v2872_v45 = vadd.f32 %v2871_v25, %v2870_v35 }
 0x374   : > { %v2846_v53 = vpop.f32.mrf.mxu1 }
 0x375   : > { %v7030_v15 = vadd.f32 %v2846_v53, %v2806_v16 }
 0x377   : > { %v2860_v42 = vmax.f32 %v7030_v15, 0.0 }
 0x379   : > { %v2873_v39 = vsel %vm2863_vm5, %v2860_v42, 0.0 }
 0x37a   : > { %v2874_v51 = vadd.f32 %v2873_v39, %v2872_v45 }
 0x37c   : > { %v2849_v56 = vpop.f32.mrf.mxu1 }
 0x37d   : > { %v2850_v59 = vadd.f32 %v2849_v56, %v2809_v9 }
 0x37f   : > { %v2861_v18 = vmax.f32 %v2850_v59, 0.0 }
 0x381   : > { %v2875_v29 = vsel %vm2863_vm5, %v2861_v18, 0.0 }
 0x382   : > { %v2876_v37 = vadd.f32 %v2875_v29, %v2874_v51 }
 0x384   : > { %v2878_v62 = vadd.f32 %v2877_v22, %v2876_v37 }
 0x386   : > { %v2879_v19 = vrot.slane %v2878_v62, 4 }
 0x388   : > { %v2880_v5 = vadd.f32 %v2879_v19, %v2878_v62 }
 0x38a   : > { %v2881_v30 = vrot.slane %v2880_v5, 2 }
 0x38c   : > { %v2882_v28 = vadd.f32 %v2881_v30, %v2880_v5 }
 0x38e   : > { %v2883_v8 = vrot.slane %v2882_v28, 1 }
 0x390   : > { %v2884_v47 = vadd.f32 %v2883_v8, %v2882_v28 }
 0x392   : > { %v2892_v1 = vmul.f32 %v2891_v38, %v2884_v47 }
 0x394   : > { %3834 = vmatmul.msk.f32.vlgmr.msrb.gmra.mxu2 %vm2863_vm5, %v2892_v1 }
 0x417   : > { %v2917_v34 = vpop.f32.mrf.mxu2 }
 0x418   : > { %v2920_v6 = vmax.f32 %v2917_v34, 0.0 }
 0x41a   : > { %3836 = vmatmul.msk.f32.vlgmr.msra.gmra.mxu3 %vm2922_vm8, %v2920_v6 }
 0x49d   : > { %v2947_v33 = vpop.f32.mrf.mxu3 }
 0x49e   : > { %v2950_v20 = vsub.f32 0.0, %v2947_v33 }
 0x4a0   : > { %v2951_v16 = vmul.f32 1.442695, %v2950_v20 }
 0x4a2   : > { %4091 = vpow2.f32 %v2951_v16 }
 0x4a8   : > { %v4092_v14 = vpop.eup %4091 }
 0x4a9   : > { %v2953_v61 = vadd.f32 1.0, %v4092_v14 }
 0x4ab   : > { %4093 = vrcp.f32 %v2953_v61 }
 0x4b1   : > { %v4094_v53 = vpop.eup %4093 }
 0x4b2   : > { %v2955_v52 = vperm.slane %v4094_v53, 0 }
 0x4b4   : > { %v2956_v24 = vmul.f32 %v2955_v52, %v2855_v17  ;;  %v2957_v13 = vmul.f32 %v2955_v52, %v2856_v3  ;;  %v2958_v2 = vmul.f32 %v2955_v52, %v2857_v10  ;;  %v2959_v40 = vmul.f32 %v2955_v52, %v2858_v31 }
 0x4b5   : > { %v2960_v43 = vmul.f32 %v2955_v52, %v2859_v27  ;;  %v2961_v63 = vmul.f32 %v2955_v52, %v2860_v42  ;;  %v2962_v3 = vmul.f32 %v2955_v52, %v2861_v18  ;;  %v2963_v58 = vmul.f32 %v2955_v52, %v2862_v32 }
 0x4b6   : > { %3837 = vmatmul.msk.f32.vlgmr.msra.gmra.mxu2 %vm2863_vm5, %v2956_v24 }
 0x4be   : > { %3838 = vmatmul.msk.f32.gmra.mxu2 %vm2863_vm5, %v2957_v13 }
 0x4c6   : > { %3839 = vmatmul.msk.f32.gmra.mxu2 %vm2863_vm5, %v2958_v2 }
 0x4ce   : > { %3840 = vmatmul.msk.f32.gmra.mxu2 %vm2863_vm5, %v2959_v40 }
 0x4d6   : > { %3841 = vmatmul.msk.f32.gmra.mxu2 %vm2863_vm5, %v2960_v43 }
 0x4de   : > { %3842 = vmatmul.msk.f32.gmra.mxu2 %vm2863_vm5, %v2961_v63 }
 0x4e6   : > { %3843 = vmatmul.msk.f32.gmra.mxu2 %vm2863_vm5, %v2962_v3 }
 0x4ee   : > { %3844 = vmatmul.msk.f32.gmra.mxu2 %vm2863_vm5, %v2963_v58 }
 0x539   : > { %v3013_v17 = vpop.f32.mrf.mxu2 }
 0x53a   : > { %v3014_v10 = vadd.f32 %v4088_v54, %v3013_v17 }
 0x53c   : > { %3037 = vst [vmem:[%s325_s24] sm:$0xff] %v3014_v10 }
 0x541   : > { %v3016_v49 = vpop.f32.mrf.mxu2 }
 0x542   : > { %v3017_v31 = vadd.f32 %v4088_v54, %v3016_v49 }
 0x544   : > { %3038 = vst [vmem:[%s325_s24 + $0x8] sm:$0xff] %v3017_v31 }
 0x549   : > { %v3019_v15 = vpop.f32.mrf.mxu2 }
 0x54a   : > { %v3020_v44 = vadd.f32 %v4088_v54, %v3019_v15 }
 0x54c   : > { %3039 = vst [vmem:[%s325_s24 + $0x10] sm:$0xff] %v3020_v44 }
 0x551   : > { %v3022_v57 = vpop.f32.mrf.mxu2 }
 0x552   : > { %v3023_v27 = vadd.f32 %v4088_v54, %v3022_v57 }
 0x554   : > { %3040 = vst [vmem:[%s325_s24 + $0x18] sm:$0xff] %v3023_v27 }
 0x559   : > { %v3025_v41 = vpop.f32.mrf.mxu2 }
 0x55a   : > { %v3026_v60 = vadd.f32 %v4088_v54, %v3025_v41 }
 0x55c   : > { %3041 = vst [vmem:[%s325_s24 + $0x20] sm:$0xff] %v3026_v60 }
 0x561   : > { %v3028_v7 = vpop.f32.mrf.mxu2 }
 0x562   : > { %v3029_v42 = vadd.f32 %v4088_v54, %v3028_v7 }
 0x564   : > { %3042 = vst [vmem:[%s325_s24 + $0x28] sm:$0xff] %v3029_v42 }
 0x569   : > { %v3031_v26 = vpop.f32.mrf.mxu2 }
 0x56a   : > { %v3032_v21 = vadd.f32 %v4088_v54, %v3031_v26 }
 0x56c   : > { %3043 = vst [vmem:[%s325_s24 + $0x30] sm:$0xff] %v3032_v21 }
 0x571   : > { %v3034_v55 = vpop.f32.mrf.mxu2 }
 0x572   : > { %v3035_v25 = vadd.f32 %v4088_v54, %v3034_v55 }
 0x574   : > { %3044 = vst [vmem:[%s325_s24 + $0x38] sm:$0xff] %v3035_v25 }
 0x575   : > { %4122 = shalt.err (!%p4119_p3)
}
 0x576   : > { %s4161_s16 = smov 128   ;;  %s4162_s24 = smov 8  }
 0x577   : > { %4044 = dma.vmem_to_hbm [thread:$0]  (%p4251_p5), %s3059_s28, 1024, %s3061_s14, %s3046_s29, %s4161_s16, %s4161_s16, %s4162_s24  }
 0x578 PF: > { %p4050_p4 = scmp.ge.s32.totalorder %s4157_s12, 2  ;;  %s3075_s21 = sand.u32 1, %s4145_s30  }
 0x579   : > { %s3076_s23 = scalar_lea.sflag [#allocation3], %s3075_s21 }
 0x57a   : > { %p4047_p7 = pnand %p4050_p4, %p4255_p6 }
 0x57c   : > { %p4048_p8 = pneg %p4047_p7 }
 0x57e   : > { %4140 = dma.done.wait (%p4048_p8), %s3076_s23, 1024  }
 0x57f   : > { %4142 = vsyncadd (%p4048_p8), %s3076_s23, 4294966272  ;;  %p19_p9 = scmp.ge.s32.totalorder %s4238_s15, 4   ;;  %s7138_s30 = smov %s4149_s10 }
 0x580   : > { %s7139_s10 = smov %s4153_s11  ;;  %s7140_s11 = smov %s4249_s18 }
 0x581   : > { %s7141_s12 = smov %s4238_s15  ;;  %21 = sbr.rel (!%p19_p9) target bundleno = 3 (0x3), region = 91 }
 0x586   :  { %3082 = vsyncpa [#allocation3], 1 }
 0x587   :  { %3084 = vsyncpa [#allocation3 + $0x1], 1 }

</bundles_post_ra>
